<compile_context>
chip_gen: v6e
topology: v6e:2x2x1
jax: 0.10.0
libtpu: 0.0.40
codegen_flags: <defaults>
</compile_context>

<pallas_src>
import functools

import jax
import jax.numpy as jnp
from jax.experimental import pallas as pl
from jax.experimental.pallas import tpu as pltpu


def autopad(kernel, padding=None):
    if padding is None:
        return kernel // 2 if isinstance(kernel, int) else [x // 2 for x in kernel]
    return padding


def _round_up(v, m):
    return ((v + m - 1) // m) * m


def _cdiv(a, b):
    return (a + b - 1) // b


def _device_kind():
    try:
        return jax.devices()[0].device_kind.lower()
    except Exception:
        return ""


def _vmem_cap():
    # Per-core VMEM budget to tile against (leave headroom below the physical size).
    return (48 << 20) if "v7" in _device_kind() else (96 << 20)


def _pick_tn(c2p, contract_rows):
    # Keep the whole folded weight resident in VMEM when it is small: the weight block
    # index is then constant and it is DMA'd only once (no B*nh re-fetches).
    if contract_rows * c2p * 2 <= (6 << 20):
        return c2p
    # v5e: 4x128x128 MXU + single vst slot -> tn=128. v6e/v7x: 256-wide MXU -> tn=256.
    if c2p % 256 == 0 and "v5" not in _device_kind():
        return 256
    return 128


def _padded_bytes(shape, itemsize):
    # Rough VMEM footprint incl. (8,128) tile padding (estimate only).
    if len(shape) == 1:
        return _round_up(shape[0], 128) * itemsize
    lead = 1
    for d in shape[:-2]:
        lead *= d
    return lead * _round_up(shape[-2], 8) * _round_up(shape[-1], 128) * itemsize


# ----------------------- general KxK / strided kernel ---------------------- #
def _conv_bn_act_kernel(x_main_ref, x_halo_ref, w_ref, shift_ref, o_ref,
                        band_ref, lhs_ref, *, taps, th, hh, ws, c1, apply_act):
    """One (batch, output-row-tile, C2-tile) grid step.

    x_main_ref: (S2, 1, th*ws, C1) bf16  -- th plane rows of every stride phase
    x_halo_ref: (S2, 1, hh*ws, C1) bf16  -- next hh plane rows (halo below the tile)
    w_ref:      (n_taps*C1, tn)    bf16  -- BN-scale-folded weights, deep-reshaped
    shift_ref:  (1, tn)            f32   -- folded BN shift
    o_ref:      (1, th*ws, tn)     bf16
    band_ref:   (S2, (th+hh)*ws, C1)     bf16 scratch -- contiguous row band
    lhs_ref:    (th*ws, n_taps*C1)       bf16 scratch -- im2col LHS for one deep matmul
    """
    # Build the band + im2col LHS only once per (batch, row-tile): j (C2 tile) is the
    # innermost grid axis and is marked "arbitrary", so the scratch persists across it.
    @pl.when(pl.program_id(2) == 0)
    def _build_lhs():
        band_ref[:, 0:th * ws, :] = x_main_ref[:, 0, :, :]
        band_ref[:, th * ws:(th + hh) * ws, :] = x_halo_ref[:, 0, :, :]
        for t, (ph, a, b) in enumerate(taps):          # static unroll over taps
            lhs_ref[:, t * c1:(t + 1) * c1] = band_ref[ph, pl.ds(a * ws + b, th * ws), :]

    # Single deep matmul: contraction depth n_taps*C1 (critical for small-C1 layers).
    y = jnp.dot(lhs_ref[...], w_ref[...], preferred_element_type=jnp.float32)
    y = y + shift_ref[...]                              # folded BatchNorm shift
    if apply_act:
        y = y * pl.reciprocal(1.0 + jnp.exp(-y), approx=True)   # SiLU on EUP
    o_ref[0] = y.astype(o_ref.dtype)


def _vmem_estimate_general(S2, th, hh, Ws, C1, n_taps, tn):
    rows = th * Ws
    est = 2 * _padded_bytes((S2, 1, rows, C1), 2)           # main block (double-buffered)
    est += 2 * _padded_bytes((S2, 1, hh * Ws, C1), 2)       # halo block
    est += 2 * _padded_bytes((n_taps * C1, tn), 2)          # weight tile
    est += 2 * _padded_bytes((1, tn), 4)                    # shift
    est += 2 * _padded_bytes((1, rows, tn), 2)              # bf16 out tile
    est += _padded_bytes((S2, (th + hh) * Ws, C1), 2)       # band scratch
    est += _padded_bytes((rows, n_taps * C1), 2)            # lhs scratch
    est += _padded_bytes((rows, tn), 4)                     # f32 epilogue temp
    return est


# ------------------------- 1x1 / stride-1 fast path ------------------------ #
def _pointwise_kernel(x_ref, w_ref, shift_ref, o_ref, *, apply_act):
    y = jnp.dot(x_ref[0], w_ref[...], preferred_element_type=jnp.float32)
    y = y + shift_ref[...]
    if apply_act:
        y = y * pl.reciprocal(1.0 + jnp.exp(-y), approx=True)
    o_ref[0] = y.astype(o_ref.dtype)


def _vmem_estimate_pw(tr, C1, tn):
    est = 2 * _padded_bytes((1, tr, C1), 2)
    est += 2 * _padded_bytes((C1, tn), 2)
    est += 2 * _padded_bytes((1, tn), 4)
    est += 2 * _padded_bytes((1, tr, tn), 2)
    est += _padded_bytes((tr, tn), 4)
    return est


def _pointwise_bn_act(x_nhwc, weight, scale, shift, *, act, compute_dtype, out_dtype):
    B, H, W, C1 = x_nhwc.shape
    C2 = weight.shape[0]
    HW = H * W

    C2p = _round_up(max(C2, 128), 128)
    tn = _pick_tn(C2p, C1)
    nc2 = C2p // tn
    cap = _vmem_cap()

    tr = min(_round_up(HW, 8), 2048)
    while tr > 8 and _vmem_estimate_pw(tr, C1, tn) > cap:
        tr = max(8, _round_up(tr // 2, 8))
    nr = _cdiv(HW, tr)

    xr = x_nhwc.astype(compute_dtype).reshape(B, HW, C1)
    xr = jnp.pad(xr, ((0, 0), (0, nr * tr - HW), (0, 0)))

    wf = (weight * scale[:, None, None, None])[:, :, 0, 0]               # (C2, C1) f32
    wf = jnp.pad(wf.T, ((0, 0), (0, C2p - C2))).astype(compute_dtype)    # (C1, C2p) bf16
    shift_p = jnp.pad(shift.astype(jnp.float32), (0, C2p - C2)).reshape(1, C2p)

    kernel_fn = functools.partial(_pointwise_kernel, apply_act=bool(act))

    flops = 2 * B * nr * tr * C1 * C2p
    trans = B * nr * tr * C2p if act else 0
    bytes_accessed = (B * HW * C1 * 2
                      + C1 * C2p * 2 * (B * nr if nc2 > 1 else 1)
                      + B * nr * tr * C2p * 2 + C2p * 4)
    est = _vmem_estimate_pw(tr, C1, tn)
    vmem_limit = int(min(max(est + (16 << 20), 32 << 20), cap))

    out = pl.pallas_call(
        kernel_fn,
        out_shape=jax.ShapeDtypeStruct((B, nr * tr, C2p), out_dtype),
        grid_spec=pltpu.PrefetchScalarGridSpec(
            num_scalar_prefetch=0,
            grid=(B, nr, nc2),
            in_specs=[
                pl.BlockSpec((1, tr, C1), lambda b, i, j: (b, i, 0)),
                pl.BlockSpec((C1, tn), lambda b, i, j: (0, j)),
                pl.BlockSpec((1, tn), lambda b, i, j: (0, j)),
            ],
            out_specs=pl.BlockSpec((1, tr, tn), lambda b, i, j: (b, i, j)),
        ),
        compiler_params=pltpu.CompilerParams(
            dimension_semantics=("parallel", "parallel", "parallel"),
            vmem_limit_bytes=vmem_limit),
        cost_estimate=pl.CostEstimate(flops=flops, transcendentals=trans,
                                      bytes_accessed=bytes_accessed),
    )(xr, wf, shift_p)

    return out[:, :HW, :C2].reshape(B, H, W, C2)


# --------------------------------- wrapper --------------------------------- #
def conv_bn_act(x_nhwc, weight, scale, shift, *, kernel, stride, pad, act,
                row_tile=32, compute_dtype=jnp.bfloat16, out_dtype=jnp.bfloat16):
    """Fused Conv2d(bias=False) + folded (inference) BatchNorm + optional SiLU.

    x_nhwc: (B, H, W, C1) f32; weight: (C2, C1, K, K) f32; scale/shift: (C2,) f32.
    Returns (B, Ho, Wo, C2) in `out_dtype` (bf16 by default).
    """
    B, H, W, C1 = x_nhwc.shape
    C2 = weight.shape[0]
    K, s, p = int(kernel), int(stride), int(pad)

    if K == 1 and s == 1 and p == 0:
        return _pointwise_bn_act(x_nhwc, weight, scale, shift, act=act,
                                 compute_dtype=compute_dtype, out_dtype=out_dtype)

    Ho = (H + 2 * p - K) // s + 1
    Wo = (W + 2 * p - K) // s + 1
    Ks = _cdiv(K, s)                  # sub-kernel extent per stride phase
    S2 = s * s                        # number of stride phases (1 when stride == 1)
    Ws = Wo + Ks - 1                  # columns computed per output row (tail sliced off)
    n_taps = S2 * Ks * Ks

    C2p = _round_up(max(C2, 128), 128)
    tn = _pick_tn(C2p, n_taps * C1)
    nc2 = C2p // tn

    cap = _vmem_cap()
    hh = _round_up(Ks, 8)                                       # halo rows (mult of 8)
    th = max(hh, min(_round_up(row_tile, hh), _round_up(Ho, hh)))  # rows/tile (mult of hh)
    while th > hh and _vmem_estimate_general(S2, th, hh, Ws, C1, n_taps, tn) > cap:
        th = max(hh, (th // (2 * hh)) * hh)
    nh = _cdiv(Ho, th)
    Hs = (nh + 1) * th                # plane rows incl. halo / zero tail

    # ---- input: zero-pad + split into stride phases, flatten (H, W) per phase.
    #      One ~input-sized rearrangement; no materialized im2col in HBM. ----
    xb = x_nhwc.astype(compute_dtype)
    pad_h = max(0, s * Hs - H - p)
    pad_w = max(0, s * Ws - W - p)
    xp = jnp.pad(xb, ((0, 0), (p, pad_h), (p, pad_w), (0, 0)))
    xp = xp[:, :s * Hs, :s * Ws, :]
    planes = xp.reshape(B, Hs, s, Ws, s, C1)
    planes = planes.transpose(2, 4, 0, 1, 3, 5).reshape(S2, B, Hs * Ws, C1)

    # ---- weights: fold BN scale, split into per-phase taps, deep-reshape to
    #      (n_taps*C1, C2p) so the kernel runs ONE matmul per grid step. ----
    wf = weight * scale[:, None, None, None]                        # (C2, C1, K, K) f32
    wf = jnp.pad(wf, ((0, C2p - C2), (0, 0), (0, s * Ks - K), (0, s * Ks - K)))
    wt = wf.reshape(C2p, C1, Ks, s, Ks, s).transpose(3, 5, 2, 4, 1, 0)
    wt = wt.reshape(n_taps * C1, C2p).astype(compute_dtype)
    shift_p = jnp.pad(shift.astype(jnp.float32), (0, C2p - C2)).reshape(1, C2p)

    taps = tuple((pi * s + pj, a, b)
                 for pi in range(s) for pj in range(s)
                 for a in range(Ks) for b in range(Ks))

    kernel_fn = functools.partial(_conv_bn_act_kernel, taps=taps, th=th, hh=hh,
                                  ws=Ws, c1=C1, apply_act=bool(act))

    rows = th * Ws
    flops = 2 * B * nh * rows * (n_taps * C1) * C2p
    transcendentals = B * nh * rows * C2p if act else 0
    bytes_accessed = (B * nh * (th + hh) * Ws * C1 * S2 * 2
                      + (n_taps * C1 * C2p * 2) * (B * nh if nc2 > 1 else 1)
                      + B * nh * rows * C2p * 2 + C2p * 4)
    est = _vmem_estimate_general(S2, th, hh, Ws, C1, n_taps, tn)
    vmem_limit = int(min(max(est + (16 << 20), 32 << 20), cap))

    out = pl.pallas_call(
        kernel_fn,
        out_shape=jax.ShapeDtypeStruct((B, nh * rows, C2p), out_dtype),
        grid_spec=pltpu.PrefetchScalarGridSpec(
            num_scalar_prefetch=0,
            grid=(B, nh, nc2),
            in_specs=[
                # main row band: th plane rows of every phase for this tile
                pl.BlockSpec((S2, 1, th * Ws, C1), lambda b, i, j: (0, b, i, 0)),
                # halo: the next hh plane rows (same array, small block)
                pl.BlockSpec((S2, 1, hh * Ws, C1),
                             lambda b, i, j: (0, b, (i + 1) * (th // hh), 0)),
                # BN-scale-folded weights, (n_taps*C1, tn); index constant when resident
                pl.BlockSpec((n_taps * C1, tn), lambda b, i, j: (0, j)),
                # folded BN shift
                pl.BlockSpec((1, tn), lambda b, i, j: (0, j)),
            ],
            out_specs=pl.BlockSpec((1, th * Ws, tn), lambda b, i, j: (b, i, j)),
            scratch_shapes=[
                pltpu.VMEM((S2, (th + hh) * Ws, C1), compute_dtype),     # row band
                pltpu.VMEM((th * Ws, n_taps * C1), compute_dtype),       # im2col LHS
            ],
        ),
        compiler_params=pltpu.CompilerParams(
            # C2 axis must be "arbitrary": the band/LHS scratch persists across it.
            dimension_semantics=("parallel", "parallel", "arbitrary"),
            vmem_limit_bytes=vmem_limit),
        cost_estimate=pl.CostEstimate(flops=flops,
                                      transcendentals=transcendentals,
                                      bytes_accessed=bytes_accessed),
    )(planes, planes, wt, shift_p)

    out = out.reshape(B, nh * th, Ws, C2p)[:, :Ho, :Wo, :C2]
    return out


class ConvPallas:
    """yolov5 Conv: Conv2d(bias=False) + BatchNorm2d(eps=1e-3) + SiLU (inference mode)."""

    def __init__(self, c1, c2, kernel=1, stride=1, padding=None, act=True, *, key=None):
        self.c1, self.c2, self.k, self.s = c1, c2, kernel, stride
        self.p = autopad(kernel, padding)
        self.act = act is True   # True -> SiLU, anything else -> identity
        key = jax.random.PRNGKey(0) if key is None else key
        # Conv weight (C2, C1, K, K), PyTorch layout, deterministic init.
        self.weight = 0.1 * jax.random.normal(
            key, (c2, c1, kernel, kernel), dtype=jnp.float32)
        # BatchNorm params / running stats (deterministic, non-trivial values).
        self.gamma = jnp.linspace(0.5, 1.5, c2, dtype=jnp.float32)
        self.beta = jnp.linspace(-0.2, 0.2, c2, dtype=jnp.float32)
        self.running_mean = jnp.linspace(-0.1, 0.1, c2, dtype=jnp.float32)
        self.running_var = jnp.linspace(0.8, 1.2, c2, dtype=jnp.float32)
        self.eps = 1e-3

    def __call__(self, x):
        # x: (B, C1, H, W) NCHW f32 (PyTorch layout).
        xh = x.transpose(0, 2, 3, 1)
        scale = self.gamma / jnp.sqrt(self.running_var + self.eps)
        shift = self.beta - self.running_mean * scale
        out = conv_bn_act(xh, self.weight, scale, shift,
                          kernel=self.k, stride=self.s, pad=self.p, act=self.act)
        # NHWC bf16 -> NCHW f32 only to mirror the PyTorch module interface.
        return out.transpose(0, 3, 1, 2).astype(jnp.float32)


# ----------------------------- references & main --------------------------- #
def _reference_bf16(conv, x):
    """Same bf16 operands as the kernel (isolates kernel correctness)."""
    scale = conv.gamma / jnp.sqrt(conv.running_var + conv.eps)
    shift = conv.beta - conv.running_mean * scale
    w = (conv.weight * scale[:, None, None, None]).astype(jnp.bfloat16)
    y = jax.lax.conv_general_dilated(
        x.astype(jnp.bfloat16), w, window_strides=(conv.s, conv.s),
        padding=[(conv.p, conv.p), (conv.p, conv.p)],
        dimension_numbers=("NCHW", "OIHW", "NCHW"),
        preferred_element_type=jnp.float32)
    y = y + shift.reshape(1, -1, 1, 1)
    return y * jax.nn.sigmoid(y) if conv.act else y


def _reference_f32(conv, x):
    """Original full-f32 module semantics (loose sanity check for the bf16 path)."""
    scale = conv.gamma / jnp.sqrt(conv.running_var + conv.eps)
    shift = conv.beta - conv.running_mean * scale
    y = jax.lax.conv_general_dilated(
        x, conv.weight, window_strides=(conv.s, conv.s),
        padding=[(conv.p, conv.p), (conv.p, conv.p)],
        dimension_numbers=("NCHW", "OIHW", "NCHW"))
    y = y * scale.reshape(1, -1, 1, 1) + shift.reshape(1, -1, 1, 1)
    return y * jax.nn.sigmoid(y) if conv.act else y


if __name__ == "__main__":
    key = jax.random.PRNGKey(0)
    kx, kw1, kw2, kw3 = jax.random.split(key, 4)
    B, C1, C2, H, W = 2, 4, 8, 16, 16
    x = jax.random.normal(kx, (B, C1, H, W), dtype=jnp.float32)

    cases = [
        ("k3_s1", ConvPallas(C1, C2, kernel=3, stride=1, act=True, key=kw1)),
        ("k1_s1", ConvPallas(C1, C2, kernel=1, stride=1, act=True, key=kw2)),
        ("k3_s2", ConvPallas(C1, C2, kernel=3, stride=2, act=True, key=kw3)),
    ]
    for name, conv in cases:
        y = jax.block_until_ready(conv(x))
        Ho = (H + 2 * conv.p - conv.k) // conv.s + 1
        assert y.shape == (B, C2, Ho, Ho), (name, y.shape)

        # Kernel emits bf16; quantize the bf16-operand reference the same way.
        ref_bf = _reference_bf16(conv, x).astype(jnp.bfloat16).astype(jnp.float32)
        err_bf = float(jnp.max(jnp.abs(y - ref_bf)))
        assert err_bf < 5e-2, (name, "bf16-operand reference mismatch", err_bf)

        err_f32 = float(jnp.max(jnp.abs(y - _reference_f32(conv, x))))
        assert err_f32 < 1e-1, (name, "f32 reference mismatch", err_f32)

    print("KERNEL_OK")
</pallas_src>

<mosaic_0001>
module attributes {stable_mosaic.version = 11 : i64} {
  func.func @_conv_bn_act_kernel(%arg0: i32, %arg1: i32, %arg2: i32, %arg3: memref<1x1x288x4xbf16, #tpu.memory_space<vmem>>, %arg4: memref<1x1x144x4xbf16, #tpu.memory_space<vmem>>, %arg5: memref<36x128xbf16, #tpu.memory_space<vmem>>, %arg6: memref<1x128xf32, #tpu.memory_space<vmem>>, %arg7: memref<1x288x128xbf16, #tpu.memory_space<vmem>>, %arg8: memref<1x432x4xbf16, #tpu.memory_space<vmem>>, %arg9: memref<288x36xbf16, #tpu.memory_space<vmem>>) attributes {dimension_semantics = [#tpu.dimension_semantics<parallel>, #tpu.dimension_semantics<parallel>, #tpu.dimension_semantics<arbitrary>], iteration_bounds = array<i64: 2, 1, 1>, scalar_prefetch = 0 : i64, scratch_operands = 2 : i64, tpu.core_type = #tpu.core_type<tc>, window_params = [{transform_indices = @transform_0, window_bounds = array<i64: 1, 1, 288, 4>}, {transform_indices = @transform_1, window_bounds = array<i64: 1, 1, 144, 4>}, {transform_indices = @transform_2, window_bounds = array<i64: 36, 128>}, {transform_indices = @transform_3, window_bounds = array<i64: 1, 128>}, {transform_indices = @transform_4, window_bounds = array<i64: 1, 288, 128>}]} {
    %c0_i32 = arith.constant 0 : i32
    %0 = arith.cmpi eq, %arg2, %c0_i32 : i32
    %1 = arith.extui %0 : i1 to i32
    %c0_i32_0 = arith.constant 0 : i32
    %2 = arith.cmpi ne, %1, %c0_i32_0 : i32
    scf.if %2 {
      %c0_11 = arith.constant 0 : index
      %c0_12 = arith.constant 0 : index
      %c0_13 = arith.constant 0 : index
      %c0_14 = arith.constant 0 : index
      %20 = vector.load %arg3[%c0_11, %c0_12, %c0_13, %c0_14] : memref<1x1x288x4xbf16, #tpu.memory_space<vmem>>, vector<1x1x288x4xbf16>
      %21 = vector.shape_cast %20 : vector<1x1x288x4xbf16> to vector<1x288x4xbf16>
      %c0_15 = arith.constant 0 : index
      %c0_16 = arith.constant 0 : index
      %c0_17 = arith.constant 0 : index
      %22 = vector.load %arg8[%c0_15, %c0_16, %c0_17] : memref<1x432x4xbf16, #tpu.memory_space<vmem>>, vector<1x288x4xbf16>
      tpu.vector_store %arg8[%c0_15, %c0_16, %c0_17], %21 {strides = array<i32>} : memref<1x432x4xbf16, #tpu.memory_space<vmem>>, vector<1x288x4xbf16>,
      %c0_18 = arith.constant 0 : index
      %c0_19 = arith.constant 0 : index
      %c0_20 = arith.constant 0 : index
      %c0_21 = arith.constant 0 : index
      %23 = vector.load %arg4[%c0_18, %c0_19, %c0_20, %c0_21] : memref<1x1x144x4xbf16, #tpu.memory_space<vmem>>, vector<1x1x144x4xbf16>
      %24 = vector.shape_cast %23 : vector<1x1x144x4xbf16> to vector<1x144x4xbf16>
      %c0_22 = arith.constant 0 : index
      %c288 = arith.constant 288 : index
      %c0_23 = arith.constant 0 : index
      %25 = vector.load %arg8[%c0_22, %c288, %c0_23] : memref<1x432x4xbf16, #tpu.memory_space<vmem>>, vector<1x144x4xbf16>
      tpu.vector_store %arg8[%c0_22, %c288, %c0_23], %24 {strides = array<i32>} : memref<1x432x4xbf16, #tpu.memory_space<vmem>>, vector<1x144x4xbf16>,
      %c0_24 = arith.constant 0 : index
      %c0_25 = arith.constant 0 : index
      %c0_26 = arith.constant 0 : index
      %26 = vector.load %arg8[%c0_24, %c0_25, %c0_26] : memref<1x432x4xbf16, #tpu.memory_space<vmem>>, vector<1x288x4xbf16>
      %27 = vector.shape_cast %26 : vector<1x288x4xbf16> to vector<288x4xbf16>
      %c0_27 = arith.constant 0 : index
      %c0_28 = arith.constant 0 : index
      %28 = vector.load %arg9[%c0_27, %c0_28] : memref<288x36xbf16, #tpu.memory_space<vmem>>, vector<288x4xbf16>
      tpu.vector_store %arg9[%c0_27, %c0_28], %27 {strides = array<i32>} : memref<288x36xbf16, #tpu.memory_space<vmem>>, vector<288x4xbf16>,
      %c0_29 = arith.constant 0 : index
      %c1 = arith.constant 1 : index
      %c0_30 = arith.constant 0 : index
      %29 = vector.load %arg8[%c0_29, %c1, %c0_30] : memref<1x432x4xbf16, #tpu.memory_space<vmem>>, vector<1x288x4xbf16>
      %30 = vector.shape_cast %29 : vector<1x288x4xbf16> to vector<288x4xbf16>
      %c0_31 = arith.constant 0 : index
      %c4 = arith.constant 4 : index
      %31 = vector.load %arg9[%c0_31, %c4] : memref<288x36xbf16, #tpu.memory_space<vmem>>, vector<288x4xbf16>
      tpu.vector_store %arg9[%c0_31, %c4], %30 {strides = array<i32>} : memref<288x36xbf16, #tpu.memory_space<vmem>>, vector<288x4xbf16>,
      %c0_32 = arith.constant 0 : index
      %c2 = arith.constant 2 : index
      %c0_33 = arith.constant 0 : index
      %32 = vector.load %arg8[%c0_32, %c2, %c0_33] : memref<1x432x4xbf16, #tpu.memory_space<vmem>>, vector<1x288x4xbf16>
      %33 = vector.shape_cast %32 : vector<1x288x4xbf16> to vector<288x4xbf16>
      %c0_34 = arith.constant 0 : index
      %c8 = arith.constant 8 : index
      %34 = vector.load %arg9[%c0_34, %c8] : memref<288x36xbf16, #tpu.memory_space<vmem>>, vector<288x4xbf16>
      tpu.vector_store %arg9[%c0_34, %c8], %33 {strides = array<i32>} : memref<288x36xbf16, #tpu.memory_space<vmem>>, vector<288x4xbf16>,
      %c0_35 = arith.constant 0 : index
      %c18 = arith.constant 18 : index
      %c0_36 = arith.constant 0 : index
      %35 = vector.load %arg8[%c0_35, %c18, %c0_36] : memref<1x432x4xbf16, #tpu.memory_space<vmem>>, vector<1x288x4xbf16>
      %36 = vector.shape_cast %35 : vector<1x288x4xbf16> to vector<288x4xbf16>
      %c0_37 = arith.constant 0 : index
      %c12 = arith.constant 12 : index
      %37 = vector.load %arg9[%c0_37, %c12] : memref<288x36xbf16, #tpu.memory_space<vmem>>, vector<288x4xbf16>
      tpu.vector_store %arg9[%c0_37, %c12], %36 {strides = array<i32>} : memref<288x36xbf16, #tpu.memory_space<vmem>>, vector<288x4xbf16>,
      %c0_38 = arith.constant 0 : index
      %c19 = arith.constant 19 : index
      %c0_39 = arith.constant 0 : index
      %38 = vector.load %arg8[%c0_38, %c19, %c0_39] : memref<1x432x4xbf16, #tpu.memory_space<vmem>>, vector<1x288x4xbf16>
      %39 = vector.shape_cast %38 : vector<1x288x4xbf16> to vector<288x4xbf16>
      %c0_40 = arith.constant 0 : index
      %c16 = arith.constant 16 : index
      %40 = vector.load %arg9[%c0_40, %c16] : memref<288x36xbf16, #tpu.memory_space<vmem>>, vector<288x4xbf16>
      tpu.vector_store %arg9[%c0_40, %c16], %39 {strides = array<i32>} : memref<288x36xbf16, #tpu.memory_space<vmem>>, vector<288x4xbf16>,
      %c0_41 = arith.constant 0 : index
      %c20 = arith.constant 20 : index
      %c0_42 = arith.constant 0 : index
      %41 = vector.load %arg8[%c0_41, %c20, %c0_42] : memref<1x432x4xbf16, #tpu.memory_space<vmem>>, vector<1x288x4xbf16>
      %42 = vector.shape_cast %41 : vector<1x288x4xbf16> to vector<288x4xbf16>
      %c0_43 = arith.constant 0 : index
      %c20_44 = arith.constant 20 : index
      %43 = vector.load %arg9[%c0_43, %c20_44] : memref<288x36xbf16, #tpu.memory_space<vmem>>, vector<288x4xbf16>
      tpu.vector_store %arg9[%c0_43, %c20_44], %42 {strides = array<i32>} : memref<288x36xbf16, #tpu.memory_space<vmem>>, vector<288x4xbf16>,
      %c0_45 = arith.constant 0 : index
      %c36 = arith.constant 36 : index
      %c0_46 = arith.constant 0 : index
      %44 = vector.load %arg8[%c0_45, %c36, %c0_46] : memref<1x432x4xbf16, #tpu.memory_space<vmem>>, vector<1x288x4xbf16>
      %45 = vector.shape_cast %44 : vector<1x288x4xbf16> to vector<288x4xbf16>
      %c0_47 = arith.constant 0 : index
      %c24 = arith.constant 24 : index
      %46 = vector.load %arg9[%c0_47, %c24] : memref<288x36xbf16, #tpu.memory_space<vmem>>, vector<288x4xbf16>
      tpu.vector_store %arg9[%c0_47, %c24], %45 {strides = array<i32>} : memref<288x36xbf16, #tpu.memory_space<vmem>>, vector<288x4xbf16>,
      %c0_48 = arith.constant 0 : index
      %c37 = arith.constant 37 : index
      %c0_49 = arith.constant 0 : index
      %47 = vector.load %arg8[%c0_48, %c37, %c0_49] : memref<1x432x4xbf16, #tpu.memory_space<vmem>>, vector<1x288x4xbf16>
      %48 = vector.shape_cast %47 : vector<1x288x4xbf16> to vector<288x4xbf16>
      %c0_50 = arith.constant 0 : index
      %c28 = arith.constant 28 : index
      %49 = vector.load %arg9[%c0_50, %c28] : memref<288x36xbf16, #tpu.memory_space<vmem>>, vector<288x4xbf16>
      tpu.vector_store %arg9[%c0_50, %c28], %48 {strides = array<i32>} : memref<288x36xbf16, #tpu.memory_space<vmem>>, vector<288x4xbf16>,
      %c0_51 = arith.constant 0 : index
      %c38 = arith.constant 38 : index
      %c0_52 = arith.constant 0 : index
      %50 = vector.load %arg8[%c0_51, %c38, %c0_52] : memref<1x432x4xbf16, #tpu.memory_space<vmem>>, vector<1x288x4xbf16>
      %51 = vector.shape_cast %50 : vector<1x288x4xbf16> to vector<288x4xbf16>
      %c0_53 = arith.constant 0 : index
      %c32 = arith.constant 32 : index
      %52 = vector.load %arg9[%c0_53, %c32] : memref<288x36xbf16, #tpu.memory_space<vmem>>, vector<288x4xbf16>
      tpu.vector_store %arg9[%c0_53, %c32], %51 {strides = array<i32>} : memref<288x36xbf16, #tpu.memory_space<vmem>>, vector<288x4xbf16>,
    } else {
    }
    %c0 = arith.constant 0 : index
    %c0_1 = arith.constant 0 : index
    %3 = vector.load %arg9[%c0, %c0_1] : memref<288x36xbf16, #tpu.memory_space<vmem>>, vector<288x36xbf16>
    %c0_2 = arith.constant 0 : index
    %c0_3 = arith.constant 0 : index
    %4 = vector.load %arg5[%c0_2, %c0_3] : memref<36x128xbf16, #tpu.memory_space<vmem>>, vector<36x128xbf16>
    %cst = arith.constant dense<0.000000e+00> : vector<288x128xf32>
    %5 = tpu.matmul %3, %4, %cst {dimension_numbers = #tpu.dot_dimension_numbers<[1], [0], [0], [1], [0, 0, 1, 1], [], []>} : vector<288x36xbf16>, vector<36x128xbf16>, vector<288x128xf32> -> vector<288x128xf32>
    %c0_4 = arith.constant 0 : index
    %c0_5 = arith.constant 0 : index
    %6 = vector.load %arg6[%c0_4, %c0_5] : memref<1x128xf32, #tpu.memory_space<vmem>>, vector<1x128xf32>
    %7 = vector.broadcast %6 : vector<1x128xf32> to vector<288x128xf32>
    %8 = arith.addf %5, %7 : vector<288x128xf32>
    %cst_6 = arith.constant 0.000000e+00 : f32
    %9 = vector.broadcast %cst_6 : f32 to vector<288x128xf32>
    %10 = arith.subf %9, %8 : vector<288x128xf32>
    %11 = math.exp %10 : vector<288x128xf32>
    %cst_7 = arith.constant 1.000000e+00 : f32
    %12 = vector.broadcast %cst_7 : f32 to vector<288x128xf32>
    %13 = arith.addf %12, %11 : vector<288x128xf32>
    %14 = tpu.reciprocal %13 {approx = true} : vector<288x128xf32> -> vector<288x128xf32>
    %15 = arith.mulf %8, %14 : vector<288x128xf32>
    %16 = arith.truncf %15 : vector<288x128xf32> to vector<288x128xbf16>
    %c0_8 = arith.constant 0 : index
    %c0_9 = arith.constant 0 : index
    %c0_10 = arith.constant 0 : index
    %17 = vector.load %arg7[%c0_8, %c0_9, %c0_10] : memref<1x288x128xbf16, #tpu.memory_space<vmem>>, vector<1x288x128xbf16>
    %18 = vector.shape_cast %17 : vector<1x288x128xbf16> to vector<288x128xbf16>
    %19 = vector.shape_cast %16 : vector<288x128xbf16> to vector<1x288x128xbf16>
    tpu.vector_store %arg7[%c0_8, %c0_9, %c0_10], %19 {strides = array<i32>} : memref<1x288x128xbf16, #tpu.memory_space<vmem>>, vector<1x288x128xbf16>,
    return
  }
  func.func @transform_0(%arg0: i32, %arg1: i32, %arg2: i32) -> (i32, i32, i32, i32) {
    %c0_i32 = arith.constant 0 : i32
    %c0_i32_0 = arith.constant 0 : i32
    %c0_i32_1 = arith.constant 0 : i32
    return %c0_i32, %arg0, %arg1, %c0_i32_0 : i32, i32, i32, i32
  }
  func.func @transform_1(%arg0: i32, %arg1: i32, %arg2: i32) -> (i32, i32, i32, i32) {
    %c1_i32 = arith.constant 1 : i32
    %0 = arith.addi %arg1, %c1_i32 : i32
    %c2_i32 = arith.constant 2 : i32
    %1 = arith.muli %0, %c2_i32 : i32
    %c0_i32 = arith.constant 0 : i32
    %c0_i32_0 = arith.constant 0 : i32
    %c0_i32_1 = arith.constant 0 : i32
    return %c0_i32, %arg0, %1, %c0_i32_0 : i32, i32, i32, i32
  }
  func.func @transform_2(%arg0: i32, %arg1: i32, %arg2: i32) -> (i32, i32) {
    %c0_i32 = arith.constant 0 : i32
    %c0_i32_0 = arith.constant 0 : i32
    return %c0_i32, %arg2 : i32, i32
  }
  func.func @transform_3(%arg0: i32, %arg1: i32, %arg2: i32) -> (i32, i32) {
    %c0_i32 = arith.constant 0 : i32
    %c0_i32_0 = arith.constant 0 : i32
    return %c0_i32, %arg2 : i32, i32
  }
  func.func @transform_4(%arg0: i32, %arg1: i32, %arg2: i32) -> (i32, i32, i32) {
    %c0_i32 = arith.constant 0 : i32
    return %arg0, %arg1, %arg2 : i32, i32, i32
  }
}

</mosaic_0001>

<bundles_post_ra>
// kernel: tpu_custom_call.1
= control target key start
LH: loop header
LB: loop body
LE: loop exit
PB: predicated region body
PF: predicated region fallthrough
CT: control target
= control target key end

     0   :  { %9 = vsyncpa [#allocation5], 0  ;;  %s7435_s0 = inlined_call_operand.vmem [shape: bf16[1,2,576,4], index: 0, kind: input, shape index: {}]   ;;  %s7436_s1 = inlined_call_operand.vmem [shape: bf16[1,2,576,4], index: 1, kind: input, shape index: {}]   ;;  %s7437_s2 = inlined_call_operand.vmem [shape: bf16[36,128], index: 2, kind: input, shape index: {}]   ;;  %s7438_s3 = inlined_call_operand.vmem [shape: f32[1,128], index: 3, kind: input, shape index: {}]   ;;  %s7439_s4 = inlined_call_operand.hbm [shape: bf16[2,288,128], index: 4, kind: output, shape index: {}]  }
   0x1   :  { %11 = vsyncpa [#allocation5 + $0x1], 0  ;;  %s5393_s15 = smov 0   ;;  %s5395_s16 = smov 0  }
   0x2   :  { %s5397_s17 = smov 0   ;;  %s5399_s18 = smov 0  }
   0x3   :  { %s5401_s19 = smov 0   ;;  %s5403_s20 = smov 0  }
   0x4 LB: > { %s4737_s21 = sadd.s32 4294967295, %s5356_s20   ;;  %s4738_s22 = sadd.s32 4294967294, %s5356_s20   ;;  %s5356_s20 = sphi %s5403_s20, %s17_s20   ;;  %s5352_s19 = sphi %s5401_s19, %s7458_s19   ;;  %s5348_s18 = sphi %s5399_s18, %s7457_s18   ;;  %s5344_s17 = sphi %s5397_s17, %s7456_s17   ;;  %s5340_s16 = sphi %s5395_s16, %s7455_s16   ;;  %s5336_s15 = sphi %s5393_s15, %s7454_s15  }
   0x5   : > { %s36_s23 = sadd.s32 1, %s5352_s19  ;;  %s159_s24 = sadd.s32 1, %s5344_s17 }
   0x6   : > { %p38_p0 = scmp.ge.s32.totalorder %s36_s23, 2  ;;  %p169_p1 = scmp.ne.s32.totalorder %s5344_s17, %s5340_s16 }
   0x7   : > { %p170_p2 = scmp.eq.s32.totalorder %s4737_s21, 1  ;;  %p175_p3 = scmp.ne.s32.totalorder %s5340_s16, %s5336_s15 }
   0x8   : > { %s7460_s23 = smov (%p38_p0, %s36_s23), 0  ;;  %p176_p5 = scmp.eq.s32.totalorder %s4738_s22, 1 }
   0x9   : > { %p5433_p4 = por %p170_p2, %p169_p1  ;;  %s152_s26 = ssub.s32 %s5352_s19, %s7460_s23 }
   0xa   : > { %p4743_p6 = scmp.ge.s32.totalorder %s5356_s20, 1  ;;  %p157_p7 = scmp.eq.s32.totalorder %s152_s26, 0 }
   0xb   : > { %p5440_p8 = por %p176_p5, %p175_p3  ;;  %p237_p9 = scmp.lt.s32.totalorder %s5356_s20, 3 }
   0xc   : > { %s5446_s28 = scalar_select %p157_p7, %s5344_s17, %s159_s24  }
   0xd   : > { %p238_p10 = pnand %p4743_p6, %p237_p9 }
   0xe   : > { %p286_p11 = scmp.lt.s32.totalorder (!%p238_p10), %s5348_s18, 1  ;;  %s5358_s8 = smov (!%p238_p10), 4  }
   0xf   : > { %241 = sbr.rel (%p238_p10) target bundleno = 1000 (0x3e8), region = 36  ;;  %s5359_s13 = smov (!%p238_p10), 8  }
  0x10   : > { %s5360_s14 = smov (!%p238_p10), 12   ;;  %s5361_s21 = smov (!%p238_p10), 16  }
  0x11   : > { %s5362_s22 = smov (!%p238_p10), 20   ;;  %s5363_s24 = smov (!%p238_p10), 24  }
  0x12   : > { %s5364_s6 = smov (!%p238_p10), 28   ;;  %s5365_s10 = smov (!%p238_p10), 32  }
  0x14   : > { %s5450_s29 = scalar_select %p286_p11, %s5348_s18, 1  ;;  %vm358_vm0 = vcmask 27648   ;;  %vm540_vm1 = vsmask.f32 3328  ;;  %vm541_vm2 = vsmask.f32 7440 }
  0x15   : > { %vm5510_vm3 = vmor %vm540_vm1, %vm541_vm2  ;;  %vm1126_vm4 = vcmask 1042432   ;;  %vm1127_vm5 = vcmask 1046532   ;;  %vm1015_vm7 = vcmask 60448   ;;  %vm1346_vm8 = vcmask 93248  }
  0x16   : > { %s5047_s30 = smul.u32 288, %s5450_s29  ;;  %vm5727_vm6 = vmor %vm1126_vm4, %vm1127_vm5  ;;  %vm1748_vm9 = vsmask.f32 2304  ;;  %vm1749_vm10 = vsmask.f32 6416  ;;  %vm2338_vm12 = vcmask 1041408  }
  0x17   : > { %vm6033_vm11 = vmor %vm1748_vm9, %vm1749_vm10  ;;  %vm2339_vm13 = vcmask 1045508   ;;  %vm2960_vm15 = vsmask.f32 1280  ;;  %vm2961_vm1 = vsmask.f32 5392  ;;  %vm3551_vm4 = vcmask 1044484  }
  0x18   : > { %s5458_s7 = scalar_lea.vmem %s7435_s0, %s5047_s30  ;;  %s4831_s9 = sadd.s32 144, %s5047_s30  ;;  %vm6081_vm14 = vmor %vm2338_vm12, %vm2339_vm13  ;;  %vm2886_vm9 = vcmask 224448   ;;  %vm3439_vm10 = vcmask 257248   ;;  %vm3960_vm13 = vcmask 293888  }
  0x19   : > { %v324_v0 = vld [vmem:[%s5458_s7 + $0x8] sm:$0xf]  ;;  %v325_v1 = vld [vmem:[%s5458_s7 + $0xc] sm:$0xf]  ;;  %v322_v2 = vld [vmem:[%s5458_s7] sm:$0xf]  ;;  %s5620_s12 = scalar_lea.vmem %s7436_s1, %s4831_s9 }
  0x1a   : > { %361 = vst.msk [vmem:[#allocation2 + $0x8] sm:$0xf] %vm358_vm0, %v324_v0  ;;  %362 = vst.msk [vmem:[#allocation2 + $0xc] sm:$0xf] %vm358_vm0, %v325_v1  ;;  %v323_v3 = vld [vmem:[%s5458_s7 + $0x4] sm:$0xf] }
  0x1b   : > { %359 = vst.msk [vmem:[#allocation2] sm:$0xf] %vm358_vm0, %v322_v2  ;;  %v326_v4 = vld [vmem:[%s5458_s7 + $0x10] sm:$0xf]  ;;  %v327_v5 = vld [vmem:[%s5458_s7 + $0x14] sm:$0xf]  ;;  %vm6140_vm2 = vmor %vm2960_vm15, %vm2961_vm1 }
  0x1c   : > { %360 = vst.msk [vmem:[#allocation2 + $0x4] sm:$0xf] %vm358_vm0, %v323_v3  ;;  %363 = vst.msk [vmem:[#allocation2 + $0x10] sm:$0xf] %vm358_vm0, %v326_v4  ;;  %v328_v6 = vld [vmem:[%s5458_s7 + $0x18] sm:$0xf] }
  0x1d   : > { %364 = vst.msk [vmem:[#allocation2 + $0x14] sm:$0xf] %vm358_vm0, %v327_v5  ;;  %v329_v7 = vld [vmem:[%s5458_s7 + $0x1c] sm:$0xf]  ;;  %v330_v8 = vld [vmem:[%s5458_s7 + $0x20] sm:$0xf] }
  0x1e   : > { %365 = vst.msk [vmem:[#allocation2 + $0x18] sm:$0xf] %vm358_vm0, %v328_v6  ;;  %366 = vst.msk [vmem:[#allocation2 + $0x1c] sm:$0xf] %vm358_vm0, %v329_v7  ;;  %v331_v9 = vld [vmem:[%s5458_s7 + $0x24] sm:$0xf] }
  0x1f   : > { %367 = vst.msk [vmem:[#allocation2 + $0x20] sm:$0xf] %vm358_vm0, %v330_v8  ;;  %v332_v10 = vld [vmem:[%s5458_s7 + $0x28] sm:$0xf]  ;;  %v333_v11 = vld [vmem:[%s5458_s7 + $0x2c] sm:$0xf] }
  0x20   : > { %368 = vst.msk [vmem:[#allocation2 + $0x24] sm:$0xf] %vm358_vm0, %v331_v9  ;;  %369 = vst.msk [vmem:[#allocation2 + $0x28] sm:$0xf] %vm358_vm0, %v332_v10  ;;  %v334_v12 = vld [vmem:[%s5458_s7 + $0x30] sm:$0xf] }
  0x21   : > { %370 = vst.msk [vmem:[#allocation2 + $0x2c] sm:$0xf] %vm358_vm0, %v333_v11  ;;  %v335_v13 = vld [vmem:[%s5458_s7 + $0x34] sm:$0xf]  ;;  %v336_v14 = vld [vmem:[%s5458_s7 + $0x38] sm:$0xf] }
  0x22   : > { %371 = vst.msk [vmem:[#allocation2 + $0x30] sm:$0xf] %vm358_vm0, %v334_v12  ;;  %372 = vst.msk [vmem:[#allocation2 + $0x34] sm:$0xf] %vm358_vm0, %v335_v13  ;;  %v337_v15 = vld [vmem:[%s5458_s7 + $0x3c] sm:$0xf] }
  0x23   : > { %373 = vst.msk [vmem:[#allocation2 + $0x38] sm:$0xf] %vm358_vm0, %v336_v14  ;;  %v338_v16 = vld [vmem:[%s5458_s7 + $0x40] sm:$0xf]  ;;  %v339_v17 = vld [vmem:[%s5458_s7 + $0x44] sm:$0xf] }
  0x24   : > { %374 = vst.msk [vmem:[#allocation2 + $0x3c] sm:$0xf] %vm358_vm0, %v337_v15  ;;  %375 = vst.msk [vmem:[#allocation2 + $0x40] sm:$0xf] %vm358_vm0, %v338_v16  ;;  %v340_v18 = vld [vmem:[%s5458_s7 + $0x48] sm:$0xf] }
  0x25   : > { %376 = vst.msk [vmem:[#allocation2 + $0x44] sm:$0xf] %vm358_vm0, %v339_v17  ;;  %v341_v19 = vld [vmem:[%s5458_s7 + $0x4c] sm:$0xf]  ;;  %v342_v20 = vld [vmem:[%s5458_s7 + $0x50] sm:$0xf] }
  0x26   : > { %377 = vst.msk [vmem:[#allocation2 + $0x48] sm:$0xf] %vm358_vm0, %v340_v18  ;;  %378 = vst.msk [vmem:[#allocation2 + $0x4c] sm:$0xf] %vm358_vm0, %v341_v19  ;;  %v343_v21 = vld [vmem:[%s5458_s7 + $0x54] sm:$0xf] }
  0x27   : > { %379 = vst.msk [vmem:[#allocation2 + $0x50] sm:$0xf] %vm358_vm0, %v342_v20  ;;  %v344_v22 = vld [vmem:[%s5458_s7 + $0x58] sm:$0xf]  ;;  %v345_v23 = vld [vmem:[%s5458_s7 + $0x5c] sm:$0xf] }
  0x28   : > { %v505_v24 = vld [vmem:[#allocation2 + $0x8] sm:$0xf]  ;;  %v506_v25 = vld [vmem:[#allocation2 + $0xc] sm:$0xf]  ;;  %v503_v26 = vld [vmem:[#allocation2] sm:$0xf] }
  0x29   : > { %380 = vst.msk [vmem:[#allocation2 + $0x54] sm:$0xf] %vm358_vm0, %v343_v21  ;;  %381 = vst.msk [vmem:[#allocation2 + $0x58] sm:$0xf] %vm358_vm0, %v344_v22  ;;  %v563_v27 = vshll.u32 %v505_v24, 16  ;;  %v567_v28 = vshrl.u32 %v505_v24, 16 }
  0x2a   : > { %382 = vst.msk [vmem:[#allocation2 + $0x5c] sm:$0xf] %vm358_vm0, %v345_v23  ;;  %v573_v29 = vshll.u32 %v506_v25, 16  ;;  %v577_v30 = vshrl.u32 %v506_v25, 16  ;;  %v504_v31 = vld [vmem:[#allocation2 + $0x4] sm:$0xf] }
  0x2b   : > { %v544_v32 = vshrl.u32 %v503_v26, 16  ;;  %v547_v33 = vshll.u32 %v503_v26, 16  ;;  %v553_v34 = vshll.u32 %v504_v31, 16  ;;  %v557_v35 = vshrl.u32 %v504_v31, 16  ;;  %v507_v36 = vld [vmem:[#allocation2 + $0x10] sm:$0xf] }
  0x2c   : > { %v565_v37 = vrot.slane %v563_v27, 5  ;;  %v569_v38 = vrot.slane %v567_v28, 4  ;;  %v575_v39 = vrot.slane %v573_v29, 5  ;;  %v579_v40 = vrot.slane %v577_v30, 4  ;;  %v508_v41 = vld [vmem:[#allocation2 + $0x14] sm:$0xf] }
  0x2d   : > { %v546_v42 = vrot.slane %v544_v32, 4  ;;  %v549_v43 = vrot.slane %v547_v33, 5  ;;  %v555_v44 = vrot.slane %v553_v34, 5  ;;  %v559_v45 = vrot.slane %v557_v35, 4  ;;  %v509_v46 = vld [vmem:[#allocation2 + $0x18] sm:$0xf] }
  0x2e   : > { %v570_v47 = vor.u32 %v569_v38, %v565_v37  ;;  %v580_v48 = vor.u32 %v579_v40, %v575_v39  ;;  %v583_v49 = vshll.u32 %v507_v36, 16  ;;  %v587_v50 = vshrl.u32 %v507_v36, 16  ;;  %v510_v60 = vld [vmem:[#allocation2 + $0x1c] sm:$0xf]  ;;  %v511_v1 = vld [vmem:[#allocation2 + $0x20] sm:$0xf] }
  0x2f   : > { %v550_v52 = vor.u32 %v549_v43, %v546_v42  ;;  %v560_v53 = vor.u32 %v559_v45, %v555_v44  ;;  %v593_v54 = vshll.u32 %v508_v41, 16  ;;  %v597_v55 = vshrl.u32 %v508_v41, 16  ;;  %v512_v6 = vld [vmem:[#allocation2 + $0x24] sm:$0xf]  ;;  %v513_v18 = vld [vmem:[#allocation2 + $0x28] sm:$0xf] }
  0x30   : > { %v571_v56 = vrot.slane %v570_v47, 4  ;;  %v581_v57 = vrot.slane %v580_v48, 4  ;;  %v585_v58 = vrot.slane %v583_v49, 5  ;;  %v603_v59 = vshll.u32 %v509_v46, 16  ;;  %v514_v24 = vld [vmem:[#allocation2 + $0x2c] sm:$0xf] }
  0x31   : > { %v551_v61 = vrot.slane %v550_v52, 4  ;;  %v561_v62 = vrot.slane %v560_v53, 4  ;;  %v595_v63 = vrot.slane %v593_v54, 5  ;;  %v599_v0 = vrot.slane %v597_v55, 4  ;;  %v515_v29 = vld [vmem:[#allocation2 + $0x30] sm:$0xf] }
  0x32   : > { %v576_v2 = vsel %vm5510_vm3, %v571_v56, %v575_v39  ;;  %v586_v3 = vsel %vm5510_vm3, %v581_v57, %v585_v58  ;;  %v605_v4 = vrot.slane %v603_v59, 5  ;;  %v607_v5 = vshrl.u32 %v509_v46, 16  ;;  %v516_v34 = vld [vmem:[#allocation2 + $0x34] sm:$0xf]  ;;  %v346_v39 = vld [vmem:[%s5458_s7 + $0x60] sm:$0xf] }
  0x33   : > { %911 = vrot.lane.b32.xlu1 %v576_v2, %s5358_s8  ;;  %v556_v7 = vsel %vm5510_vm3, %v551_v61, %v555_v44  ;;  %v566_v8 = vsel %vm5510_vm3, %v561_v62, %v565_v37  ;;  %v600_v9 = vor.u32 %v599_v0, %v595_v63  ;;  %v589_v10 = vrot.slane %v587_v50, 4  ;;  %v5539_v44 = vld [vmem:[#allocation2 + $0x38] sm:$0xf]  ;;  %383 = vst.msk [vmem:[#allocation2 + $0x60] sm:$0xf] %vm358_vm0, %v346_v39 }
  0x34   : > { %907 = vrot.lane.b32.xlu0 %v556_v7, %s5358_s8  ;;  %v613_v11 = vshll.u32 %v510_v60, 16  ;;  %v617_v12 = vshrl.u32 %v510_v60, 16  ;;  %v623_v13 = vshll.u32 %v511_v1, 16  ;;  %v627_v14 = vshrl.u32 %v511_v1, 16  ;;  %v347_v49 = vld [vmem:[%s5458_s7 + $0x64] sm:$0xf] }
  0x35   : > { %v601_v15 = vrot.slane %v600_v9, 4  ;;  %v590_v16 = vor.u32 %v589_v10, %v585_v58  ;;  %v609_v17 = vrot.slane %v607_v5, 4  ;;  %v633_v19 = vshll.u32 %v512_v6, 16  ;;  %v348_v50 = vld [vmem:[%s5458_s7 + $0x68] sm:$0xf] }
  0x36   : > { %v5524_v20 = vrot.slane %v613_v11, 5  ;;  %v619_v21 = vrot.slane %v617_v12, 4  ;;  %v625_v22 = vrot.slane %v623_v13, 5  ;;  %v637_v23 = vshrl.u32 %v512_v6, 16  ;;  %v518_v56 = vld [vmem:[#allocation2 + $0x3c] sm:$0xf] }
  0x37   : > { %913 = vrot.lane.b32.xlu1 %v586_v3, %s5358_s8  ;;  %v606_v25 = vsel %vm5510_vm3, %v601_v15, %v605_v4  ;;  %v591_v26 = vrot.slane %v590_v16, 4  ;;  %v610_v27 = vor.u32 %v609_v17, %v605_v4  ;;  %v5529_v28 = vrot.slane %v633_v19, 5  ;;  %v5553_v57 = vld [vmem:[#allocation2 + $0x40] sm:$0xf]  ;;  %384 = vst.msk [vmem:[#allocation2 + $0x64] sm:$0xf] %vm358_vm0, %v347_v49 }
  0x38   : > { %909 = vrot.lane.b32.xlu0 %v566_v8, %s5358_s8  ;;  %v620_v30 = vor.u32 %v619_v21, %v5524_v20  ;;  %v639_v31 = vrot.slane %v637_v23, 4  ;;  %v643_v32 = vshll.u32 %v513_v18, 16  ;;  %v647_v33 = vshrl.u32 %v513_v18, 16  ;;  %385 = vst.msk [vmem:[#allocation2 + $0x68] sm:$0xf] %vm358_vm0, %v348_v50 }
  0x39   : > { %v596_v35 = vsel %vm5510_vm3, %v591_v26, %v595_v63  ;;  %v611_v36 = vrot.slane %v610_v27, 4  ;;  %v629_v37 = vrot.slane %v627_v14, 4  ;;  %v653_v38 = vshll.u32 %v514_v24, 16  ;;  %v349_v58 = vld [vmem:[%s5458_s7 + $0x6c] sm:$0xf] }
  0x3a   : > { %v621_v40 = vrot.slane %v620_v30, 4  ;;  %v640_v41 = vor.u32 %v639_v31, %v5529_v28  ;;  %v5537_v42 = vrot.slane %v643_v32, 5  ;;  %v657_v43 = vshrl.u32 %v514_v24, 16  ;;  %v350_v63 = vld [vmem:[%s5458_s7 + $0x70] sm:$0xf] }
  0x3b   : > { %917 = vrot.lane.b32.xlu1 %v606_v25, %s5358_s8  ;;  %v616_v45 = vsel %vm5510_vm3, %v611_v36, %v5524_v20  ;;  %v630_v46 = vor.u32 %v629_v37, %v625_v22  ;;  %v5546_v47 = vrot.slane %v653_v38, 5  ;;  %v663_v48 = vshll.u32 %v515_v29, 16  ;;  %386 = vst.msk [vmem:[#allocation2 + $0x6c] sm:$0xf] %vm358_vm0, %v349_v58  ;;  %387 = vst.msk [vmem:[#allocation2 + $0x70] sm:$0xf] %vm358_vm0, %v350_v63 }
  0x3c   : > { %915 = vrot.lane.b32.xlu0 %v596_v35, %s5358_s8  ;;  %v626_v52 = vsel %vm5510_vm3, %v621_v40, %v625_v22  ;;  %v641_v53 = vrot.slane %v640_v41, 4  ;;  %v659_v54 = vrot.slane %v657_v43, 4  ;;  %v667_v55 = vshrl.u32 %v515_v29, 16  ;;  %v351_v3 = vld [vmem:[%s5458_s7 + $0x74] sm:$0xf] }
  0x3d   : > { %v631_v59 = vrot.slane %v630_v46, 4  ;;  %v5558_v60 = vrot.slane %v663_v48, 5  ;;  %v649_v61 = vrot.slane %v647_v33, 4  ;;  %v673_v62 = vshll.u32 %v516_v34, 16  ;;  %v352_v4 = vld [vmem:[%s5458_s7 + $0x78] sm:$0xf] }
  0x3e   : > { %v660_v0 = vor.u32 %v659_v54, %v5546_v47  ;;  %v677_v1 = vshrl.u32 %v516_v34, 16  ;;  %v683_v2 = vshll.u32 %v5539_v44, 16  ;;  %v646_v5 = vsel %vm5510_vm3, %v641_v53, %v5537_v42  ;;  %v520_v9 = vld [vmem:[#allocation2 + $0x44] sm:$0xf]  ;;  %388 = vst.msk [vmem:[#allocation2 + $0x74] sm:$0xf] %vm358_vm0, %v351_v3 }
  0x3f   : > { %921 = vrot.lane.b32.xlu1 %v626_v52, %s5358_s8  ;;  %v636_v6 = vsel %vm5510_vm3, %v631_v59, %v5529_v28  ;;  %v650_v7 = vor.u32 %v649_v61, %v5537_v42  ;;  %v5575_v8 = vrot.slane %v673_v62, 5  ;;  %389 = vst.msk [vmem:[#allocation2 + $0x78] sm:$0xf] %vm358_vm0, %v352_v4  ;;  %v353_v10 = vld [vmem:[%s5458_s7 + $0x7c] sm:$0xf]  ;;  %v687_v14 = vshrl.u32 %v5539_v44, 16 }
  0x40   : > { %v354_v11 = vld [vmem:[%s5458_s7 + $0x80] sm:$0xf]  ;;  %919 = vrot.lane.b32.xlu0 %v616_v45, %s5358_s8  ;;  %v661_v12 = vrot.slane %v660_v0, 4  ;;  %v679_v13 = vrot.slane %v677_v1, 4  ;;  %v669_v15 = vrot.slane %v667_v55, 4  ;;  %v693_v18 = vshll.u32 %v518_v56, 16 }
  0x41   : > { %390 = vst.msk [vmem:[#allocation2 + $0x7c] sm:$0xf] %vm358_vm0, %v353_v10  ;;  %391 = vst.msk [vmem:[#allocation2 + $0x80] sm:$0xf] %vm358_vm0, %v354_v11  ;;  %v355_v16 = vld [vmem:[%s5458_s7 + $0x84] sm:$0xf] }
  0x42   : > { %v651_v17 = vrot.slane %v650_v7, 4  ;;  %v697_v19 = vshrl.u32 %v518_v56, 16  ;;  %v703_v20 = vshll.u32 %v5553_v57, 16  ;;  %v521_v21 = vld [vmem:[#allocation2 + $0x48] sm:$0xf]  ;;  %v666_v22 = vsel %vm5510_vm3, %v661_v12, %v5558_v60 }
  0x43   : > { %392 = vst.msk [vmem:[#allocation2 + $0x84] sm:$0xf] %vm358_vm0, %v355_v16  ;;  %v680_v23 = vor.u32 %v679_v13, %v5575_v8  ;;  %v685_v24 = vrot.slane %v683_v2, 5  ;;  %v670_v25 = vor.u32 %v669_v15, %v5558_v60  ;;  %v356_v26 = vld [vmem:[%s5458_s7 + $0x88] sm:$0xf]  ;;  %925 = vrot.lane.b32.xlu1 %v646_v5, %s5358_s8  ;;  %v5599_v29 = vrot.slane %v693_v18, 5 }
  0x44   : > { %v357_v27 = vld [vmem:[%s5458_s7 + $0x8c] sm:$0xf]  ;;  %v656_v28 = vsel %vm5510_vm3, %v651_v17, %v5546_v47  ;;  %v699_v30 = vrot.slane %v697_v19, 4  ;;  %v707_v31 = vshrl.u32 %v5553_v57, 16  ;;  %393 = vst.msk [vmem:[#allocation2 + $0x88] sm:$0xf] %vm358_vm0, %v356_v26  ;;  %923 = vrot.lane.b32.xlu0 %v636_v6, %s5358_s8 }
  0x45   : > { %394 = vst.msk [vmem:[#allocation2 + $0x8c] sm:$0xf] %vm358_vm0, %v357_v27  ;;  %v681_v32 = vrot.slane %v680_v23, 4  ;;  %v671_v33 = vrot.slane %v670_v25, 4  ;;  %v689_v34 = vrot.slane %v687_v14, 4  ;;  %v713_v35 = vshll.u32 %v520_v9, 16 }
  0x46   : > { %v700_v36 = vor.u32 %v699_v30, %v5599_v29  ;;  %v705_v37 = vrot.slane %v703_v20, 5  ;;  %v717_v38 = vshrl.u32 %v520_v9, 16  ;;  %v723_v39 = vshll.u32 %v521_v21, 16  ;;  %v522_v40 = vld [vmem:[#allocation2 + $0x4c] sm:$0xf] }
  0x47   : > { %v690_v41 = vor.u32 %v689_v34, %v685_v24  ;;  %v5608_v42 = vrot.slane %v713_v35, 5  ;;  %v727_v43 = vshrl.u32 %v521_v21, 16  ;;  %v523_v44 = vld [vmem:[#allocation2 + $0x50] sm:$0xf]  ;;  %929 = vrot.lane.b32.xlu1 %v666_v22, %s5358_s8  ;;  %v686_v45 = vsel %vm5510_vm3, %v681_v32, %v685_v24  ;;  %v524_v54 = vld [vmem:[#allocation2 + $0x54] sm:$0xf] }
  0x48   : > { %v701_v46 = vrot.slane %v700_v36, 4  ;;  %v719_v47 = vrot.slane %v717_v38, 4  ;;  %v709_v48 = vrot.slane %v707_v31, 4  ;;  %927 = vrot.lane.b32.xlu0 %v656_v28, %s5358_s8  ;;  %v676_v49 = vsel %vm5510_vm3, %v671_v33, %v5575_v8  ;;  %v525_v59 = vld [vmem:[#allocation2 + $0x58] sm:$0xf] }
  0x49   : > { %v725_v50 = vrot.slane %v723_v39, 5  ;;  %v733_v52 = vshll.u32 %v522_v40, 16  ;;  %v737_v53 = vshrl.u32 %v522_v40, 16  ;;  %v691_v55 = vrot.slane %v690_v41, 4  ;;  %v526_v63 = vld [vmem:[#allocation2 + $0x5c] sm:$0xf] }
  0x4a   : > { %v720_v56 = vor.u32 %v719_v47, %v5608_v42  ;;  %v710_v57 = vor.u32 %v709_v48, %v705_v37  ;;  %v743_v58 = vshll.u32 %v523_v44, 16  ;;  %v747_v62 = vshrl.u32 %v523_v44, 16  ;;  %v527_v4 = vld [vmem:[#allocation2 + $0x60] sm:$0xf]  ;;  %v528_v14 = vld [vmem:[#allocation2 + $0x64] sm:$0xf] }
  0x4b   : > { %v5623_v60 = vrot.slane %v733_v52, 5  ;;  %v739_v61 = vrot.slane %v737_v53, 4  ;;  %933 = vrot.lane.b32.xlu1 %v686_v45, %s5358_s8  ;;  %v706_v0 = vsel %vm5510_vm3, %v701_v46, %v705_v37  ;;  %v729_v2 = vrot.slane %v727_v43, 4  ;;  %v395_v5 = vld [vmem:[%s5620_s12] sm:$0xf] }
  0x4c   : > { %v721_v1 = vrot.slane %v720_v56, 4  ;;  %v753_v3 = vshll.u32 %v524_v54, 16  ;;  %931 = vrot.lane.b32.xlu0 %v676_v49, %s5358_s8  ;;  %v711_v6 = vrot.slane %v710_v57, 4  ;;  %v757_v8 = vshrl.u32 %v524_v54, 16  ;;  %413 = vst.msk [vmem:[#allocation2 + $0x90] sm:$0xf] %vm358_vm0, %v395_v5 }
  0x4d   : > { %v740_v7 = vor.u32 %v739_v61, %v5623_v60  ;;  %v763_v9 = vshll.u32 %v525_v59, 16  ;;  %v696_v10 = vsel %vm5510_vm3, %v691_v55, %v5599_v29  ;;  %v745_v11 = vrot.slane %v743_v58, 5  ;;  %v529_v19 = vld [vmem:[#allocation2 + $0x68] sm:$0xf]  ;;  %v530_v32 = vld [vmem:[#allocation2 + $0x6c] sm:$0xf] }
  0x4e   : > { %v730_v12 = vor.u32 %v729_v2, %v725_v50  ;;  %v5635_v13 = vrot.slane %v753_v3, 5  ;;  %v726_v15 = vsel %vm5510_vm3, %v721_v1, %v725_v50  ;;  %v759_v16 = vrot.slane %v757_v8, 4  ;;  %v531_v40 = vld [vmem:[#allocation2 + $0x70] sm:$0xf]  ;;  %v532_v54 = vld [vmem:[#allocation2 + $0x74] sm:$0xf] }
  0x4f   : > { %v767_v17 = vshrl.u32 %v525_v59, 16  ;;  %v749_v18 = vrot.slane %v747_v62, 4  ;;  %937 = vrot.lane.b32.xlu1 %v706_v0, %s5358_s8  ;;  %v741_v20 = vrot.slane %v740_v7, 4  ;;  %v765_v21 = vrot.slane %v763_v9, 5 }
  0x50   : > { %v773_v22 = vshll.u32 %v526_v63, 16  ;;  %v777_v23 = vshrl.u32 %v526_v63, 16  ;;  %935 = vrot.lane.b32.xlu0 %v696_v10, %s5358_s8  ;;  %v716_v24 = vsel %vm5510_vm3, %v711_v6, %v5608_v42  ;;  %v731_v25 = vrot.slane %v730_v12, 4  ;;  %v534_v6 = vld [vmem:[#allocation2 + $0x7c] sm:$0xf] }
  0x51   : > { %v760_v26 = vor.u32 %v759_v16, %v5635_v13  ;;  %v783_v27 = vshll.u32 %v527_v4, 16  ;;  %v750_v28 = vor.u32 %v749_v18, %v745_v11  ;;  %v787_v31 = vshrl.u32 %v527_v4, 16  ;;  %v533_v4 = vld [vmem:[#allocation2 + $0x78] sm:$0xf] }
  0x52   : > { %v5645_v29 = vrot.slane %v773_v22, 5  ;;  %v779_v30 = vrot.slane %v777_v23, 4  ;;  %v769_v34 = vrot.slane %v767_v17, 4  ;;  %v793_v35 = vshll.u32 %v528_v14, 16 }
  0x53   : > { %v761_v33 = vrot.slane %v760_v26, 4  ;;  %941 = vrot.lane.b32.xlu1 %v726_v15, %s5358_s8  ;;  %v746_v36 = vsel %vm5510_vm3, %v741_v20, %v745_v11  ;;  %v797_v38 = vshrl.u32 %v528_v14, 16  ;;  %v803_v39 = vshll.u32 %v529_v19, 16  ;;  %v535_v11 = vld [vmem:[#allocation2 + $0x80] sm:$0xf] }
  0x54   : > { %v780_v37 = vor.u32 %v779_v30, %v5645_v29  ;;  %939 = vrot.lane.b32.xlu0 %v716_v24, %s5358_s8  ;;  %v736_v41 = vsel %vm5510_vm3, %v731_v25, %v5623_v60  ;;  %v785_v42 = vrot.slane %v783_v27, 5  ;;  %v770_v43 = vor.u32 %v769_v34, %v765_v21  ;;  %v536_v20 = vld [vmem:[#allocation2 + $0x84] sm:$0xf] }
  0x55   : > { %v5655_v44 = vrot.slane %v793_v35, 5  ;;  %v751_v45 = vrot.slane %v750_v28, 4  ;;  %v799_v46 = vrot.slane %v797_v38, 4  ;;  %v807_v47 = vshrl.u32 %v529_v19, 16  ;;  %v538_v35 = vld [vmem:[#allocation2 + $0x8c] sm:$0xf] }
  0x56   : > { %v789_v48 = vrot.slane %v787_v31, 4  ;;  %v766_v49 = vsel %vm5510_vm3, %v761_v33, %v765_v21  ;;  %v781_v50 = vrot.slane %v780_v37, 4  ;;  %v813_v52 = vshll.u32 %v530_v32, 16  ;;  %v537_v38 = vld [vmem:[#allocation2 + $0x88] sm:$0xf] }
  0x57   : > { %v817_v53 = vshrl.u32 %v530_v32, 16  ;;  %945 = vrot.lane.b32.xlu1 %v746_v36, %s5358_s8  ;;  %v771_v55 = vrot.slane %v770_v43, 4  ;;  %v800_v56 = vor.u32 %v799_v46, %v5655_v44  ;;  %v805_v57 = vrot.slane %v803_v39, 5 }
  0x58   : > { %v823_v58 = vshll.u32 %v531_v40, 16  ;;  %943 = vrot.lane.b32.xlu0 %v736_v41, %s5358_s8  ;;  %v790_v59 = vor.u32 %v789_v48, %v785_v42  ;;  %v5662_v60 = vrot.slane %v813_v52, 5  ;;  %v827_v62 = vshrl.u32 %v531_v40, 16 }
  0x59   : > { %v819_v61 = vrot.slane %v817_v53, 4  ;;  %v756_v63 = vsel %vm5510_vm3, %v751_v45, %v5635_v13  ;;  %v809_v0 = vrot.slane %v807_v47, 4  ;;  %v833_v1 = vshll.u32 %v532_v54, 16 }
  0x5a   : > { %v786_v2 = vsel %vm5510_vm3, %v781_v50, %v785_v42  ;;  %v837_v5 = vshrl.u32 %v532_v54, 16  ;;  %v776_v7 = vsel %vm5510_vm3, %v771_v55, %v5645_v29  ;;  %v825_v8 = vrot.slane %v823_v58, 5 }
  0x5b   : > { %v820_v3 = vor.u32 %v819_v61, %v5662_v60  ;;  %949 = vrot.lane.b32.xlu1 %v766_v49, %s5358_s8  ;;  %v810_v9 = vor.u32 %v809_v0, %v805_v57  ;;  %v5674_v10 = vrot.slane %v833_v1, 5  ;;  %v801_v12 = vrot.slane %v800_v56, 4  ;;  %v539_v56 = vld [vmem:[#allocation2 + $0x90] sm:$0x1]  ;;  %v431_v0 = vld [vmem:[#allocation2] sm:$0xf] }
  0x5c   : > { %947 = vrot.lane.b32.xlu0 %v756_v63, %s5358_s8  ;;  %v791_v13 = vrot.slane %v790_v59, 4  ;;  %v839_v14 = vrot.slane %v837_v5, 4  ;;  %v829_v15 = vrot.slane %v827_v62, 4  ;;  %v843_v16 = vshll.u32 %v533_v4, 16  ;;  %v433_v63 = vld [vmem:[#allocation2 + $0x8] sm:$0xf] }
  0x5d   : > { %v847_v17 = vshrl.u32 %v533_v4, 16  ;;  %v853_v18 = vshll.u32 %v534_v6, 16  ;;  %v857_v19 = vshrl.u32 %v534_v6, 16  ;;  %v821_v21 = vrot.slane %v820_v3, 4  ;;  %469 = vst.msk [vmem:[#allocation3 + $0x8] sm:$0xf] %vm358_vm0, %v433_v63 }
  0x5e   : > { %v811_v22 = vrot.slane %v810_v9, 4  ;;  %v863_v23 = vshll.u32 %v535_v11, 16  ;;  %v840_v24 = vor.u32 %v839_v14, %v5674_v10  ;;  %v830_v25 = vor.u32 %v829_v15, %v825_v8  ;;  %467 = vst.msk [vmem:[#allocation3] sm:$0xf] %vm358_vm0, %v431_v0  ;;  %v434_v5 = vld [vmem:[#allocation2 + $0xc] sm:$0xf] }
  0x5f   : > { %953 = vrot.lane.b32.xlu1 %v786_v2, %s5358_s8  ;;  %v855_v26 = vrot.slane %v853_v18, 5  ;;  %v859_v27 = vrot.slane %v857_v19, 4  ;;  %v806_v28 = vsel %vm5510_vm3, %v801_v12, %v805_v57  ;;  %v796_v29 = vsel %vm5510_vm3, %v791_v13, %v5655_v44  ;;  %v432_v6 = vld [vmem:[#allocation2 + $0x4] sm:$0xf]  ;;  %470 = vst.msk [vmem:[#allocation3 + $0xc] sm:$0xf] %vm358_vm0, %v434_v5 }
  0x60   : > { %951 = vrot.lane.b32.xlu0 %v776_v7, %s5358_s8  ;;  %v873_v30 = vshll.u32 %v536_v20, 16  ;;  %v845_v31 = vrot.slane %v843_v16, 5  ;;  %v867_v32 = vshrl.u32 %v535_v11, 16  ;;  %v849_v33 = vrot.slane %v847_v17, 4  ;;  %468 = vst.msk [vmem:[#allocation3 + $0x4] sm:$0xf] %vm358_vm0, %v432_v6 }
  0x61   : > { %v877_v34 = vshrl.u32 %v536_v20, 16  ;;  %v826_v36 = vsel %vm5510_vm3, %v821_v21, %v825_v8  ;;  %v816_v37 = vsel %vm5510_vm3, %v811_v22, %v5662_v60  ;;  %v841_v39 = vrot.slane %v840_v24, 4  ;;  %v1055_v11 = vld [vmem:[#allocation2 + $0xc] sm:$0xf]  ;;  %v436_v12 = vld [vmem:[#allocation2 + $0x14] sm:$0xf] }
  0x62   : > { %v831_v40 = vrot.slane %v830_v25, 4  ;;  %v860_v41 = vor.u32 %v859_v27, %v855_v26  ;;  %v865_v42 = vrot.slane %v863_v23, 5  ;;  %v875_v43 = vrot.slane %v873_v30, 5  ;;  %472 = vst.msk [vmem:[#allocation3 + $0x14] sm:$0xf] %vm358_vm0, %v436_v12 }
  0x63   : > { %957 = vrot.lane.b32.xlu1 %v806_v28, %s5358_s8  ;;  %v879_v44 = vrot.slane %v877_v34, 4  ;;  %v893_v45 = vshll.u32 %v538_v35, 16  ;;  %v897_v46 = vshrl.u32 %v538_v35, 16  ;;  %v850_v47 = vor.u32 %v849_v33, %v845_v31  ;;  %v435_v17 = vld [vmem:[#allocation2 + $0x10] sm:$0xf] }
  0x64   : > { %955 = vrot.lane.b32.xlu0 %v796_v29, %s5358_s8  ;;  %v883_v48 = vshll.u32 %v537_v38, 16  ;;  %v887_v49 = vshrl.u32 %v537_v38, 16  ;;  %v869_v50 = vrot.slane %v867_v32, 4  ;;  %v846_v52 = vsel %vm5510_vm3, %v841_v39, %v845_v31  ;;  %v1054_v20 = vld [vmem:[#allocation2 + $0x8] sm:$0xf] }
  0x65   : > { %v836_v53 = vsel %vm5510_vm3, %v831_v40, %v5674_v10  ;;  %v861_v54 = vrot.slane %v860_v41, 4  ;;  %v880_v55 = vor.u32 %v879_v44, %v875_v43  ;;  %v895_v57 = vrot.slane %v893_v45, 5  ;;  %v1053_v10 = vld [vmem:[#allocation2 + $0x4] sm:$0xf]  ;;  %471 = vst.msk [vmem:[#allocation3 + $0x10] sm:$0xf] %vm358_vm0, %v435_v17 }
  0x66   : > { %v899_v58 = vrot.slane %v897_v46, 4  ;;  %v851_v59 = vrot.slane %v850_v47, 4  ;;  %v885_v60 = vrot.slane %v883_v48, 5  ;;  %v870_v61 = vor.u32 %v869_v50, %v865_v42  ;;  %v1052_v21 = vld [vmem:[#allocation2] sm:$0xe] }
  0x67   : > { %961 = vrot.lane.b32.xlu1 %v826_v36, %s5358_s8  ;;  %v889_v62 = vrot.slane %v887_v49, 4  ;;  %v866_v1 = vsel %vm5510_vm3, %v861_v54, %v865_v42  ;;  %v881_v2 = vrot.slane %v880_v55, 4  ;;  %v903_v4 = vshll.u32 %v539_v56, 16  ;;  %v438_v22 = vld [vmem:[#allocation2 + $0x1c] sm:$0xf] }
  0x68   : > { %959 = vrot.lane.b32.xlu0 %v816_v37, %s5358_s8  ;;  %v900_v3 = vor.u32 %v899_v58, %v895_v57  ;;  %v856_v7 = vsel %vm5510_vm3, %v851_v59, %v855_v26  ;;  %v871_v8 = vrot.slane %v870_v61, 4  ;;  %v1131_v16 = vrot.slane %v1053_v10, 5  ;;  %v437_v23 = vld [vmem:[#allocation2 + $0x18] sm:$0xf]  ;;  %474 = vst.msk [vmem:[#allocation3 + $0x1c] sm:$0xf] %vm358_vm0, %v438_v22 }
  0x69   : > { %v890_v9 = vor.u32 %v889_v62, %v885_v60  ;;  %v886_v13 = vsel %vm5510_vm3, %v881_v2, %v885_v60  ;;  %v905_v15 = vrot.slane %v903_v4, 5  ;;  %v1137_v24 = vrot.slane %v1055_v11, 5  ;;  %473 = vst.msk [vmem:[#allocation3 + $0x18] sm:$0xf] %vm358_vm0, %v437_v23  ;;  %v1056_v28 = vld [vmem:[#allocation2 + $0x10] sm:$0xf] }
  0x6a   : > { %v901_v14 = vrot.slane %v900_v3, 4  ;;  %v876_v18 = vsel %vm5510_vm3, %v871_v8, %v875_v43  ;;  %v1133_v26 = vrot.slane %v1131_v16, 4  ;;  %v1134_v27 = vrot.slane %v1054_v20, 5  ;;  %v1057_v32 = vld [vmem:[#allocation2 + $0x14] sm:$0xf] }
  0x6b   : > { %965 = vrot.lane.b32.xlu1 %v846_v52, %s5358_s8  ;;  %v891_v19 = vrot.slane %v890_v9, 4  ;;  %v4746_v31 = vrot.slane %v1052_v21, 9  ;;  %v440_v33 = vld [vmem:[#allocation2 + $0x24] sm:$0xf]  ;;  %v439_v34 = vld [vmem:[#allocation2 + $0x20] sm:$0xf] }
  0x6c   : > { %963 = vrot.lane.b32.xlu0 %v836_v53, %s5358_s8  ;;  %v906_v25 = vsel %vm5510_vm3, %v901_v14, %v905_v15  ;;  %476 = vst.msk [vmem:[#allocation3 + $0x24] sm:$0xf] %vm358_vm0, %v440_v33  ;;  %v1139_v35 = vrot.slane %v1137_v24, 4  ;;  %475 = vst.msk [vmem:[#allocation3 + $0x20] sm:$0xf] %vm358_vm0, %v439_v34  ;;  %v1135_v51 = vsel %vm5727_vm6, %v1133_v26, %v1134_v27  ;;  %v1140_v36 = vrot.slane %v1056_v28, 5 }
  0x6d   : > { %v896_v29 = vsel %vm5510_vm3, %v891_v19, %v895_v57  ;;  %v1143_v37 = vrot.slane %v1057_v32, 5  ;;  %v442_v38 = vld [vmem:[#allocation2 + $0x2c] sm:$0xf]  ;;  %v441_v39 = vld [vmem:[#allocation2 + $0x28] sm:$0xf]  ;;  %v1132_v40 = vsel %vm5727_vm6, %v4746_v31, %v1131_v16  ;;  %v1136_v41 = vrot.slane %v1134_v27, 4 }
  0x6e   : > { %v1058_v42 = vld [vmem:[#allocation2 + $0x18] sm:$0xf]  ;;  %v1059_v43 = vld [vmem:[#allocation2 + $0x1c] sm:$0xf]  ;;  %478 = vst.msk [vmem:[#allocation3 + $0x2c] sm:$0xf] %vm358_vm0, %v442_v38  ;;  %v1141_v45 = vsel %vm5727_vm6, %v1139_v35, %v1140_v36 }
  0x6f   : > { %969 = vrot.lane.b32.xlu1 %v866_v1, %s5358_s8  ;;  %477 = vst.msk [vmem:[#allocation3 + $0x28] sm:$0xf] %vm358_vm0, %v441_v39  ;;  %v444_v44 = vld [vmem:[#allocation2 + $0x34] sm:$0xf]  ;;  %v1145_v46 = vrot.slane %v1143_v37, 4  ;;  %v1146_v47 = vrot.slane %v1058_v42, 5  ;;  %v1138_v50 = vsel %vm5727_vm6, %v1136_v41, %v1137_v24 }
  0x70   : > { %967 = vrot.lane.b32.xlu0 %v856_v7, %s5358_s8  ;;  %v1149_v48 = vrot.slane %v1059_v43, 5  ;;  %480 = vst.msk [vmem:[#allocation3 + $0x34] sm:$0xf] %vm358_vm0, %v444_v44  ;;  %v443_v49 = vld [vmem:[#allocation2 + $0x30] sm:$0xf]  ;;  %v1142_v52 = vrot.slane %v1140_v36, 4 }
  0x71   : > { %v1060_v53 = vld [vmem:[#allocation2 + $0x20] sm:$0xf]  ;;  %v1061_v54 = vld [vmem:[#allocation2 + $0x24] sm:$0xf]  ;;  %479 = vst.msk [vmem:[#allocation3 + $0x30] sm:$0xf] %vm358_vm0, %v443_v49  ;;  %v1147_v57 = vsel %vm5727_vm6, %v1145_v46, %v1146_v47 }
  0x72   : > { %v446_v55 = vld [vmem:[#allocation2 + $0x3c] sm:$0xf]  ;;  %v445_v56 = vld [vmem:[#allocation2 + $0x38] sm:$0xf]  ;;  %v1151_v58 = vrot.slane %v1149_v48, 4  ;;  %v1152_v59 = vrot.slane %v1060_v53, 5  ;;  %v1144_v61 = vsel %vm5727_vm6, %v1142_v52, %v1143_v37 }
  0x73   : > { %973 = vrot.lane.b32.xlu1 %v886_v13, %s5358_s8  ;;  %482 = vst.msk [vmem:[#allocation3 + $0x3c] sm:$0xf] %vm358_vm0, %v446_v55  ;;  %v1155_v60 = vrot.slane %v1061_v54, 5  ;;  %481 = vst.msk [vmem:[#allocation3 + $0x38] sm:$0xf] %vm358_vm0, %v445_v56  ;;  %v1148_v62 = vrot.slane %v1146_v47, 4 }
  0x74   : > { %971 = vrot.lane.b32.xlu0 %v876_v18, %s5358_s8  ;;  %v1062_v63 = vld [vmem:[#allocation2 + $0x28] sm:$0xf]  ;;  %v1063_v0 = vld [vmem:[#allocation2 + $0x2c] sm:$0xf]  ;;  %v448_v1 = vld [vmem:[#allocation2 + $0x44] sm:$0xf]  ;;  %v1153_v4 = vsel %vm5727_vm6, %v1151_v58, %v1152_v59 }
  0x75   : > { %v1064_v2 = vld [vmem:[#allocation2 + $0x30] sm:$0xf]  ;;  %484 = vst.msk [vmem:[#allocation3 + $0x44] sm:$0xf] %vm358_vm0, %v448_v1  ;;  %v447_v3 = vld [vmem:[#allocation2 + $0x40] sm:$0xf]  ;;  %v1150_v9 = vsel %vm5727_vm6, %v1148_v62, %v1149_v48 }
  0x76   : > { %v1157_v5 = vrot.slane %v1155_v60, 4  ;;  %v1158_v6 = vrot.slane %v1062_v63, 5  ;;  %v1161_v7 = vrot.slane %v1063_v0, 5  ;;  %v1065_v8 = vld [vmem:[#allocation2 + $0x34] sm:$0xf]  ;;  %v1154_v10 = vrot.slane %v1152_v59, 4 }
  0x77   : > { %977 = vrot.lane.b32.xlu1 %v906_v25, %s5358_s8  ;;  %483 = vst.msk [vmem:[#allocation3 + $0x40] sm:$0xf] %vm358_vm0, %v447_v3  ;;  %v450_v11 = vld [vmem:[#allocation2 + $0x4c] sm:$0xf]  ;;  %v449_v12 = vld [vmem:[#allocation2 + $0x48] sm:$0xf] }
  0x78   : > { %975 = vrot.lane.b32.xlu0 %v896_v29, %s5358_s8  ;;  %486 = vst.msk [vmem:[#allocation3 + $0x4c] sm:$0xf] %vm358_vm0, %v450_v11  ;;  %485 = vst.msk [vmem:[#allocation3 + $0x48] sm:$0xf] %vm358_vm0, %v449_v12  ;;  %v452_v13 = vld [vmem:[#allocation2 + $0x54] sm:$0xf]  ;;  %v1159_v14 = vsel %vm5727_vm6, %v1157_v5, %v1158_v6  ;;  %v1156_v19 = vsel %vm5727_vm6, %v1154_v10, %v1155_v60 }
  0x79   : > { %v1163_v15 = vrot.slane %v1161_v7, 4  ;;  %v1164_v16 = vrot.slane %v1064_v2, 5  ;;  %v1167_v17 = vrot.slane %v1065_v8, 5  ;;  %488 = vst.msk [vmem:[#allocation3 + $0x54] sm:$0xf] %vm358_vm0, %v452_v13  ;;  %v1160_v20 = vrot.slane %v1158_v6, 4 }
  0x7a   : > { %v451_v18 = vld [vmem:[#allocation2 + $0x50] sm:$0xf]  ;;  %v1066_v21 = vld [vmem:[#allocation2 + $0x38] sm:$0xf]  ;;  %v1067_v22 = vld [vmem:[#allocation2 + $0x3c] sm:$0xf] }
  0x7b   : > { %1240 = vrot.lane.b32.xlu1 %v1135_v51, %s5359_s13  ;;  %487 = vst.msk [vmem:[#allocation3 + $0x50] sm:$0xf] %vm358_vm0, %v451_v18  ;;  %v454_v23 = vld [vmem:[#allocation2 + $0x5c] sm:$0xf]  ;;  %v453_v24 = vld [vmem:[#allocation2 + $0x58] sm:$0xf]  ;;  %v1165_v26 = vsel %vm5727_vm6, %v1163_v15, %v1164_v16  ;;  %v1162_v32 = vsel %vm5727_vm6, %v1160_v20, %v1161_v7 }
  0x7c   : > { %1238 = vrot.lane.b32.xlu0 %v1132_v40, %s5359_s13  ;;  %v1068_v25 = vld [vmem:[#allocation2 + $0x40] sm:$0xf]  ;;  %490 = vst.msk [vmem:[#allocation3 + $0x5c] sm:$0xf] %vm358_vm0, %v454_v23  ;;  %489 = vst.msk [vmem:[#allocation3 + $0x58] sm:$0xf] %vm358_vm0, %v453_v24 }
  0x7d   : > { %v1169_v27 = vrot.slane %v1167_v17, 4  ;;  %v1170_v28 = vrot.slane %v1066_v21, 5  ;;  %v1173_v29 = vrot.slane %v1067_v22, 5  ;;  %v456_v31 = vld [vmem:[#allocation2 + $0x64] sm:$0xf]  ;;  %v1166_v33 = vrot.slane %v1164_v16, 4 }
  0x7e   : > { %v1069_v34 = vld [vmem:[#allocation2 + $0x44] sm:$0xf]  ;;  %492 = vst.msk [vmem:[#allocation3 + $0x64] sm:$0xf] %vm358_vm0, %v456_v31  ;;  %v455_v35 = vld [vmem:[#allocation2 + $0x60] sm:$0xf] }
  0x7f   : > { %1244 = vrot.lane.b32.xlu1 %v1141_v45, %s5359_s13  ;;  %491 = vst.msk [vmem:[#allocation3 + $0x60] sm:$0xf] %vm358_vm0, %v455_v35  ;;  %v458_v51 = vld [vmem:[#allocation2 + $0x6c] sm:$0xf]  ;;  %v1070_v36 = vld [vmem:[#allocation2 + $0x48] sm:$0xf]  ;;  %v1171_v38 = vsel %vm5727_vm6, %v1169_v27, %v1170_v28  ;;  %v1168_v43 = vsel %vm5727_vm6, %v1166_v33, %v1167_v17 }
  0x80   : > { %1242 = vrot.lane.b32.xlu0 %v1138_v50, %s5359_s13  ;;  %494 = vst.msk [vmem:[#allocation3 + $0x6c] sm:$0xf] %vm358_vm0, %v458_v51  ;;  %v457_v37 = vld [vmem:[#allocation2 + $0x68] sm:$0xf]  ;;  %v1175_v39 = vrot.slane %v1173_v29, 4  ;;  %v1176_v40 = vrot.slane %v1068_v25, 5 }
  0x81   : > { %v1179_v41 = vrot.slane %v1069_v34, 5  ;;  %v1071_v42 = vld [vmem:[#allocation2 + $0x4c] sm:$0xf]  ;;  %493 = vst.msk [vmem:[#allocation3 + $0x68] sm:$0xf] %vm358_vm0, %v457_v37  ;;  %v1172_v44 = vrot.slane %v1170_v28, 4 }
  0x82   : > { %v460_v45 = vld [vmem:[#allocation2 + $0x74] sm:$0xf]  ;;  %v459_v46 = vld [vmem:[#allocation2 + $0x70] sm:$0xf]  ;;  %v462_v48 = vld [vmem:[#allocation2 + $0x7c] sm:$0xf]  ;;  %v1177_v49 = vsel %vm5727_vm6, %v1175_v39, %v1176_v40 }
  0x83   : > { %1248 = vrot.lane.b32.xlu1 %v1147_v57, %s5359_s13  ;;  %496 = vst.msk [vmem:[#allocation3 + $0x74] sm:$0xf] %vm358_vm0, %v460_v45  ;;  %495 = vst.msk [vmem:[#allocation3 + $0x70] sm:$0xf] %vm358_vm0, %v459_v46  ;;  %v1072_v47 = vld [vmem:[#allocation2 + $0x50] sm:$0xf]  ;;  %v1174_v55 = vsel %vm5727_vm6, %v1172_v44, %v1173_v29 }
  0x84   : > { %1246 = vrot.lane.b32.xlu0 %v1144_v61, %s5359_s13  ;;  %v1181_v50 = vrot.slane %v1179_v41, 4  ;;  %v1182_v52 = vrot.slane %v1070_v36, 5  ;;  %v1185_v53 = vrot.slane %v1071_v42, 5  ;;  %498 = vst.msk [vmem:[#allocation3 + $0x7c] sm:$0xf] %vm358_vm0, %v462_v48  ;;  %v1178_v56 = vrot.slane %v1176_v40, 4 }
  0x85   : > { %v461_v54 = vld [vmem:[#allocation2 + $0x78] sm:$0xf]  ;;  %v1073_v57 = vld [vmem:[#allocation2 + $0x54] sm:$0xf]  ;;  %v464_v58 = vld [vmem:[#allocation2 + $0x84] sm:$0xf] }
  0x86   : > { %497 = vst.msk [vmem:[#allocation3 + $0x78] sm:$0xf] %vm358_vm0, %v461_v54  ;;  %500 = vst.msk [vmem:[#allocation3 + $0x84] sm:$0xf] %vm358_vm0, %v464_v58  ;;  %v463_v59 = vld [vmem:[#allocation2 + $0x80] sm:$0xf]  ;;  %v1183_v61 = vsel %vm5727_vm6, %v1181_v50, %v1182_v52  ;;  %v1180_v2 = vsel %vm5727_vm6, %v1178_v56, %v1179_v41 }
  0x87   : > { %1252 = vrot.lane.b32.xlu1 %v1153_v4, %s5359_s13  ;;  %v1188_v60 = vrot.slane %v1072_v47, 5  ;;  %499 = vst.msk [vmem:[#allocation3 + $0x80] sm:$0xf] %vm358_vm0, %v463_v59  ;;  %v1187_v62 = vrot.slane %v1185_v53, 4  ;;  %v1191_v63 = vrot.slane %v1073_v57, 5  ;;  %v1184_v3 = vrot.slane %v1182_v52, 4 }
  0x88   : > { %1250 = vrot.lane.b32.xlu0 %v1150_v9, %s5359_s13  ;;  %v466_v0 = vld [vmem:[#allocation2 + $0x8c] sm:$0xf]  ;;  %v465_v1 = vld [vmem:[#allocation2 + $0x88] sm:$0xf]  ;;  %v1074_v4 = vld [vmem:[#allocation2 + $0x58] sm:$0xf] }
  0x89   : > { %v1075_v5 = vld [vmem:[#allocation2 + $0x5c] sm:$0xf]  ;;  %502 = vst.msk [vmem:[#allocation3 + $0x8c] sm:$0xf] %vm358_vm0, %v466_v0  ;;  %501 = vst.msk [vmem:[#allocation3 + $0x88] sm:$0xf] %vm358_vm0, %v465_v1  ;;  %v1189_v6 = vsel %vm5727_vm6, %v1187_v62, %v1188_v60  ;;  %v1186_v10 = vsel %vm5727_vm6, %v1184_v3, %v1185_v53 }
  0x8a   : > { %v1193_v7 = vrot.slane %v1191_v63, 4  ;;  %v1194_v8 = vrot.slane %v1074_v4, 5  ;;  %v1197_v9 = vrot.slane %v1075_v5, 5  ;;  %v1190_v11 = vrot.slane %v1188_v60, 4  ;;  %v1076_v12 = vld [vmem:[#allocation2 + $0x60] sm:$0xf] }
  0x8b   : > { %1256 = vrot.lane.b32.xlu1 %v1159_v14, %s5359_s13  ;;  %v1077_v13 = vld [vmem:[#allocation2 + $0x64] sm:$0xf]  ;;  %v1200_v16 = vrot.slane %v1076_v12, 5  ;;  %v1078_v20 = vld [vmem:[#allocation2 + $0x68] sm:$0xf]  ;;  %vm3550_vm3 = vcmask 1040384  }
  0x8c   : > { %1254 = vrot.lane.b32.xlu0 %v1156_v19, %s5359_s13  ;;  %v1195_v14 = vsel %vm5727_vm6, %v1193_v7, %v1194_v8  ;;  %v1199_v15 = vrot.slane %v1197_v9, 4  ;;  %v1203_v17 = vrot.slane %v1077_v13, 5  ;;  %v1192_v18 = vsel %vm5727_vm6, %v1190_v11, %v1191_v63  ;;  %v1079_v21 = vld [vmem:[#allocation2 + $0x6c] sm:$0xf]  ;;  %v396_v22 = vld [vmem:[%s5620_s12 + $0x4] sm:$0xf]  ;;  %vm6180_vm5 = vmor %vm3550_vm3, %vm3551_vm4 }
  0x8d   : > { %v1196_v19 = vrot.slane %v1194_v8, 4  ;;  %v1206_v25 = vrot.slane %v1078_v20, 5  ;;  %v397_v27 = vld [vmem:[%s5620_s12 + $0x8] sm:$0xf]  ;;  %414 = vst.msk [vmem:[#allocation2 + $0x94] sm:$0xf] %vm358_vm0, %v396_v22 }
  0x8e   : > { %v1201_v23 = vsel %vm5727_vm6, %v1199_v15, %v1200_v16  ;;  %v1205_v24 = vrot.slane %v1203_v17, 4  ;;  %v1202_v31 = vrot.slane %v1200_v16, 4  ;;  %v1081_v33 = vld [vmem:[#allocation2 + $0x74] sm:$0xf]  ;;  %415 = vst.msk [vmem:[#allocation2 + $0x98] sm:$0xf] %vm358_vm0, %v397_v27 }
  0x8f   : > { %1260 = vrot.lane.b32.xlu1 %v1165_v26, %s5359_s13  ;;  %v1209_v26 = vrot.slane %v1079_v21, 5  ;;  %v1198_v29 = vsel %vm5727_vm6, %v1196_v19, %v1197_v9  ;;  %v1215_v37 = vrot.slane %v1081_v33, 5  ;;  %v1208_v40 = vrot.slane %v1206_v25, 4  ;;  %v1082_v41 = vld [vmem:[#allocation2 + $0x78] sm:$0xf] }
  0x90   : > { %1258 = vrot.lane.b32.xlu0 %v1162_v32, %s5359_s13  ;;  %v1080_v32 = vld [vmem:[#allocation2 + $0x70] sm:$0xf]  ;;  %v1207_v35 = vsel %vm5727_vm6, %v1205_v24, %v1206_v25  ;;  %v1204_v39 = vsel %vm5727_vm6, %v1202_v31, %v1203_v17  ;;  %v1083_v42 = vld [vmem:[#allocation2 + $0x7c] sm:$0xf]  ;;  %v1218_v46 = vrot.slane %v1082_v41, 5 }
  0x91   : > { %v1211_v51 = vrot.slane %v1209_v26, 4  ;;  %v1212_v36 = vrot.slane %v1080_v32, 5  ;;  %v1217_v45 = vrot.slane %v1215_v37, 4  ;;  %v1221_v47 = vrot.slane %v1083_v42, 5  ;;  %v1084_v52 = vld [vmem:[#allocation2 + $0x80] sm:$0xf] }
  0x92   : > { %v1085_v53 = vld [vmem:[#allocation2 + $0x84] sm:$0xf]  ;;  %v1224_v57 = vrot.slane %v1084_v52, 5  ;;  %v1086_v62 = vld [vmem:[#allocation2 + $0x88] sm:$0xf] }
  0x93   : > { %1264 = vrot.lane.b32.xlu1 %v1171_v38, %s5359_s13  ;;  %v1213_v44 = vsel %vm5727_vm6, %v1211_v51, %v1212_v36  ;;  %v1214_v50 = vrot.slane %v1212_v36, 4  ;;  %v1223_v56 = vrot.slane %v1221_v47, 4  ;;  %v1227_v58 = vrot.slane %v1085_v53, 5  ;;  %v1087_v63 = vld [vmem:[#allocation2 + $0x8c] sm:$0xf] }
  0x94   : > { %1262 = vrot.lane.b32.xlu0 %v1168_v43, %s5359_s13  ;;  %v1230_v3 = vrot.slane %v1086_v62, 5  ;;  %v1233_v4 = vrot.slane %v1087_v63, 5  ;;  %v1226_v7 = vrot.slane %v1224_v57, 4  ;;  %v1088_v8 = vld [vmem:[#allocation2 + $0x90] sm:$0x1] }
  0x95   : > { %v1216_v60 = vsel %vm5727_vm6, %v1214_v50, %v1215_v37  ;;  %v1225_v1 = vsel %vm5727_vm6, %v1223_v56, %v1224_v57  ;;  %v1384_v9 = vld [vmem:[#allocation2 + $0xc] sm:$0xf]  ;;  %v1236_v13 = vrot.slane %v1088_v8, 5  ;;  %v1386_v19 = vld [vmem:[#allocation2 + $0x14] sm:$0xf] }
  0x96   : > { %v1235_v12 = vrot.slane %v1233_v4, 4  ;;  %v1228_v16 = vsel %vm5727_vm6, %v1226_v7, %v1227_v58  ;;  %v1232_v17 = vrot.slane %v1230_v3, 4  ;;  %v1383_v21 = vld [vmem:[#allocation2 + $0x8] sm:$0xe]  ;;  %v1465_v25 = vrot.slane %v1386_v19, 5 }
  0x97   : > { %1268 = vrot.lane.b32.xlu1 %v1177_v49, %s5359_s13  ;;  %v1210_v49 = vsel %vm5727_vm6, %v1208_v40, %v1209_v26  ;;  %v1388_v31 = vld [vmem:[#allocation2 + $0x1c] sm:$0xf]  ;;  %v1390_v40 = vld [vmem:[#allocation2 + $0x24] sm:$0xf]  ;;  %v1392_v50 = vld [vmem:[#allocation2 + $0x2c] sm:$0xf] }
  0x98   : > { %1266 = vrot.lane.b32.xlu0 %v1174_v55, %s5359_s13  ;;  %v1219_v55 = vsel %vm5727_vm6, %v1217_v45, %v1218_v46  ;;  %v1237_v22 = vsel %vm5727_vm6, %v1235_v12, %v1236_v13  ;;  %v1234_v27 = vsel %vm5727_vm6, %v1232_v17, %v1233_v4  ;;  %v1471_v51 = vrot.slane %v1388_v31, 5  ;;  %v1396_v7 = vld [vmem:[#allocation2 + $0x3c] sm:$0xf]  ;;  %v1398_v17 = vld [vmem:[#allocation2 + $0x44] sm:$0xf] }
  0x99   : > { %v1477_v45 = vrot.slane %v1390_v40, 5  ;;  %v1483_v56 = vrot.slane %v1392_v50, 5  ;;  %v1495_v12 = vrot.slane %v1396_v7, 5 }
  0x9b   : > { %1272 = vrot.lane.b32.xlu1 %v1183_v61, %s5359_s13  ;;  %v1220_v61 = vrot.slane %v1218_v46, 4 }
  0x9c   : > { %1270 = vrot.lane.b32.xlu0 %v1180_v2, %s5359_s13  ;;  %v1229_v2 = vrot.slane %v1227_v58, 4 }
  0x9e   : > { %v1231_v11 = vsel %vm5727_vm6, %v1229_v2, %v1230_v3 }
  0x9f   : > { %1276 = vrot.lane.b32.xlu1 %v1189_v6, %s5359_s13  ;;  %v1222_v6 = vsel %vm5727_vm6, %v1220_v61, %v1221_v47  ;;  %v1394_v61 = vld [vmem:[#allocation2 + $0x34] sm:$0xf] }
  0xa0   : > { %1274 = vrot.lane.b32.xlu0 %v1186_v10, %s5359_s13  ;;  %v1489_v2 = vrot.slane %v1394_v61, 5 }
  0xa3   : > { %1280 = vrot.lane.b32.xlu1 %v1195_v14, %s5359_s13  ;;  %v1459_v14 = vrot.slane %v1384_v9, 5 }
  0xa4   : > { %1278 = vrot.lane.b32.xlu0 %v1192_v18, %s5359_s13  ;;  %v1385_v18 = vld [vmem:[#allocation2 + $0x10] sm:$0xf] }
  0xa5   : > { %v912_v28 = vpop.permute.xlu1 %911  ;;  %v1462_v24 = vrot.slane %v1385_v18, 5 }
  0xa6   : > { %1018 = vst.msk [vmem:[#allocation3 + $0x8] sm:$0xf] %vm1015_vm7, %v912_v28  ;;  %v908_v34 = vpop.permute.xlu0 %907  ;;  %v4747_v28 = vrot.slane %v1383_v21, 9 }
  0xa7   : > { %1016 = vst.msk [vmem:[#allocation3] sm:$0xf] %vm1015_vm7, %v908_v34  ;;  %1284 = vrot.lane.b32.xlu1 %v1201_v23, %s5359_s13  ;;  %v1461_v23 = vrot.slane %v1459_v14, 4  ;;  %v1467_v34 = vrot.slane %v1465_v25, 4 }
  0xa8   : > { %1282 = vrot.lane.b32.xlu0 %v1198_v29, %s5359_s13  ;;  %v1387_v29 = vld [vmem:[#allocation2 + $0x18] sm:$0xf]  ;;  %v1460_v37 = vsel %vm5727_vm6, %v4747_v28, %v1459_v14 }
  0xa9   : > { %v914_v38 = vpop.permute.xlu1 %913  ;;  %v1463_v33 = vsel %vm5727_vm6, %v1461_v23, %v1462_v24 }
  0xaa   : > { %1019 = vst.msk [vmem:[#allocation3 + $0xc] sm:$0xf] %vm1015_vm7, %v914_v38  ;;  %v910_v43 = vpop.permute.xlu0 %909  ;;  %v1464_v38 = vrot.slane %v1462_v24, 4 }
  0xab   : > { %1017 = vst.msk [vmem:[#allocation3 + $0x4] sm:$0xf] %vm1015_vm7, %v910_v43  ;;  %1288 = vrot.lane.b32.xlu1 %v1207_v35, %s5359_s13  ;;  %v1468_v35 = vrot.slane %v1387_v29, 5  ;;  %v1473_v43 = vrot.slane %v1471_v51, 4 }
  0xac   : > { %1286 = vrot.lane.b32.xlu0 %v1204_v39, %s5359_s13  ;;  %v1389_v39 = vld [vmem:[#allocation2 + $0x20] sm:$0xf]  ;;  %v1466_v47 = vsel %vm5727_vm6, %v1464_v38, %v1465_v25 }
  0xad   : > { %v918_v48 = vpop.permute.xlu1 %917  ;;  %v1469_v42 = vsel %vm5727_vm6, %v1467_v34, %v1468_v35 }
  0xae   : > { %1021 = vst.msk [vmem:[#allocation3 + $0x14] sm:$0xf] %vm1015_vm7, %v918_v48  ;;  %v916_v54 = vpop.permute.xlu0 %915  ;;  %v1470_v48 = vrot.slane %v1468_v35, 4 }
  0xaf   : > { %1020 = vst.msk [vmem:[#allocation3 + $0x10] sm:$0xf] %vm1015_vm7, %v916_v54  ;;  %1292 = vrot.lane.b32.xlu1 %v1213_v44, %s5359_s13  ;;  %v1474_v44 = vrot.slane %v1389_v39, 5  ;;  %v1479_v54 = vrot.slane %v1477_v45, 4 }
  0xb0   : > { %1290 = vrot.lane.b32.xlu0 %v1210_v49, %s5359_s13  ;;  %v1391_v49 = vld [vmem:[#allocation2 + $0x28] sm:$0xf]  ;;  %v1472_v58 = vsel %vm5727_vm6, %v1470_v48, %v1471_v51 }
  0xb1   : > { %v922_v59 = vpop.permute.xlu1 %921  ;;  %v1475_v53 = vsel %vm5727_vm6, %v1473_v43, %v1474_v44 }
  0xb2   : > { %1023 = vst.msk [vmem:[#allocation3 + $0x1c] sm:$0xf] %vm1015_vm7, %v922_v59  ;;  %v920_v0 = vpop.permute.xlu0 %919  ;;  %v1476_v59 = vrot.slane %v1474_v44, 4 }
  0xb3   : > { %1022 = vst.msk [vmem:[#allocation3 + $0x18] sm:$0xf] %vm1015_vm7, %v920_v0  ;;  %1296 = vrot.lane.b32.xlu1 %v1219_v55, %s5359_s13  ;;  %v1480_v55 = vrot.slane %v1391_v49, 5  ;;  %v1485_v0 = vrot.slane %v1483_v56, 4 }
  0xb4   : > { %1294 = vrot.lane.b32.xlu0 %v1216_v60, %s5359_s13  ;;  %v1393_v60 = vld [vmem:[#allocation2 + $0x30] sm:$0xf]  ;;  %v1478_v4 = vsel %vm5727_vm6, %v1476_v59, %v1477_v45 }
  0xb5   : > { %v926_v5 = vpop.permute.xlu1 %925  ;;  %v1481_v63 = vsel %vm5727_vm6, %v1479_v54, %v1480_v55 }
  0xb6   : > { %1025 = vst.msk [vmem:[#allocation3 + $0x24] sm:$0xf] %vm1015_vm7, %v926_v5  ;;  %v924_v10 = vpop.permute.xlu0 %923  ;;  %v1482_v5 = vrot.slane %v1480_v55, 4 }
  0xb7   : > { %1024 = vst.msk [vmem:[#allocation3 + $0x20] sm:$0xf] %vm1015_vm7, %v924_v10  ;;  %1300 = vrot.lane.b32.xlu1 %v1225_v1, %s5359_s13  ;;  %v1486_v1 = vrot.slane %v1393_v60, 5  ;;  %v1491_v10 = vrot.slane %v1489_v2, 4 }
  0xb8   : > { %1298 = vrot.lane.b32.xlu0 %v1222_v6, %s5359_s13  ;;  %v1395_v6 = vld [vmem:[#allocation2 + $0x38] sm:$0xf]  ;;  %v1484_v14 = vsel %vm5727_vm6, %v1482_v5, %v1483_v56 }
  0xb9   : > { %v930_v15 = vpop.permute.xlu1 %929  ;;  %v1487_v9 = vsel %vm5727_vm6, %v1485_v0, %v1486_v1 }
  0xba   : > { %1027 = vst.msk [vmem:[#allocation3 + $0x2c] sm:$0xf] %vm1015_vm7, %v930_v15  ;;  %v928_v20 = vpop.permute.xlu0 %927  ;;  %v1488_v15 = vrot.slane %v1486_v1, 4 }
  0xbb   : > { %1026 = vst.msk [vmem:[#allocation3 + $0x28] sm:$0xf] %vm1015_vm7, %v928_v20  ;;  %1304 = vrot.lane.b32.xlu1 %v1231_v11, %s5359_s13  ;;  %v1492_v11 = vrot.slane %v1395_v6, 5  ;;  %v1497_v20 = vrot.slane %v1495_v12, 4 }
  0xbc   : > { %1302 = vrot.lane.b32.xlu0 %v1228_v16, %s5359_s13  ;;  %v1397_v16 = vld [vmem:[#allocation2 + $0x40] sm:$0xf]  ;;  %v1490_v24 = vsel %vm5727_vm6, %v1488_v15, %v1489_v2 }
  0xbd   : > { %v934_v26 = vpop.permute.xlu1 %933  ;;  %v1493_v19 = vsel %vm5727_vm6, %v1491_v10, %v1492_v11  ;;  %v1498_v21 = vrot.slane %v1397_v16, 5  ;;  %v1494_v25 = vrot.slane %v1492_v11, 4 }
  0xbe   : > { %1029 = vst.msk [vmem:[#allocation3 + $0x34] sm:$0xf] %vm1015_vm7, %v934_v26  ;;  %v932_v32 = vpop.permute.xlu0 %931  ;;  %v1399_v26 = vld [vmem:[#allocation2 + $0x48] sm:$0xf] }
  0xbf   : > { %1028 = vst.msk [vmem:[#allocation3 + $0x30] sm:$0xf] %vm1015_vm7, %v932_v32  ;;  %1308 = vrot.lane.b32.xlu1 %v1237_v22, %s5359_s13  ;;  %v1501_v22 = vrot.slane %v1398_v17, 5  ;;  %v1499_v29 = vsel %vm5727_vm6, %v1497_v20, %v1498_v21  ;;  %v1504_v32 = vrot.slane %v1399_v26, 5  ;;  %v1496_v35 = vsel %vm5727_vm6, %v1494_v25, %v1495_v12 }
  0xc0   : > { %1306 = vrot.lane.b32.xlu0 %v1234_v27, %s5359_s13  ;;  %v1400_v27 = vld [vmem:[#allocation2 + $0x4c] sm:$0xf]  ;;  %v1500_v51 = vrot.slane %v1498_v21, 4  ;;  %s282_s13 = sand.u32 1, %s5340_s16  }
  0xc1   : > { %v938_v36 = vpop.permute.xlu1 %937  ;;  %v1503_v31 = vrot.slane %v1501_v22, 4  ;;  %v1506_v45 = vrot.slane %v1504_v32, 4  ;;  %s7389_s30 = scalar_lea.sflag [#allocation5], %s282_s13 }
  0xc2   : > { %1031 = vst.msk [vmem:[#allocation3 + $0x3c] sm:$0xf] %vm1015_vm7, %v938_v36  ;;  %v936_v41 = vpop.permute.xlu0 %935  ;;  %v1401_v36 = vld [vmem:[#allocation2 + $0x50] sm:$0xf]  ;;  %v1502_v44 = vsel %vm5727_vm6, %v1500_v51, %v1501_v22 }
  0xc3   : > { %1030 = vst.msk [vmem:[#allocation3 + $0x38] sm:$0xf] %vm1015_vm7, %v936_v41  ;;  %1568 = vrot.lane.b32.xlu1 %v1463_v33, %s5360_s14  ;;  %v1507_v33 = vrot.slane %v1400_v27, 5  ;;  %v1505_v39 = vsel %vm5727_vm6, %v1503_v31, %v1504_v32  ;;  %v1510_v41 = vrot.slane %v1401_v36, 5 }
  0xc4   : > { %1566 = vrot.lane.b32.xlu0 %v1460_v37, %s5360_s14  ;;  %v1402_v37 = vld [vmem:[#allocation2 + $0x54] sm:$0xf] }
  0xc5   : > { %v942_v46 = vpop.permute.xlu1 %941  ;;  %v1509_v40 = vrot.slane %v1507_v33, 4  ;;  %v1508_v55 = vsel %vm5727_vm6, %v1506_v45, %v1507_v33  ;;  %v1512_v56 = vrot.slane %v1510_v41, 4  ;;  %v5995_v45 = vld [vmem:[#allocation2 + $0x8c] sm:$0xf] }
  0xc6   : > { %1033 = vst.msk [vmem:[#allocation3 + $0x44] sm:$0xf] %vm1015_vm7, %v942_v46  ;;  %v940_v52 = vpop.permute.xlu0 %939  ;;  %v1403_v46 = vld [vmem:[#allocation2 + $0x58] sm:$0xf] }
  0xc7   : > { %1032 = vst.msk [vmem:[#allocation3 + $0x40] sm:$0xf] %vm1015_vm7, %v940_v52  ;;  %1572 = vrot.lane.b32.xlu1 %v1469_v42, %s5360_s14  ;;  %v1513_v42 = vrot.slane %v1402_v37, 5  ;;  %v1511_v49 = vsel %vm5727_vm6, %v1509_v40, %v1510_v41  ;;  %v1516_v52 = vrot.slane %v1403_v46, 5  ;;  %v1712_v37 = vld [vmem:[#allocation2 + $0xc] sm:$0xf] }
  0xc8   : > { %1570 = vrot.lane.b32.xlu0 %v1466_v47, %s5360_s14  ;;  %v1404_v47 = vld [vmem:[#allocation2 + $0x5c] sm:$0xf]  ;;  %v1415_v41 = vld [vmem:[#allocation2 + $0x88] sm:$0xf] }
  0xc9   : > { %v946_v57 = vpop.permute.xlu1 %945  ;;  %v1515_v50 = vrot.slane %v1513_v42, 4  ;;  %v1514_v1 = vsel %vm5727_vm6, %v1512_v56, %v1513_v42  ;;  %v1518_v2 = vrot.slane %v1516_v52, 4 }
  0xca   : > { %1035 = vst.msk [vmem:[#allocation3 + $0x4c] sm:$0xf] %vm1015_vm7, %v946_v57  ;;  %v944_v62 = vpop.permute.xlu0 %943  ;;  %v1405_v57 = vld [vmem:[#allocation2 + $0x60] sm:$0xf] }
  0xcb   : > { %1034 = vst.msk [vmem:[#allocation3 + $0x48] sm:$0xf] %vm1015_vm7, %v944_v62  ;;  %1576 = vrot.lane.b32.xlu1 %v1475_v53, %s5360_s14  ;;  %v1519_v53 = vrot.slane %v1404_v47, 5  ;;  %v1517_v60 = vsel %vm5727_vm6, %v1515_v50, %v1516_v52  ;;  %v1522_v62 = vrot.slane %v1405_v57, 5  ;;  %v1713_v47 = vld [vmem:[#allocation2 + $0x10] sm:$0xf] }
  0xcc   : > { %1574 = vrot.lane.b32.xlu0 %v1472_v58, %s5360_s14  ;;  %v1406_v58 = vld [vmem:[#allocation2 + $0x64] sm:$0xf]  ;;  %v1711_v50 = vld [vmem:[#allocation2 + $0x8] sm:$0xe]  ;;  %v1552_v52 = vrot.slane %v1415_v41, 5 }
  0xcd   : > { %v950_v3 = vpop.permute.xlu1 %949  ;;  %v1521_v61 = vrot.slane %v1519_v53, 4  ;;  %v1520_v11 = vsel %vm5727_vm6, %v1518_v2, %v1519_v53  ;;  %v1524_v12 = vrot.slane %v1522_v62, 4 }
  0xce   : > { %1037 = vst.msk [vmem:[#allocation3 + $0x54] sm:$0xf] %vm1015_vm7, %v950_v3  ;;  %v948_v8 = vpop.permute.xlu0 %947  ;;  %v1407_v3 = vld [vmem:[#allocation2 + $0x68] sm:$0xf] }
  0xcf   : > { %1036 = vst.msk [vmem:[#allocation3 + $0x50] sm:$0xf] %vm1015_vm7, %v948_v8  ;;  %1580 = vrot.lane.b32.xlu1 %v1481_v63, %s5360_s14  ;;  %v1525_v63 = vrot.slane %v1406_v58, 5  ;;  %v1523_v6 = vsel %vm5727_vm6, %v1521_v61, %v1522_v62  ;;  %v1528_v8 = vrot.slane %v1407_v3, 5  ;;  %v1417_v58 = vld [vmem:[#allocation2 + $0x90] sm:$0xf] }
  0xd0   : > { %1578 = vrot.lane.b32.xlu0 %v1478_v4, %s5360_s14  ;;  %v1408_v4 = vld [vmem:[#allocation2 + $0x6c] sm:$0xf]  ;;  %v6006_v61 = vld [vmem:[#allocation2 + $0x94] sm:$0xf]  ;;  %v1771_v62 = vshrl.u32 %v1713_v47, 16 }
  0xd1   : > { %v954_v13 = vpop.permute.xlu1 %953  ;;  %v1527_v7 = vrot.slane %v1525_v63, 4  ;;  %v1526_v21 = vsel %vm5727_vm6, %v1524_v12, %v1525_v63  ;;  %v1530_v22 = vrot.slane %v1528_v8, 4  ;;  %v1774_v63 = vshll.u32 %v1713_v47, 16 }
  0xd2   : > { %1039 = vst.msk [vmem:[#allocation3 + $0x5c] sm:$0xf] %vm1015_vm7, %v954_v13  ;;  %v952_v18 = vpop.permute.xlu0 %951  ;;  %v1409_v13 = vld [vmem:[#allocation2 + $0x70] sm:$0xf]  ;;  %v1554_v12 = vrot.slane %v1552_v52, 4 }
  0xd3   : > { %1038 = vst.msk [vmem:[#allocation3 + $0x58] sm:$0xf] %vm1015_vm7, %v952_v18  ;;  %1584 = vrot.lane.b32.xlu1 %v1487_v9, %s5360_s14  ;;  %v1531_v9 = vrot.slane %v1408_v4, 5  ;;  %v1529_v16 = vsel %vm5727_vm6, %v1527_v7, %v1528_v8  ;;  %v1534_v18 = vrot.slane %v1409_v13, 5  ;;  %v1558_v8 = vrot.slane %v1417_v58, 5 }
  0xd4   : > { %1582 = vrot.lane.b32.xlu0 %v1484_v14, %s5360_s14  ;;  %v1410_v14 = vld [vmem:[#allocation2 + $0x74] sm:$0xf]  ;;  %v1561_v13 = vrot.slane %v6006_v61, 5 }
  0xd5   : > { %v958_v23 = vpop.permute.xlu1 %957  ;;  %v1533_v17 = vrot.slane %v1531_v9, 4  ;;  %v1532_v33 = vsel %vm5727_vm6, %v1530_v22, %v1531_v9  ;;  %v1715_v9 = vld [vmem:[#allocation2 + $0x18] sm:$0xf] }
  0xd6   : > { %1041 = vst.msk [vmem:[#allocation3 + $0x64] sm:$0xf] %vm1015_vm7, %v958_v23  ;;  %v956_v28 = vpop.permute.xlu0 %955  ;;  %v1411_v23 = vld [vmem:[#allocation2 + $0x78] sm:$0xf] }
  0xd7   : > { %1040 = vst.msk [vmem:[#allocation3 + $0x60] sm:$0xf] %vm1015_vm7, %v956_v28  ;;  %1588 = vrot.lane.b32.xlu1 %v1493_v19, %s5360_s14  ;;  %v1537_v19 = vrot.slane %v1410_v14, 5  ;;  %v1535_v26 = vsel %vm5727_vm6, %v1533_v17, %v1534_v18  ;;  %v1540_v28 = vrot.slane %v1411_v23, 5  ;;  %v1716_v14 = vld [vmem:[#allocation2 + $0x1c] sm:$0xf] }
  0xd8   : > { %1586 = vrot.lane.b32.xlu0 %v1490_v24, %s5360_s14  ;;  %v1412_v24 = vld [vmem:[#allocation2 + $0x7c] sm:$0xf]  ;;  %v1773_v17 = vrot.slane %v1771_v62, 5 }
  0xd9   : > { %v962_v34 = vpop.permute.xlu1 %961  ;;  %v1539_v27 = vrot.slane %v1537_v19, 4  ;;  %v1543_v31 = vrot.slane %v1412_v24, 5  ;;  %v1542_v40 = vrot.slane %v1540_v28, 4 }
  0xda   : > { %1043 = vst.msk [vmem:[#allocation3 + $0x6c] sm:$0xf] %vm1015_vm7, %v962_v34  ;;  %v960_v38 = vpop.permute.xlu0 %959  ;;  %v1536_v34 = vrot.slane %v1534_v18, 4  ;;  %v1776_v18 = vrot.slane %v1774_v63, 6 }
  0xdb   : > { %1042 = vst.msk [vmem:[#allocation3 + $0x68] sm:$0xf] %vm1015_vm7, %v960_v38  ;;  %1592 = vrot.lane.b32.xlu1 %v1499_v29, %s5360_s14  ;;  %v1413_v29 = vld [vmem:[#allocation2 + $0x80] sm:$0xf]  ;;  %v1541_v38 = vsel %vm5727_vm6, %v1539_v27, %v1540_v28  ;;  %v1544_v56 = vsel %vm5727_vm6, %v1542_v40, %v1543_v31  ;;  %v1801_v27 = vshrl.u32 %v1716_v14, 16 }
  0xdc   : > { %1590 = vrot.lane.b32.xlu0 %v1496_v35, %s5360_s14  ;;  %v1414_v35 = vld [vmem:[#allocation2 + $0x84] sm:$0xf]  ;;  %v1546_v36 = vrot.slane %v1413_v29, 5  ;;  %v1563_v29 = vrot.slane %v1561_v13, 4  ;;  %v1777_v40 = vor.u32 %v1776_v18, %v1773_v17 }
  0xdd   : > { %v966_v43 = vpop.permute.xlu1 %965  ;;  %v1549_v42 = vrot.slane %v1414_v35, 5 }
  0xde   : > { %1045 = vst.msk [vmem:[#allocation3 + $0x74] sm:$0xf] %vm1015_vm7, %v966_v43  ;;  %v964_v48 = vpop.permute.xlu0 %963  ;;  %v1548_v53 = vrot.slane %v1546_v36, 4 }
  0xdf   : > { %1044 = vst.msk [vmem:[#allocation3 + $0x70] sm:$0xf] %vm1015_vm7, %v964_v48  ;;  %1596 = vrot.lane.b32.xlu1 %v1505_v39, %s5360_s14  ;;  %v1545_v39 = vrot.slane %v1543_v31, 4  ;;  %v1761_v48 = vshrl.u32 %v1712_v37, 16  ;;  %v1551_v57 = vrot.slane %v1549_v42, 4 }
  0xe0   : > { %1594 = vrot.lane.b32.xlu0 %v1502_v44, %s5360_s14  ;;  %v1538_v44 = vsel %vm5727_vm6, %v1536_v34, %v1537_v19  ;;  %v1550_v7 = vsel %vm5727_vm6, %v1548_v53, %v1549_v42 }
  0xe1   : > { %v970_v54 = vpop.permute.xlu1 %969  ;;  %v1763_v3 = vrot.slane %v1761_v48, 5 }
  0xe2   : > { %1047 = vst.msk [vmem:[#allocation3 + $0x7c] sm:$0xf] %vm1015_vm7, %v970_v54  ;;  %v968_v59 = vpop.permute.xlu0 %967  ;;  %v1714_v54 = vld [vmem:[#allocation2 + $0x14] sm:$0xf] }
  0xe3   : > { %1046 = vst.msk [vmem:[#allocation3 + $0x78] sm:$0xf] %vm1015_vm7, %v968_v59  ;;  %1600 = vrot.lane.b32.xlu1 %v1511_v49, %s5360_s14  ;;  %v1764_v49 = vshll.u32 %v1712_v37, 16  ;;  %v1555_v59 = vrot.slane %v5995_v45, 5  ;;  %v1718_v37 = vld [vmem:[#allocation2 + $0x24] sm:$0xf] }
  0xe4   : > { %1598 = vrot.lane.b32.xlu0 %v1508_v55, %s5360_s14  ;;  %v1547_v55 = vsel %vm5727_vm6, %v1545_v39, %v1546_v36  ;;  %v1803_v45 = vrot.slane %v1801_v27, 5  ;;  %v1824_v53 = vshll.u32 %v1718_v37, 16 }
  0xe5   : > { %v974_v0 = vpop.permute.xlu1 %973  ;;  %v1766_v4 = vrot.slane %v1764_v49, 6  ;;  %v1556_v35 = vsel %vm5727_vm6, %v1554_v12, %v1555_v59 }
  0xe6   : > { %1049 = vst.msk [vmem:[#allocation3 + $0x84] sm:$0xf] %vm1015_vm7, %v974_v0  ;;  %v972_v5 = vpop.permute.xlu0 %971  ;;  %v1752_v0 = vshrl.u32 %v1711_v50, 16 }
  0xe7   : > { %1048 = vst.msk [vmem:[#allocation3 + $0x80] sm:$0xf] %vm1015_vm7, %v972_v5  ;;  %1604 = vrot.lane.b32.xlu1 %v1517_v60, %s5360_s14  ;;  %v1781_v5 = vshrl.u32 %v1714_v54, 16  ;;  %v6018_v22 = vor.u32 %v1766_v4, %v1763_v3 }
  0xe8   : > { %1602 = vrot.lane.b32.xlu0 %v1514_v1, %s5360_s14  ;;  %v1755_v1 = vshll.u32 %v1711_v50, 16  ;;  %v1754_v19 = vrot.slane %v1752_v0, 5  ;;  %v1719_v50 = vld [vmem:[#allocation2 + $0x28] sm:$0xf] }
  0xe9   : > { %v978_v10 = vpop.permute.xlu1 %977  ;;  %v1783_v23 = vrot.slane %v1781_v5, 5  ;;  %v1769_v39 = vrot.slane %v6018_v22, 4  ;;  %v1831_v63 = vshrl.u32 %v1719_v50, 16  ;;  %v1779_v5 = vrot.slane %v1777_v40, 4 }
  0xea   : > { %1051 = vst.msk [vmem:[#allocation3 + $0x8c] sm:$0xf] %vm1015_vm7, %v978_v10  ;;  %v976_v15 = vpop.permute.xlu0 %975  ;;  %v1553_v10 = vsel %vm5727_vm6, %v1551_v57, %v1552_v52  ;;  %v1821_v52 = vshrl.u32 %v1718_v37, 16 }
  0xeb   : > { %1050 = vst.msk [vmem:[#allocation3 + $0x88] sm:$0xf] %vm1015_vm7, %v976_v15  ;;  %1608 = vrot.lane.b32.xlu1 %v1523_v6, %s5360_s14  ;;  %v1784_v6 = vshll.u32 %v1714_v54, 16  ;;  %v1778_v58 = vsel %vm6033_vm11, %v1769_v39, %v1777_v40  ;;  %v6085_v39 = vld [vmem:[#allocation2 + $0x18] sm:$0xf]  ;;  %vm2227_vm7 = vcmask 158848  }
  0xec   : > { %1606 = vrot.lane.b32.xlu0 %v1520_v11, %s5360_s14  ;;  %v1557_v11 = vrot.slane %v1555_v59, 4  ;;  %v1823_v0 = vrot.slane %v1821_v52, 5  ;;  %v2925_v52 = vld [vmem:[#allocation2 + $0x18] sm:$0xf] }
  0xed   : > { %v1241_v20 = vpop.permute.xlu1 %1240  ;;  %v1786_v24 = vrot.slane %v1784_v6, 6 }
  0xee   : > { %1348 = vst.msk [vmem:[#allocation3 + $0x4] sm:$0xf] %vm1346_vm8, %v1241_v20  ;;  %v1239_v25 = vpop.permute.xlu0 %1238  ;;  %v1757_v20 = vrot.slane %v1755_v1, 6  ;;  %v1559_v28 = vsel %vm5727_vm6, %v1557_v11, %v1558_v8  ;;  %v1826_v1 = vrot.slane %v1824_v53, 6 }
  0xef   : > { %1347 = vst.msk [vmem:[#allocation3] sm:$0xf] %vm1346_vm8, %v1239_v25  ;;  %1612 = vrot.lane.b32.xlu1 %v1529_v16, %s5360_s14  ;;  %v1419_v16 = vld [vmem:[#allocation2 + $0x98] sm:$0x1]  ;;  %v1791_v25 = vshrl.u32 %v1715_v9, 16  ;;  %v1787_v41 = vor.u32 %v1786_v24, %v1783_v23 }
  0xf0   : > { %1610 = vrot.lane.b32.xlu0 %v1526_v21, %s5360_s14  ;;  %v1564_v31 = vrot.slane %v1419_v16, 5  ;;  %v1758_v36 = vor.u32 %v1757_v20, %v1754_v19  ;;  %v1827_v11 = vor.u32 %v1826_v1, %v1823_v0  ;;  %v2265_v16 = vld [vmem:[#allocation2 + $0xc] sm:$0xf] }
  0xf1   : > { %v1245_v32 = vpop.permute.xlu1 %1244  ;;  %v1793_v42 = vrot.slane %v1791_v25, 5  ;;  %v1789_v59 = vrot.slane %v1787_v41, 4  ;;  %v2266_v25 = vld [vmem:[#allocation2 + $0x10] sm:$0xf] }
  0xf2   : > { %1350 = vst.msk [vmem:[#allocation3 + $0xc] sm:$0xf] %vm1346_vm8, %v1245_v32  ;;  %v1243_v51 = vpop.permute.xlu0 %1242  ;;  %v1717_v32 = vld [vmem:[#allocation2 + $0x20] sm:$0xf]  ;;  %v1565_v48 = vsel %vm5727_vm6, %v1563_v29, %v1564_v31  ;;  %v1829_v19 = vrot.slane %v1827_v11, 4 }
  0xf3   : > { %1349 = vst.msk [vmem:[#allocation3 + $0x8] sm:$0xf] %vm1346_vm8, %v1243_v51  ;;  %1616 = vrot.lane.b32.xlu1 %v1535_v26, %s5360_s14  ;;  %v1794_v26 = vshll.u32 %v1715_v9, 16  ;;  %v1560_v51 = vrot.slane %v1558_v8, 4  ;;  %v1814_v47 = vshll.u32 %v1717_v32, 16  ;;  %v1833_v8 = vrot.slane %v1831_v63, 5 }
  0xf4   : > { %1614 = vrot.lane.b32.xlu0 %v1532_v33, %s5360_s14  ;;  %v1804_v33 = vshll.u32 %v1716_v14, 16  ;;  %v1788_v14 = vsel %vm6033_vm11, %v1779_v5, %v1787_v41  ;;  %v6072_v29 = vld [vmem:[#allocation2 + $0x14] sm:$0xf] }
  0xf5   : > { %v1249_v43 = vpop.permute.xlu1 %1248  ;;  %v1816_v62 = vrot.slane %v1814_v47, 6  ;;  %v2671_v41 = vrot.slane %v6072_v29, 6 }
  0xf6   : > { %1352 = vst.msk [vmem:[#allocation3 + $0x14] sm:$0xf] %vm1346_vm8, %v1249_v43  ;;  %v1247_v46 = vpop.permute.xlu0 %1246  ;;  %v1806_v49 = vrot.slane %v1804_v33, 6  ;;  %v2346_v33 = vrot.slane %v2266_v25, 6 }
  0xf7   : > { %1351 = vst.msk [vmem:[#allocation3 + $0x10] sm:$0xf] %vm1346_vm8, %v1247_v46  ;;  %1620 = vrot.lane.b32.xlu1 %v1541_v38, %s5360_s14  ;;  %v1811_v46 = vshrl.u32 %v1717_v32, 16 }
  0xf8   : > { %1618 = vrot.lane.b32.xlu0 %v1538_v44, %s5360_s14  ;;  %v1796_v44 = vrot.slane %v1794_v26, 6  ;;  %v1807_v30 = vor.u32 %v1806_v49, %v1803_v45  ;;  %v2267_v26 = vld [vmem:[#allocation2 + $0x14] sm:$0xf]  ;;  %v6091_v45 = vld [vmem:[#allocation2 + $0x1c] sm:$0xf] }
  0xf9   : > { %v1253_v60 = vpop.permute.xlu1 %1252  ;;  %v1813_v61 = vrot.slane %v1811_v46, 5  ;;  %v2677_v63 = vrot.slane %v6091_v45, 6  ;;  %v6144_v45 = vld [vmem:[#allocation2 + $0x18] sm:$0xf] }
  0xfa   : > { %1354 = vst.msk [vmem:[#allocation3 + $0x1c] sm:$0xf] %vm1346_vm8, %v1253_v60  ;;  %v1251_v2 = vpop.permute.xlu0 %1250  ;;  %v1797_v60 = vor.u32 %v1796_v44, %v1793_v42  ;;  %v1809_v9 = vrot.slane %v1807_v30, 4  ;;  %v2923_v42 = vld [vmem:[#allocation2 + $0x10] sm:$0xc] }
  0xfb   : > { %1353 = vst.msk [vmem:[#allocation3 + $0x18] sm:$0xf] %vm1346_vm8, %v1251_v2  ;;  %1624 = vrot.lane.b32.xlu1 %v1547_v55, %s5360_s14  ;;  %v1562_v55 = vsel %vm5727_vm6, %v1560_v51, %v1561_v13  ;;  %v1834_v2 = vshll.u32 %v1719_v50, 16  ;;  %v2597_v44 = vld [vmem:[#allocation2 + $0x18] sm:$0xf]  ;;  %v2352_v50 = vrot.slane %v6085_v39, 6 }
  0xfc   : > { %1622 = vrot.lane.b32.xlu0 %v1544_v56, %s5360_s14  ;;  %v1759_v56 = vrot.slane %v1758_v36, 4  ;;  %vm1674_vm6 = vcmask 126048  }
  0xfd   : > { %v1257_v15 = vpop.permute.xlu1 %1256  ;;  %v1836_v12 = vrot.slane %v1834_v2, 6  ;;  %v2983_v2 = vshrl.u32 %v2925_v52, 16 }
  0xfe   : > { %1356 = vst.msk [vmem:[#allocation3 + $0x24] sm:$0xf] %vm1346_vm8, %v1257_v15  ;;  %v1255_v21 = vpop.permute.xlu0 %1254  ;;  %v1768_v4 = vsel %vm6033_vm11, %v1759_v56, %v6018_v22  ;;  %v1799_v15 = vrot.slane %v1797_v60, 4  ;;  %v2964_v56 = vshrl.u32 %v2923_v42, 16 }
  0xff   : > { %1355 = vst.msk [vmem:[#allocation3 + $0x20] sm:$0xf] %vm1346_vm8, %v1255_v21  ;;  %1628 = vrot.lane.b32.xlu1 %v1553_v10, %s5360_s14  ;;  %v1817_v10 = vor.u32 %v1816_v62, %v1813_v61  ;;  %v6065_v20 = vor.u32 %v1836_v12, %v1833_v8  ;;  %v2343_v21 = vrot.slane %v2265_v16, 6  ;;  %v2674_v61 = vrot.slane %v2597_v44, 6  ;;  %v2595_v62 = vld [vmem:[#allocation2 + $0x10] sm:$0xc] }
 0x100   : > { %1626 = vrot.lane.b32.xlu0 %v1550_v7, %s5360_s14  ;;  %v1798_v7 = vsel %vm6033_vm11, %v1789_v59, %v1797_v60  ;;  %v1808_v23 = vsel %vm6033_vm11, %v1799_v15, %v1807_v30  ;;  %v2673_v60 = vrot.slane %v2671_v41, 4  ;;  %v6103_v30 = vld [vmem:[#allocation2 + $0x20] sm:$0xf] }
 0x101   : > { %v1261_v34 = vpop.permute.xlu1 %1260  ;;  %v1818_v18 = vsel %vm6033_vm11, %v1809_v9, %v1817_v10  ;;  %v1819_v24 = vrot.slane %v1817_v10, 4  ;;  %v1838_v31 = vsel %vm6033_vm11, %v1829_v19, %v6065_v20  ;;  %v2345_v32 = vrot.slane %v2343_v21, 4  ;;  %v2927_v12 = vld [vmem:[#allocation2 + $0x20] sm:$0xf] }
 0x102   : > { %1358 = vst.msk [vmem:[#allocation3 + $0x2c] sm:$0xf] %vm1346_vm8, %v1261_v34  ;;  %v1259_v38 = vpop.permute.xlu0 %1258  ;;  %v2349_v34 = vrot.slane %v2267_v26, 6  ;;  %v4749_v9 = vrot.slane %v2595_v62, 10  ;;  %v2966_v10 = vrot.slane %v2964_v56, 6  ;;  %v2680_v15 = vrot.slane %v6103_v30, 6 }
 0x103   : > { %1357 = vst.msk [vmem:[#allocation3 + $0x28] sm:$0xf] %vm1346_vm8, %v1259_v38  ;;  %1632 = vrot.lane.b32.xlu1 %v1559_v28, %s5360_s14  ;;  %v2264_v28 = vld [vmem:[#allocation2 + $0x8] sm:$0xc]  ;;  %v1828_v36 = vsel %vm6033_vm11, %v1819_v24, %v1827_v11  ;;  %v2675_v16 = vsel %vm6081_vm14, %v2673_v60, %v2674_v61  ;;  %v3006_v24 = vshll.u32 %v2927_v12, 16 }
 0x104   : > { %1630 = vrot.lane.b32.xlu0 %v1556_v35, %s5360_s14  ;;  %v2924_v35 = vld [vmem:[#allocation2 + $0x14] sm:$0xf]  ;;  %v4748_v38 = vrot.slane %v2264_v28, 10  ;;  %v2351_v49 = vrot.slane %v2349_v34, 4  ;;  %v2672_v26 = vsel %vm6081_vm14, %v4749_v9, %v2671_v41  ;;  %v6184_v9 = vld [vmem:[#allocation2 + $0x20] sm:$0xf] }
 0x105   : > { %v1265_v54 = vpop.permute.xlu1 %1264  ;;  %v2973_v46 = vshrl.u32 %v2924_v35, 16  ;;  %v2976_v47 = vshll.u32 %v2924_v35, 16 }
 0x106   : > { %1360 = vst.msk [vmem:[#allocation3 + $0x34] sm:$0xf] %vm1346_vm8, %v1265_v54  ;;  %v1263_v57 = vpop.permute.xlu0 %1262  ;;  %v2344_v54 = vsel %vm6081_vm14, %v4748_v38, %v2343_v21  ;;  %v1732_v38 = vld [vmem:[#allocation2 + $0x5c] sm:$0xf] }
 0x107   : > { %1359 = vst.msk [vmem:[#allocation3 + $0x30] sm:$0xf] %vm1346_vm8, %v1263_v57  ;;  %1636 = vrot.lane.b32.xlu1 %v1565_v48, %s5360_s14  ;;  %v2347_v48 = vsel %vm6081_vm14, %v2345_v32, %v2346_v33  ;;  %v2967_v57 = vshll.u32 %v2923_v42, 16  ;;  %v2975_v0 = vrot.slane %v2973_v46, 6  ;;  %v2978_v1 = vrot.slane %v2976_v47, 7 }
 0x108   : > { %1634 = vrot.lane.b32.xlu0 %v1562_v55, %s5360_s14  ;;  %v2348_v55 = vrot.slane %v2346_v33, 4  ;;  %v6132_v33 = vld [vmem:[#allocation2 + $0x14] sm:$0xf]  ;;  %s5046_s14 = smul.u32 144, %s282_s13 }
 0x109   : > { %v1269_v3 = vpop.permute.xlu1 %1268  ;;  %v2969_v11 = vrot.slane %v2967_v57, 7  ;;  %v3555_v47 = vrot.slane %v6132_v33, 7 }
 0x10a   : > { %1362 = vst.msk [vmem:[#allocation3 + $0x3c] sm:$0xf] %vm1346_vm8, %v1269_v3  ;;  %v1267_v6 = vpop.permute.xlu0 %1266  ;;  %v2986_v3 = vshll.u32 %v2925_v52, 16  ;;  %v2350_v8 = vsel %vm6081_vm14, %v2348_v55, %v2349_v34  ;;  %v6153_v52 = vld [vmem:[#allocation2 + $0x1c] sm:$0xf] }
 0x10b   : > { %1361 = vst.msk [vmem:[#allocation3 + $0x38] sm:$0xf] %vm1346_vm8, %v1267_v6  ;;  %2121 = vrot.lane.b32.xlu1 %v1778_v58, %s5361_s21  ;;  %v2926_v58 = vld [vmem:[#allocation2 + $0x1c] sm:$0xf]  ;;  %v2970_v28 = vor.u32 %v2969_v11, %v2966_v10 }
 0x10c   : > { %2119 = vrot.lane.b32.xlu0 %v1768_v4, %s5361_s21  ;;  %v2353_v4 = vsel %vm6081_vm14, %v2351_v49, %v2352_v50  ;;  %v2993_v5 = vshrl.u32 %v2926_v58, 16  ;;  %v2996_v6 = vshll.u32 %v2926_v58, 16  ;;  %v2988_v19 = vrot.slane %v2986_v3, 7  ;;  %v5115_v49 = vld [vmem:[%s7437_s2 + $0x10] ss:$0 sps:$4 sm:$0x33]  }
 0x10d   : > { %v1273_v13 = vpop.permute.xlu1 %1272  ;;  %v2971_v44 = vrot.slane %v2970_v28, 4  ;;  %v1733_v58 = vld [vmem:[#allocation2 + $0x60] sm:$0xf]  ;;  %5044 = vmatprep.subr.msk.bf16.mxu0 %vm2338_vm12, %v5115_v49  ;;  %5045 = vmatprep.subr.msk.bf16.mxu1 %vm2338_vm12, %v5115_v49  ;;  %v3557_v3 = vrot.slane %v3555_v47, 4 }
 0x10e   : > { %1364 = vst.msk [vmem:[#allocation3 + $0x44] sm:$0xf] %vm1346_vm8, %v1273_v13  ;;  %v1271_v17 = vpop.permute.xlu0 %1270  ;;  %v2995_v21 = vrot.slane %v2993_v5, 6  ;;  %v3476_v5 = vld [vmem:[#allocation2 + $0x10] sm:$0x8]  ;;  %v5117_v28 = vld [vmem:[%s7437_s2] sm:$0xff]  }
 0x10f   : > { %1363 = vst.msk [vmem:[#allocation3 + $0x40] sm:$0xf] %vm1346_vm8, %v1271_v17  ;;  %2125 = vrot.lane.b32.xlu1 %v1798_v7, %s5361_s21  ;;  %v6118_v17 = vor.u32 %v2978_v1, %v2975_v0  ;;  %v1734_v1 = vld [vmem:[#allocation2 + $0x64] sm:$0xf] }
 0x110   : > { %2123 = vrot.lane.b32.xlu0 %v1788_v14, %s5361_s21  ;;  %v2679_v14 = vrot.slane %v2677_v63, 4 }
 0x111   : > { %v1277_v22 = vpop.permute.xlu1 %1276  ;;  %v2981_v34 = vrot.slane %v6118_v17, 4 }
 0x112   : > { %1366 = vst.msk [vmem:[#allocation3 + $0x4c] sm:$0xf] %vm1346_vm8, %v1277_v22  ;;  %v1275_v27 = vpop.permute.xlu0 %1274  ;;  %v2998_v22 = vrot.slane %v2996_v6, 7  ;;  %v3561_v6 = vrot.slane %v6153_v52, 7 }
 0x113   : > { %1365 = vst.msk [vmem:[#allocation3 + $0x48] sm:$0xf] %vm1346_vm8, %v1275_v27  ;;  %2129 = vrot.lane.b32.xlu1 %v1818_v18, %s5361_s21  ;;  %v2985_v18 = vrot.slane %v2983_v2, 6  ;;  %v2676_v27 = vrot.slane %v2674_v61, 4  ;;  %v2980_v61 = vsel %vm6140_vm2, %v2971_v44, %v6118_v17  ;;  %v1984_v17 = vshll.u32 %v1734_v1, 16 }
 0x114   : > { %2127 = vrot.lane.b32.xlu0 %v1808_v23, %s5361_s21  ;;  %v3003_v23 = vshrl.u32 %v2927_v12, 16  ;;  %v2999_v35 = vor.u32 %v2998_v22, %v2995_v21  ;;  %v1971_v12 = vshrl.u32 %v1733_v58, 16  ;;  %v4750_v21 = vrot.slane %v3476_v5, 11 }
 0x115   : > { %v1281_v51 = vpop.permute.xlu1 %1280  ;;  %v6130_v32 = vor.u32 %v2988_v19, %v2985_v18  ;;  %v2678_v41 = vsel %vm6081_vm14, %v2676_v27, %v2677_v63  ;;  %v3564_v27 = vrot.slane %v6184_v9, 7 }
 0x116   : > { %1368 = vst.msk [vmem:[#allocation3 + $0x54] sm:$0xf] %vm1346_vm8, %v1281_v51  ;;  %v1279_v40 = vpop.permute.xlu0 %1278  ;;  %v3005_v51 = vrot.slane %v3003_v23, 6  ;;  %v3001_v56 = vrot.slane %v2999_v35, 4 }
 0x117   : > { %1367 = vst.msk [vmem:[#allocation3 + $0x50] sm:$0xf] %vm1346_vm8, %v1279_v40  ;;  %2133 = vrot.lane.b32.xlu1 %v1838_v31, %s5361_s21  ;;  %v2681_v31 = vsel %vm6081_vm14, %v2679_v14, %v2680_v15  ;;  %v2990_v55 = vsel %vm6140_vm2, %v2981_v34, %v6130_v32  ;;  %v2991_v62 = vrot.slane %v6130_v32, 4  ;;  %v1973_v32 = vrot.slane %v1971_v12, 5 }
 0x118   : > { %2131 = vrot.lane.b32.xlu0 %v1828_v36, %s5361_s21  ;;  %v3008_v36 = vrot.slane %v3006_v24, 7  ;;  %v1735_v24 = vld [vmem:[#allocation2 + $0x68] sm:$0xf] }
 0x119   : > { %v1285_v53 = vpop.permute.xlu1 %1284  ;;  %v3000_v19 = vsel %vm6140_vm2, %v2991_v62, %v2999_v35 }
 0x11a   : > { %1370 = vst.msk [vmem:[#allocation3 + $0x5c] sm:$0xf] %vm1346_vm8, %v1285_v53  ;;  %v1283_v59 = vpop.permute.xlu0 %1282  ;;  %v1961_v53 = vshrl.u32 %v1732_v38, 16  ;;  %v6159_v57 = vor.u32 %v3008_v36, %v3005_v51  ;;  %v1986_v51 = vrot.slane %v1984_v17, 6  ;;  %v1991_v36 = vshrl.u32 %v1735_v24, 16 }
 0x11b   : > { %1369 = vst.msk [vmem:[#allocation3 + $0x58] sm:$0xf] %vm1346_vm8, %v1283_v59  ;;  %2452 = vrot.lane.b32.xlu1 %v2347_v48, %s5362_s22  ;;  %v1731_v48 = vld [vmem:[#allocation2 + $0x58] sm:$0xf]  ;;  %v4017_v59 = vsel %vm2338_vm12, %v5115_v49, 0  ;;  %vm3770_vm12 = vcmask 290048  }
 0x11c   : > { %2450 = vrot.lane.b32.xlu0 %v2344_v54, %s5362_s22  ;;  %v1964_v54 = vshll.u32 %v1732_v38, 16  ;;  %v1951_v63 = vshrl.u32 %v1731_v48, 16  ;;  %v1954_v0 = vshll.u32 %v1731_v48, 16  ;;  %4997 = vmatpush3.bf16.msra.mxu0 %v4017_v59  ;;  %v1963_v10 = vrot.slane %v1961_v53, 5  ;;  %v2286_v17 = vld [vmem:[#allocation2 + $0x60] sm:$0xf] }
 0x11d   : > { %v1289_v7 = vpop.permute.xlu1 %1288  ;;  %5041 = vmatpush3.bf16.msra.mxu1 %v4017_v59  ;;  %v3010_v14 = vsel %vm6140_vm2, %v3001_v56, %v6159_v57  ;;  %v1994_v38 = vshll.u32 %v1735_v24, 16  ;;  %v1993_v53 = vrot.slane %v1991_v36, 5  ;;  %v2269_v59 = vld [vmem:[#allocation2 + $0x1c] sm:$0xf]  ;;  %v2406_v24 = vrot.slane %v2286_v17, 6 }
 0x11e   : > { %1372 = vst.msk [vmem:[#allocation3 + $0x64] sm:$0xf] %vm1346_vm8, %v1289_v7  ;;  %v1287_v13 = vpop.permute.xlu0 %1286  ;;  %v5116_v7 = vld [vmem:[%s7437_s2 + $0x8] sm:$0xff]   ;;  %v1966_v11 = vrot.slane %v1964_v54, 6  ;;  %v1953_v22 = vrot.slane %v1951_v63, 5  ;;  %v1956_v23 = vrot.slane %v1954_v0, 6 }
 0x11f   : > { %1371 = vst.msk [vmem:[#allocation3 + $0x60] sm:$0xf] %vm1346_vm8, %v1287_v13  ;;  %2456 = vrot.lane.b32.xlu1 %v2353_v4, %s5362_s22  ;;  %v3558_v4 = vrot.slane %v6144_v45, 7  ;;  %v1974_v13 = vshll.u32 %v1733_v58, 16  ;;  %4998 = vmatprep.subr.bf16.mxu0 %v5116_v7  ;;  %v1996_v54 = vrot.slane %v1994_v38, 6  ;;  %v2355_v63 = vrot.slane %v2269_v59, 6 }
 0x120   : > { %2454 = vrot.lane.b32.xlu0 %v2350_v8, %s5362_s22  ;;  %4999 = vmatpush3.bf16.msra.mxu0 %v5116_v7  ;;  %v6208_v45 = vor.u32 %v1956_v23, %v1953_v22  ;;  %v6281_v59 = vld [vmem:[#allocation2 + $0x60] sm:$0xf] }
 0x121   : > { %v1293_v25 = vpop.permute.xlu1 %1292  ;;  %5039 = vmatprep.subr.bf16.mxu1 %v5116_v7  ;;  %v1976_v34 = vrot.slane %v1974_v13, 6  ;;  %5000 = vmatprep.subr.bf16.mxu0 %v5117_v28  ;;  %v3560_v44 = vrot.slane %v3558_v4, 4  ;;  %v6229_v52 = vor.u32 %v1996_v54, %v1993_v53  ;;  %v2616_v53 = vld [vmem:[#allocation2 + $0x64] sm:$0xf] }
 0x122   : > { %1374 = vst.msk [vmem:[#allocation3 + $0x6c] sm:$0xf] %vm1346_vm8, %v1293_v25  ;;  %v1291_v29 = vpop.permute.xlu0 %1290  ;;  %5042 = vmatpush3.bf16.msra.mxu1 %v5116_v7  ;;  %v1959_v58 = vrot.slane %v6208_v45, 4 }
 0x123   : > { %1373 = vst.msk [vmem:[#allocation3 + $0x68] sm:$0xf] %vm1346_vm8, %v1291_v29  ;;  %2780 = vrot.lane.b32.xlu1 %v2675_v16, %s5363_s24  ;;  %v1981_v16 = vshrl.u32 %v1734_v1, 16  ;;  %v3563_v29 = vrot.slane %v3561_v6, 4  ;;  %5040 = vmatprep.subr.bf16.mxu1 %v5117_v28  ;;  %v3562_v56 = vsel %vm6180_vm5, %v3560_v44, %v3561_v6  ;;  %v6234_v6 = vld [vmem:[#allocation2 + $0x58] sm:$0xf] }
 0x124   : > { %2778 = vrot.lane.b32.xlu0 %v2672_v26, %s5363_s24  ;;  %v3559_v26 = vsel %vm6180_vm5, %v3557_v3, %v3558_v4  ;;  %5001 = vmatpush3.bf16.msra.mxu0 %v5117_v28  ;;  %v2270_v3 = vld [vmem:[#allocation2 + $0x20] sm:$0xf]  ;;  %v2285_v4 = vld [vmem:[#allocation2 + $0x5c] sm:$0xf]  ;;  %v2600_v44 = vld [vmem:[#allocation2 + $0x24] sm:$0xf] }
 0x125   : > { %v1297_v40 = vpop.permute.xlu1 %1296  ;;  %v1983_v35 = vrot.slane %v1981_v16, 5  ;;  %v3565_v33 = vsel %vm6180_vm5, %v3563_v29, %v3564_v27  ;;  %v2403_v12 = vrot.slane %v2285_v4, 6  ;;  %v2354_v16 = vrot.slane %v2352_v50, 4  ;;  %v2287_v29 = vld [vmem:[#allocation2 + $0x64] sm:$0xf] }
 0x126   : > { %1376 = vst.msk [vmem:[#allocation3 + $0x74] sm:$0xf] %vm1346_vm8, %v1297_v40  ;;  %v1295_v46 = vpop.permute.xlu0 %1294  ;;  %5043 = vmatpush3.bf16.msra.mxu1 %v5117_v28  ;;  %v6257_v28 = vld [vmem:[#allocation2 + $0x28] sm:$0xf] }
 0x127   : > { %1375 = vst.msk [vmem:[#allocation3 + $0x70] sm:$0xf] %vm1346_vm8, %v1295_v46  ;;  %2784 = vrot.lane.b32.xlu1 %v2681_v31, %s5363_s24  ;;  %v1967_v31 = vor.u32 %v1966_v11, %v1963_v10  ;;  %v1987_v49 = vor.u32 %v1986_v51, %v1983_v35  ;;  %v2357_v10 = vrot.slane %v2355_v63, 4  ;;  %v2358_v11 = vrot.slane %v2270_v3, 6 }
 0x128   : > { %2782 = vrot.lane.b32.xlu0 %v2678_v41, %s5363_s24  ;;  %v3556_v41 = vsel %vm6180_vm5, %v4750_v21, %v3555_v47  ;;  %v1977_v47 = vor.u32 %v1976_v34, %v1973_v32  ;;  %v2405_v23 = vrot.slane %v2403_v12, 4  ;;  %v2364_v35 = vrot.slane %v6257_v28, 6 }
 0x129   : > { %v1301_v60 = vpop.permute.xlu1 %1300  ;;  %v1969_v48 = vrot.slane %v1967_v31, 4  ;;  %v1989_v62 = vrot.slane %v1987_v49, 4  ;;  %v1968_v1 = vsel %vm6033_vm11, %v1959_v58, %v1967_v31  ;;  %v2359_v22 = vsel %vm6081_vm14, %v2357_v10, %v2358_v11  ;;  %v2601_v58 = vld [vmem:[#allocation2 + $0x28] sm:$0xf]  ;;  %v6298_v10 = vld [vmem:[#allocation2 + $0x2c] sm:$0xf] }
 0x12a   : > { %1378 = vst.msk [vmem:[#allocation3 + $0x7c] sm:$0xf] %vm1346_vm8, %v1301_v60  ;;  %v1299_v2 = vpop.permute.xlu0 %1298  ;;  %v2407_v32 = vsel %vm6081_vm14, %v2405_v23, %v2406_v24  ;;  %v2409_v51 = vrot.slane %v2287_v29, 6  ;;  %v2728_v3 = vrot.slane %v6281_v59, 6  ;;  %v2689_v23 = vrot.slane %v6298_v10, 6 }
 0x12b   : > { %1377 = vst.msk [vmem:[#allocation3 + $0x78] sm:$0xf] %vm1346_vm8, %v1299_v2  ;;  %3333 = vrot.lane.b32.xlu1 %v2990_v55, %s5364_s6  ;;  %v1979_v2 = vrot.slane %v1977_v47, 4  ;;  %v1998_v7 = vsel %vm6033_vm11, %v1989_v62, %v6229_v52  ;;  %v2731_v62 = vrot.slane %v2616_v53, 6  ;;  %v2945_v53 = vld [vmem:[#allocation2 + $0x68] sm:$0xf] }
 0x12c   : > { %3331 = vrot.lane.b32.xlu0 %v2980_v61, %s5364_s6  ;;  %v1978_v61 = vsel %vm6033_vm11, %v1969_v48, %v1977_v47  ;;  %v2411_v47 = vrot.slane %v2409_v51, 4 }
 0x12d   : > { %v1305_v18 = vpop.permute.xlu1 %1304  ;;  %v2733_v17 = vrot.slane %v2731_v62, 4 }
 0x12e   : > { %1380 = vst.msk [vmem:[#allocation3 + $0x84] sm:$0xf] %vm1346_vm8, %v1305_v18  ;;  %v1303_v25 = vpop.permute.xlu0 %1302  ;;  %v2400_v18 = vrot.slane %v6234_v6, 6 }
 0x12f   : > { %1379 = vst.msk [vmem:[#allocation3 + $0x80] sm:$0xf] %vm1346_vm8, %v1303_v25  ;;  %3337 = vrot.lane.b32.xlu1 %v3010_v14, %s5364_s6  ;;  %v1988_v14 = vsel %vm6033_vm11, %v1979_v2, %v1987_v49  ;;  %v2356_v25 = vsel %vm6081_vm14, %v2354_v16, %v2355_v63  ;;  %v2683_v49 = vrot.slane %v2600_v44, 6  ;;  %v6291_v2 = vld [vmem:[#allocation2 + $0x68] sm:$0xf] }
 0x130   : > { %3335 = vrot.lane.b32.xlu0 %v3000_v19, %s5364_s6  ;;  %v2271_v19 = vld [vmem:[#allocation2 + $0x24] sm:$0xf] }
 0x131   : > { %v1309_v40 = vpop.permute.xlu1 %1308  ;;  %v2361_v39 = vrot.slane %v2271_v19, 6  ;;  %v2734_v19 = vrot.slane %v6291_v2, 6 }
 0x132   : > { %1382 = vst.msk [vmem:[#allocation3 + $0x8c] sm:$0xf] %vm1346_vm8, %v1309_v40  ;;  %v1307_v46 = vpop.permute.xlu0 %1306  ;;  %v2360_v40 = vrot.slane %v2358_v11, 4  ;;  %v6300_v11 = vld [vmem:[#allocation2 + $0x6c] sm:$0xf] }
 0x133   : > { %1381 = vst.msk [vmem:[#allocation3 + $0x88] sm:$0xf] %vm1346_vm8, %v1307_v46  ;;  %3664 = vrot.lane.b32.xlu1 %v3559_v26, %s5365_s10  ;;  %v2402_v26 = vrot.slane %v2400_v18, 4  ;;  %v2363_v34 = vrot.slane %v2361_v39, 4  ;;  %vm2558_vm8 = vcmask 191648  }
 0x134   : > { %3662 = vrot.lane.b32.xlu0 %v3556_v41, %s5365_s10  ;;  %v6268_v41 = vld [vmem:[#allocation2 + $0x68] sm:$0xf] }
 0x135   : > { %v1569_v55 = vpop.permute.xlu1 %1568  ;;  %v2404_v38 = vsel %vm6081_vm14, %v2402_v26, %v2403_v12  ;;  %v2412_v48 = vrot.slane %v6268_v41, 6 }
 0x136   : > { %1676 = vst.msk [vmem:[#allocation3 + $0x4] sm:$0xf] %vm1674_vm6, %v1569_v55  ;;  %v1567_v60 = vpop.permute.xlu0 %1566  ;;  %v2362_v55 = vsel %vm6081_vm14, %v2360_v40, %v2361_v39 }
 0x137   : > { %1675 = vst.msk [vmem:[#allocation3] sm:$0xf] %vm1674_vm6, %v1567_v60  ;;  %3668 = vrot.lane.b32.xlu1 %v3565_v33, %s5365_s10  ;;  %v2365_v33 = vsel %vm6081_vm14, %v2363_v34, %v2364_v35  ;;  %v2413_v63 = vsel %vm6081_vm14, %v2411_v47, %v2412_v48  ;;  %v2691_v47 = vrot.slane %v2689_v23, 4 }
 0x138   : > { %3666 = vrot.lane.b32.xlu0 %v3562_v56, %s5365_s10  ;;  %v2408_v56 = vrot.slane %v2406_v24, 4  ;;  %v2737_v24 = vrot.slane %v6300_v11, 6 }
 0x139   : > { %v1573_v0 = vpop.permute.xlu1 %1572 }
 0x13a   : > { %1678 = vst.msk [vmem:[#allocation3 + $0xc] sm:$0xf] %vm1674_vm6, %v1573_v0  ;;  %v1571_v5 = vpop.permute.xlu0 %1570  ;;  %v2685_v0 = vrot.slane %v2683_v49, 4 }
 0x13b   : > { %1677 = vst.msk [vmem:[#allocation3 + $0x8] sm:$0xf] %vm1674_vm6, %v1571_v5  ;;  %2161 = vrot.lane.b32.xlu1 %v1978_v61, %s5361_s21  ;;  %v2928_v61 = vld [vmem:[#allocation2 + $0x24] sm:$0xf]  ;;  %v2410_v5 = vsel %vm6081_vm14, %v2408_v56, %v2409_v51 }
 0x13c   : > { %2159 = vrot.lane.b32.xlu0 %v1968_v1, %s5361_s21  ;;  %v2686_v1 = vrot.slane %v2601_v58, 6  ;;  %v3013_v12 = vshrl.u32 %v2928_v61, 16  ;;  %v3016_v16 = vshll.u32 %v2928_v61, 16  ;;  %v2930_v61 = vld [vmem:[#allocation2 + $0x2c] sm:$0xf] }
 0x13d   : > { %v1577_v13 = vpop.permute.xlu1 %1576  ;;  %v3033_v10 = vshrl.u32 %v2930_v61, 16 }
 0x13e   : > { %1680 = vst.msk [vmem:[#allocation3 + $0x14] sm:$0xf] %vm1674_vm6, %v1577_v13  ;;  %v1575_v21 = vpop.permute.xlu0 %1574  ;;  %v2687_v30 = vsel %vm6081_vm14, %v2685_v0, %v2686_v1  ;;  %v3015_v26 = vrot.slane %v3013_v12, 6  ;;  %v2688_v44 = vrot.slane %v2686_v1, 4  ;;  %v3036_v12 = vshll.u32 %v2930_v61, 16 }
 0x13f   : > { %1679 = vst.msk [vmem:[#allocation3 + $0x10] sm:$0xf] %vm1674_vm6, %v1575_v21  ;;  %2165 = vrot.lane.b32.xlu1 %v1998_v7, %s5361_s21  ;;  %v2682_v7 = vrot.slane %v2680_v15, 4  ;;  %v2944_v21 = vld [vmem:[#allocation2 + $0x64] sm:$0xf]  ;;  %v2730_v15 = vrot.slane %v2728_v3, 4 }
 0x140   : > { %2163 = vrot.lane.b32.xlu0 %v1988_v14, %s5361_s21  ;;  %v2929_v14 = vld [vmem:[#allocation2 + $0x28] sm:$0xf]  ;;  %v3173_v51 = vshrl.u32 %v2944_v21, 16 }
 0x141   : > { %v1581_v50 = vpop.permute.xlu1 %1580  ;;  %v3023_v29 = vshrl.u32 %v2929_v14, 16  ;;  %v3026_v34 = vshll.u32 %v2929_v14, 16 }
 0x142   : > { %1682 = vst.msk [vmem:[#allocation3 + $0x1c] sm:$0xf] %vm1674_vm6, %v1581_v50  ;;  %v1579_v31 = vpop.permute.xlu0 %1578  ;;  %v2684_v50 = vsel %vm6081_vm14, %v2682_v7, %v2683_v49  ;;  %v2739_v49 = vrot.slane %v2737_v24, 4  ;;  %v3175_v2 = vrot.slane %v3173_v51, 6  ;;  %v3035_v51 = vrot.slane %v3033_v10, 6 }
 0x143   : > { %1681 = vst.msk [vmem:[#allocation3 + $0x18] sm:$0xf] %vm1674_vm6, %v1579_v31  ;;  %2460 = vrot.lane.b32.xlu1 %v2359_v22, %s5362_s22  ;;  %v6311_v22 = vld [vmem:[#allocation2 + $0x30] sm:$0xf]  ;;  %v3025_v56 = vrot.slane %v3023_v29, 6  ;;  %v3028_v1 = vrot.slane %v3026_v34, 7 }
 0x144   : > { %2458 = vrot.lane.b32.xlu0 %v2356_v25, %s5362_s22  ;;  %v6317_v25 = vld [vmem:[#allocation2 + $0x70] sm:$0xf]  ;;  %v2692_v40 = vrot.slane %v6311_v22, 6 }
 0x145   : > { %v1585_v36 = vpop.permute.xlu1 %1584  ;;  %v6346_v29 = vor.u32 %v3028_v1, %v3025_v56 }
 0x146   : > { %1684 = vst.msk [vmem:[#allocation3 + $0x24] sm:$0xf] %vm1674_vm6, %v1585_v36  ;;  %v1583_v46 = vpop.permute.xlu0 %1582  ;;  %v3176_v36 = vshll.u32 %v2944_v21, 16  ;;  %v2693_v7 = vsel %vm6081_vm14, %v2691_v47, %v2692_v40 }
 0x147   : > { %1683 = vst.msk [vmem:[#allocation3 + $0x20] sm:$0xf] %vm1674_vm6, %v1583_v46  ;;  %2492 = vrot.lane.b32.xlu1 %v2407_v32, %s5362_s22  ;;  %v3018_v32 = vrot.slane %v3016_v16, 7  ;;  %v2735_v46 = vsel %vm6081_vm14, %v2733_v17, %v2734_v19  ;;  %v2690_v16 = vsel %vm6081_vm14, %v2688_v44, %v2689_v23  ;;  %v2736_v17 = vrot.slane %v2734_v19, 4 }
 0x148   : > { %2490 = vrot.lane.b32.xlu0 %v2404_v38, %s5362_s22  ;;  %v2943_v38 = vld [vmem:[#allocation2 + $0x60] sm:$0xf] }
 0x149   : > { %v1589_v54 = vpop.permute.xlu1 %1588  ;;  %v3163_v58 = vshrl.u32 %v2943_v38, 16  ;;  %v3019_v0 = vor.u32 %v3018_v32, %v3015_v26  ;;  %v2738_v47 = vsel %vm6081_vm14, %v2736_v17, %v2737_v24 }
 0x14a   : > { %1686 = vst.msk [vmem:[#allocation3 + $0x2c] sm:$0xf] %vm1674_vm6, %v1589_v54  ;;  %v1587_v60 = vpop.permute.xlu0 %1586 }
 0x14b   : > { %1685 = vst.msk [vmem:[#allocation3 + $0x28] sm:$0xf] %vm1674_vm6, %v1587_v60  ;;  %2464 = vrot.lane.b32.xlu1 %v2365_v33, %s5362_s22  ;;  %v2732_v33 = vsel %vm6081_vm14, %v2730_v15, %v2731_v62  ;;  %v3166_v60 = vshll.u32 %v2943_v38, 16  ;;  %v3183_v62 = vshrl.u32 %v2945_v53, 16  ;;  %v3165_v21 = vrot.slane %v3163_v58, 6 }
 0x14c   : > { %2462 = vrot.lane.b32.xlu0 %v2362_v55, %s5362_s22  ;;  %v2740_v55 = vrot.slane %v6317_v25, 6  ;;  %v2931_v15 = vld [vmem:[#allocation2 + $0x30] sm:$0xf]  ;;  %v3021_v26 = vrot.slane %v3019_v0, 4 }
 0x14d   : > { %v1593_v4 = vpop.permute.xlu1 %1592  ;;  %v3185_v19 = vrot.slane %v3183_v62, 6  ;;  %v3043_v38 = vshrl.u32 %v2931_v15, 16  ;;  %v3046_v44 = vshll.u32 %v2931_v15, 16  ;;  %v3481_v15 = vld [vmem:[#allocation2 + $0x24] sm:$0xf] }
 0x14e   : > { %1688 = vst.msk [vmem:[#allocation3 + $0x34] sm:$0xf] %vm1674_vm6, %v1593_v4  ;;  %v1591_v13 = vpop.permute.xlu0 %1590  ;;  %v3178_v4 = vrot.slane %v3176_v36, 7  ;;  %v3038_v36 = vrot.slane %v3036_v12, 7  ;;  %v3030_v56 = vsel %vm6140_vm2, %v3021_v26, %v6346_v29 }
 0x14f   : > { %1687 = vst.msk [vmem:[#allocation3 + $0x30] sm:$0xf] %vm1674_vm6, %v1591_v13  ;;  %2496 = vrot.lane.b32.xlu1 %v2413_v63, %s5362_s22  ;;  %v2946_v13 = vld [vmem:[#allocation2 + $0x6c] sm:$0xf]  ;;  %v3045_v1 = vrot.slane %v3043_v38, 6 }
 0x150   : > { %2494 = vrot.lane.b32.xlu0 %v2410_v5, %s5362_s22  ;;  %v3186_v5 = vshll.u32 %v2945_v53, 16  ;;  %v3193_v32 = vshrl.u32 %v2946_v13, 16  ;;  %v3196_v34 = vshll.u32 %v2946_v13, 16 }
 0x151   : > { %v1597_v39 = vpop.permute.xlu1 %1596 }
 0x152   : > { %1690 = vst.msk [vmem:[#allocation3 + $0x3c] sm:$0xf] %vm1674_vm6, %v1597_v39  ;;  %v1595_v31 = vpop.permute.xlu0 %1594  ;;  %v3188_v23 = vrot.slane %v3186_v5, 7  ;;  %v3195_v11 = vrot.slane %v3193_v32, 6 }
 0x153   : > { %1689 = vst.msk [vmem:[#allocation3 + $0x38] sm:$0xf] %vm1674_vm6, %v1595_v31  ;;  %2788 = vrot.lane.b32.xlu1 %v2687_v30, %s5363_s24  ;;  %v3168_v30 = vrot.slane %v3166_v60, 7  ;;  %v3179_v31 = vor.u32 %v3178_v4, %v3175_v2  ;;  %v3198_v60 = vrot.slane %v3196_v34, 7  ;;  %v3048_v2 = vrot.slane %v3046_v44, 7 }
 0x154   : > { %2786 = vrot.lane.b32.xlu0 %v2684_v50, %s5363_s24  ;;  %v2741_v50 = vsel %vm6081_vm14, %v2739_v49, %v2740_v55  ;;  %v3011_v49 = vrot.slane %v6159_v57, 4  ;;  %v3189_v57 = vor.u32 %v3188_v23, %v3185_v19  ;;  %v3497_v23 = vld [vmem:[#allocation2 + $0x64] sm:$0xf]  ;;  %v1720_v44 = vld [vmem:[#allocation2 + $0x2c] sm:$0xf] }
 0x155   : > { %v1601_v54 = vpop.permute.xlu1 %1600  ;;  %v6356_v53 = vor.u32 %v3168_v30, %v3165_v21  ;;  %v3181_v58 = vrot.slane %v3179_v31, 4  ;;  %v3199_v10 = vor.u32 %v3198_v60, %v3195_v11  ;;  %v6374_v17 = vor.u32 %v3048_v2, %v3045_v1  ;;  %v1721_v1 = vld [vmem:[#allocation2 + $0x30] sm:$0xf]  ;;  %v1736_v2 = vld [vmem:[#allocation2 + $0x6c] sm:$0xf] }
 0x156   : > { %1692 = vst.msk [vmem:[#allocation3 + $0x44] sm:$0xf] %vm1674_vm6, %v1601_v54  ;;  %v1599_v63 = vpop.permute.xlu0 %1598  ;;  %v3020_v62 = vsel %vm6140_vm2, %v3011_v49, %v3019_v0  ;;  %v3031_v30 = vrot.slane %v6346_v29, 4  ;;  %v3191_v34 = vrot.slane %v3189_v57, 4 }
 0x157   : > { %1691 = vst.msk [vmem:[#allocation3 + $0x40] sm:$0xf] %vm1674_vm6, %v1599_v63  ;;  %2820 = vrot.lane.b32.xlu1 %v2735_v46, %s5363_s24  ;;  %v2947_v46 = vld [vmem:[#allocation2 + $0x70] sm:$0xf]  ;;  %v3039_v63 = vor.u32 %v3038_v36, %v3035_v51  ;;  %v3171_v5 = vrot.slane %v6356_v53, 4 }
 0x158   : > { %2818 = vrot.lane.b32.xlu0 %v2732_v33, %s5363_s24  ;;  %v3203_v61 = vshrl.u32 %v2947_v46, 16  ;;  %v3206_v24 = vshll.u32 %v2947_v46, 16  ;;  %v3482_v51 = vld [vmem:[#allocation2 + $0x28] sm:$0xf]  ;;  %v6390_v36 = vld [vmem:[#allocation2 + $0x60] sm:$0xf]  ;;  %v3200_v60 = vsel %vm6140_vm2, %v3191_v34, %v3199_v10 }
 0x159   : > { %v1605_v14 = vpop.permute.xlu1 %1604  ;;  %v3180_v21 = vsel %vm6140_vm2, %v3171_v5, %v3179_v31  ;;  %v3567_v31 = vrot.slane %v3481_v15, 7  ;;  %v3040_v32 = vsel %vm6140_vm2, %v3031_v30, %v3039_v63  ;;  %v3570_v49 = vrot.slane %v3482_v51, 7  ;;  %v1722_v34 = vld [vmem:[#allocation2 + $0x34] sm:$0xf] }
 0x15a   : > { %1694 = vst.msk [vmem:[#allocation3 + $0x4c] sm:$0xf] %vm1674_vm6, %v1605_v14  ;;  %v1603_v39 = vpop.permute.xlu0 %1602  ;;  %v3205_v12 = vrot.slane %v3203_v61, 6  ;;  %v3208_v13 = vrot.slane %v3206_v24, 7  ;;  %v3190_v14 = vsel %vm6140_vm2, %v3181_v58, %v3189_v57  ;;  %v3612_v58 = vrot.slane %v6390_v36, 7 }
 0x15b   : > { %1693 = vst.msk [vmem:[#allocation3 + $0x48] sm:$0xf] %vm1674_vm6, %v1603_v39  ;;  %2792 = vrot.lane.b32.xlu1 %v2693_v7, %s5363_s24  ;;  %v3483_v61 = vld [vmem:[#allocation2 + $0x2c] sm:$0xf]  ;;  %v1841_v24 = vshrl.u32 %v1720_v44, 16  ;;  %v1844_v57 = vshll.u32 %v1720_v44, 16 }
 0x15c   : > { %2790 = vrot.lane.b32.xlu0 %v2690_v16, %s5363_s24  ;;  %v3041_v16 = vrot.slane %v3039_v63, 4  ;;  %v6382_v26 = vor.u32 %v3208_v13, %v3205_v12  ;;  %v3614_v5 = vrot.slane %v3612_v58, 4  ;;  %v6419_v13 = vld [vmem:[#allocation2 + $0x6c] sm:$0xf]  ;;  %v2001_v15 = vshrl.u32 %v1736_v2, 16 }
 0x15d   : > { %v1609_v33 = vpop.permute.xlu1 %1608  ;;  %v6431_v44 = vld [vmem:[#allocation2 + $0x70] sm:$0xf] }
 0x15e   : > { %1696 = vst.msk [vmem:[#allocation3 + $0x54] sm:$0xf] %vm1674_vm6, %v1609_v33  ;;  %v1607_v54 = vpop.permute.xlu0 %1606  ;;  %v3050_v19 = vsel %vm6140_vm2, %v3041_v16, %v6374_v17  ;;  %v3615_v33 = vrot.slane %v3497_v23, 7  ;;  %v1846_v16 = vrot.slane %v1844_v57, 6  ;;  %v1864_v57 = vshll.u32 %v1722_v34, 16 }
 0x15f   : > { %1695 = vst.msk [vmem:[#allocation3 + $0x50] sm:$0xf] %vm1674_vm6, %v1607_v54  ;;  %2824 = vrot.lane.b32.xlu1 %v2741_v50, %s5363_s24  ;;  %v3201_v50 = vrot.slane %v3199_v10, 4  ;;  %v3566_v54 = vrot.slane %v3564_v27, 4  ;;  %v3573_v10 = vrot.slane %v3483_v61, 7 }
 0x160   : > { %2822 = vrot.lane.b32.xlu0 %v2738_v47, %s5363_s24  ;;  %v3569_v47 = vrot.slane %v3567_v31, 4  ;;  %v3617_v9 = vrot.slane %v3615_v33, 4 }
 0x161   : > { %v1613_v4 = vpop.permute.xlu1 %1612  ;;  %v3210_v46 = vsel %vm6140_vm2, %v3201_v50, %v6382_v26  ;;  %v3575_v23 = vrot.slane %v3573_v10, 4 }
 0x162   : > { %1698 = vst.msk [vmem:[#allocation3 + $0x5c] sm:$0xf] %vm1674_vm6, %v1613_v4  ;;  %v1611_v7 = vpop.permute.xlu0 %1610  ;;  %v3571_v4 = vsel %vm6180_vm5, %v3569_v47, %v3570_v49 }
 0x163   : > { %1697 = vst.msk [vmem:[#allocation3 + $0x58] sm:$0xf] %vm1674_vm6, %v1611_v7  ;;  %3341 = vrot.lane.b32.xlu1 %v3030_v56, %s5364_s6  ;;  %v6401_v56 = vld [vmem:[#allocation2 + $0x68] sm:$0xf]  ;;  %v6417_v7 = vld [vmem:[#allocation2 + $0x30] sm:$0xf] }
 0x164   : > { %3339 = vrot.lane.b32.xlu0 %v3020_v62, %s5364_s6  ;;  %v3618_v27 = vrot.slane %v6401_v56, 7  ;;  %v3568_v62 = vsel %vm6180_vm5, %v3566_v54, %v3567_v31  ;;  %v3616_v31 = vsel %vm6180_vm5, %v3614_v5, %v3615_v33 }
 0x165   : > { %v1617_v0 = vpop.permute.xlu1 %1616 }
 0x166   : > { %1700 = vst.msk [vmem:[#allocation3 + $0x64] sm:$0xf] %vm1674_vm6, %v1617_v0  ;;  %v1615_v39 = vpop.permute.xlu0 %1614  ;;  %v1851_v0 = vshrl.u32 %v1721_v1, 16  ;;  %v3619_v50 = vsel %vm6180_vm5, %v3617_v9, %v3618_v27  ;;  %v1723_v9 = vld [vmem:[#allocation2 + $0x38] sm:$0xf] }
 0x167   : > { %1699 = vst.msk [vmem:[#allocation3 + $0x60] sm:$0xf] %vm1674_vm6, %v1615_v39  ;;  %3373 = vrot.lane.b32.xlu1 %v3190_v14, %s5364_s6  ;;  %v1843_v14 = vrot.slane %v1841_v24, 5  ;;  %v2004_v39 = vshll.u32 %v1736_v2, 16  ;;  %v1861_v24 = vshrl.u32 %v1722_v34, 16  ;;  %v1839_v34 = vrot.slane %v6065_v20, 4 }
 0x168   : > { %3371 = vrot.lane.b32.xlu0 %v3180_v21, %s5364_s6  ;;  %v1854_v21 = vshll.u32 %v1721_v1, 16  ;;  %v1853_v47 = vrot.slane %v1851_v0, 5  ;;  %v3624_v1 = vrot.slane %v6431_v44, 7 }
 0x169   : > { %v1621_v29 = vpop.permute.xlu1 %1620 }
 0x16a   : > { %1702 = vst.msk [vmem:[#allocation3 + $0x6c] sm:$0xf] %vm1674_vm6, %v1621_v29  ;;  %v1619_v38 = vpop.permute.xlu0 %1618  ;;  %v3576_v29 = vrot.slane %v6417_v7, 7  ;;  %v1856_v54 = vrot.slane %v1854_v21, 6 }
 0x16b   : > { %1701 = vst.msk [vmem:[#allocation3 + $0x68] sm:$0xf] %vm1674_vm6, %v1619_v38  ;;  %3345 = vrot.lane.b32.xlu1 %v3050_v19, %s5364_s6  ;;  %v1737_v19 = vld [vmem:[#allocation2 + $0x70] sm:$0xf]  ;;  %v3572_v38 = vrot.slane %v3570_v49, 4 }
 0x16c   : > { %3343 = vrot.lane.b32.xlu0 %v3040_v32, %s5364_s6  ;;  %v3621_v32 = vrot.slane %v6419_v13, 7  ;;  %v2011_v61 = vshrl.u32 %v1737_v19, 16  ;;  %v2014_v33 = vshll.u32 %v1737_v19, 16  ;;  %v3577_v49 = vsel %vm6180_vm5, %v3575_v23, %v3576_v29 }
 0x16d   : > { %v1625_v11 = vpop.permute.xlu1 %1624 }
 0x16e   : > { %1704 = vst.msk [vmem:[#allocation3 + $0x74] sm:$0xf] %vm1674_vm6, %v1625_v11  ;;  %v1623_v63 = vpop.permute.xlu0 %1622  ;;  %v2003_v11 = vrot.slane %v2001_v15, 5  ;;  %v2013_v0 = vrot.slane %v2011_v61, 5  ;;  %v2016_v21 = vrot.slane %v2014_v33, 6  ;;  %v1866_v15 = vrot.slane %v1864_v57, 6 }
 0x16f   : > { %1703 = vst.msk [vmem:[#allocation3 + $0x70] sm:$0xf] %vm1674_vm6, %v1623_v63  ;;  %3377 = vrot.lane.b32.xlu1 %v3210_v46, %s5364_s6  ;;  %v1847_v46 = vor.u32 %v1846_v16, %v1843_v14  ;;  %v3623_v63 = vrot.slane %v3621_v32, 4  ;;  %v6445_v14 = vor.u32 %v1856_v54, %v1853_v47 }
 0x170   : > { %3375 = vrot.lane.b32.xlu0 %v3200_v60, %s5364_s6  ;;  %v2006_v60 = vrot.slane %v2004_v39, 6  ;;  %v1871_v39 = vshrl.u32 %v1723_v9, 16 }
 0x171   : > { %v1629_v12 = vpop.permute.xlu1 %1628  ;;  %v1849_v5 = vrot.slane %v1847_v46, 4 }
 0x172   : > { %1706 = vst.msk [vmem:[#allocation3 + $0x7c] sm:$0xf] %vm1674_vm6, %v1629_v12  ;;  %v1627_v30 = vpop.permute.xlu0 %1626  ;;  %v1738_v12 = vld [vmem:[#allocation2 + $0x74] sm:$0xf]  ;;  %v2007_v16 = vor.u32 %v2006_v60, %v2003_v11  ;;  %v1873_v60 = vrot.slane %v1871_v39, 5 }
 0x173   : > { %1705 = vst.msk [vmem:[#allocation3 + $0x78] sm:$0xf] %vm1674_vm6, %v1627_v30  ;;  %3672 = vrot.lane.b32.xlu1 %v3571_v4, %s5365_s10  ;;  %v3574_v4 = vsel %vm6180_vm5, %v3572_v38, %v3573_v10  ;;  %v1863_v30 = vrot.slane %v1861_v24, 5  ;;  %v1874_v10 = vshll.u32 %v1723_v9, 16  ;;  %v2024_v19 = vshll.u32 %v1738_v12, 16 }
 0x174   : > { %3670 = vrot.lane.b32.xlu0 %v3568_v62, %s5365_s10  ;;  %v3620_v62 = vrot.slane %v3618_v27, 4  ;;  %v3625_v27 = vsel %vm6180_vm5, %v3623_v63, %v3624_v1  ;;  %v1858_v47 = vsel %vm6033_vm11, %v1849_v5, %v6445_v14  ;;  %v2009_v54 = vrot.slane %v2007_v16, 4 }
 0x175   : > { %v1633_v51 = vpop.permute.xlu1 %1632  ;;  %v1867_v11 = vor.u32 %v1866_v15, %v1863_v30  ;;  %v1876_v61 = vrot.slane %v1874_v10, 6  ;;  %v1999_v63 = vrot.slane %v6229_v52, 4 }
 0x176   : > { %1708 = vst.msk [vmem:[#allocation3 + $0x84] sm:$0xf] %vm1674_vm6, %v1633_v51  ;;  %v1631_v56 = vpop.permute.xlu0 %1630  ;;  %v3622_v23 = vsel %vm6180_vm5, %v3620_v62, %v3621_v32  ;;  %v1739_v51 = vld [vmem:[#allocation2 + $0x78] sm:$0xf]  ;;  %v2026_v32 = vrot.slane %v2024_v19, 6 }
 0x177   : > { %1707 = vst.msk [vmem:[#allocation3 + $0x80] sm:$0xf] %vm1674_vm6, %v1631_v56  ;;  %3704 = vrot.lane.b32.xlu1 %v3619_v50, %s5365_s10  ;;  %v2021_v50 = vshrl.u32 %v1738_v12, 16  ;;  %v2017_v56 = vor.u32 %v2016_v21, %v2013_v0  ;;  %v2031_v33 = vshrl.u32 %v1739_v51, 16  ;;  %v2034_v24 = vshll.u32 %v1739_v51, 16 }
 0x178   : > { %3702 = vrot.lane.b32.xlu0 %v3616_v31, %s5365_s10  ;;  %v6473_v62 = vor.u32 %v1876_v61, %v1873_v60  ;;  %v2008_v52 = vsel %vm6033_vm11, %v1999_v63, %v2007_v16  ;;  %v1859_v0 = vrot.slane %v6445_v14, 4  ;;  %v2273_v21 = vld [vmem:[#allocation2 + $0x2c] sm:$0xf]  ;;  %v2274_v19 = vld [vmem:[#allocation2 + $0x30] sm:$0xf] }
 0x179   : > { %v1637_v2 = vpop.permute.xlu1 %1636  ;;  %v2023_v20 = vrot.slane %v2021_v50, 5  ;;  %v2033_v12 = vrot.slane %v2031_v33, 5  ;;  %v2367_v16 = vrot.slane %v2273_v21, 6  ;;  %v2019_v50 = vrot.slane %v2017_v56, 4  ;;  %v2290_v60 = vld [vmem:[#allocation2 + $0x70] sm:$0xf] }
 0x17a   : > { %1710 = vst.msk [vmem:[#allocation3 + $0x8c] sm:$0xf] %vm1674_vm6, %v1637_v2  ;;  %v1635_v13 = vpop.permute.xlu0 %1634  ;;  %v2018_v2 = vsel %vm6033_vm11, %v2009_v54, %v2017_v56  ;;  %v1868_v14 = vsel %vm6033_vm11, %v1859_v0, %v1867_v11  ;;  %v2275_v61 = vld [vmem:[#allocation2 + $0x34] sm:$0xf]  ;;  %v6510_v63 = vld [vmem:[#allocation2 + $0x38] sm:$0xf] }
 0x17b   : > { %1709 = vst.msk [vmem:[#allocation3 + $0x88] sm:$0xf] %vm1674_vm6, %v1635_v13  ;;  %3676 = vrot.lane.b32.xlu1 %v3577_v49, %s5365_s10  ;;  %v1848_v49 = vsel %vm6033_vm11, %v1839_v34, %v1847_v46  ;;  %v2027_v5 = vor.u32 %v2026_v32, %v2023_v20  ;;  %v2036_v46 = vrot.slane %v2034_v24, 6  ;;  %v2369_v51 = vrot.slane %v2367_v16, 4  ;;  %v2604_v0 = vld [vmem:[#allocation2 + $0x34] sm:$0xf] }
 0x17c   : > { %3674 = vrot.lane.b32.xlu0 %v3574_v4, %s5365_s10  ;;  %v1869_v4 = vrot.slane %v1867_v11, 4  ;;  %v2366_v11 = vrot.slane %v2364_v35, 4  ;;  %v2418_v24 = vrot.slane %v2290_v60, 6  ;;  %v2414_v35 = vrot.slane %v2412_v48, 4 }
 0x17d   : > { %v2122_v31 = vpop.permute.xlu1 %2121  ;;  %v2029_v39 = vrot.slane %v2027_v5, 4  ;;  %v6485_v10 = vor.u32 %v2036_v46, %v2033_v12  ;;  %v2028_v56 = vsel %vm6033_vm11, %v2019_v50, %v2027_v5  ;;  %v2376_v41 = vrot.slane %v6510_v63, 6 }
 0x17e   : > { %2229 = vst.msk [vmem:[#allocation3 + $0x4] sm:$0xf] %vm2227_vm7, %v2122_v31  ;;  %v2120_v38 = vpop.permute.xlu0 %2119  ;;  %v1878_v15 = vsel %vm6033_vm11, %v1869_v4, %v6473_v62  ;;  %v2289_v31 = vld [vmem:[#allocation2 + $0x6c] sm:$0xf]  ;;  %v2368_v28 = vsel %vm6081_vm14, %v2366_v11, %v2367_v16  ;;  %v2695_v16 = vrot.slane %v2604_v0, 6 }
 0x17f   : > { %2228 = vst.msk [vmem:[#allocation3] sm:$0xf] %vm2227_vm7, %v2120_v38  ;;  %3708 = vrot.lane.b32.xlu1 %v3625_v27, %s5365_s10  ;;  %v2038_v34 = vsel %vm6033_vm11, %v2029_v39, %v6485_v10  ;;  %v2370_v38 = vrot.slane %v2274_v19, 6  ;;  %v2420_v19 = vrot.slane %v2418_v24, 4  ;;  %v6544_v11 = vld [vmem:[#allocation2 + $0x78] sm:$0xf] }
 0x180   : > { %3706 = vrot.lane.b32.xlu0 %v3622_v23, %s5365_s10  ;;  %v2746_v22 = vrot.slane %v6544_v11, 6 }
 0x181   : > { %v2126_v57 = vpop.permute.xlu1 %2125  ;;  %v2371_v32 = vsel %vm6081_vm14, %v2369_v51, %v2370_v38 }
 0x182   : > { %2231 = vst.msk [vmem:[#allocation3 + $0xc] sm:$0xf] %vm2227_vm7, %v2126_v57  ;;  %v2124_v9 = vpop.permute.xlu0 %2123  ;;  %v2373_v57 = vrot.slane %v2275_v61, 6 }
 0x183   : > { %2230 = vst.msk [vmem:[#allocation3 + $0x8] sm:$0xf] %vm2227_vm7, %v2124_v9  ;;  %2137 = vrot.lane.b32.xlu1 %v1858_v47, %s5361_s21  ;;  %v2415_v47 = vrot.slane %v2289_v31, 6  ;;  %v2291_v9 = vld [vmem:[#allocation2 + $0x74] sm:$0xf] }
 0x184   : > { %2135 = vrot.lane.b32.xlu0 %v1848_v49, %s5361_s21  ;;  %v2375_v5 = vrot.slane %v2373_v57, 4  ;;  %v2421_v48 = vrot.slane %v2291_v9, 6  ;;  %v2605_v31 = vld [vmem:[#allocation2 + $0x38] sm:$0xf]  ;;  %v2742_v9 = vrot.slane %v2740_v55, 4 }
 0x185   : > { %v2130_v13 = vpop.permute.xlu1 %2129  ;;  %v2417_v33 = vrot.slane %v2415_v47, 4  ;;  %v2416_v46 = vsel %vm6081_vm14, %v2414_v35, %v2415_v47  ;;  %v2697_v47 = vrot.slane %v2695_v16, 4  ;;  %v2949_v55 = vld [vmem:[#allocation2 + $0x78] sm:$0xf] }
 0x186   : > { %2233 = vst.msk [vmem:[#allocation3 + $0x14] sm:$0xf] %vm2227_vm7, %v2130_v13  ;;  %v2128_v30 = vpop.permute.xlu0 %2127  ;;  %v2372_v13 = vrot.slane %v2370_v38, 4  ;;  %v2422_v61 = vsel %vm6081_vm14, %v2420_v19, %v2421_v48  ;;  %v2934_v19 = vld [vmem:[#allocation2 + $0x3c] sm:$0xf] }
 0x187   : > { %2232 = vst.msk [vmem:[#allocation3 + $0x10] sm:$0xf] %vm2227_vm7, %v2128_v30  ;;  %2169 = vrot.lane.b32.xlu1 %v2018_v2, %s5361_s21  ;;  %v2419_v4 = vsel %vm6081_vm14, %v2417_v33, %v2418_v24  ;;  %v2377_v30 = vsel %vm6081_vm14, %v2375_v5, %v2376_v41 }
 0x188   : > { %2167 = vrot.lane.b32.xlu0 %v2008_v52, %s5361_s21  ;;  %v6521_v52 = vld [vmem:[#allocation2 + $0x78] sm:$0xf]  ;;  %v2374_v50 = vsel %vm6081_vm14, %v2372_v13, %v2373_v57 }
 0x189   : > { %v2134_v27 = vpop.permute.xlu1 %2133  ;;  %v2424_v39 = vrot.slane %v6521_v52, 6  ;;  %v2933_v57 = vld [vmem:[#allocation2 + $0x38] sm:$0xf] }
 0x18a   : > { %2235 = vst.msk [vmem:[#allocation3 + $0x1c] sm:$0xf] %vm2227_vm7, %v2134_v27  ;;  %v2132_v23 = vpop.permute.xlu0 %2131  ;;  %v2620_v27 = vld [vmem:[#allocation2 + $0x74] sm:$0xf]  ;;  %v3063_v13 = vshrl.u32 %v2933_v57, 16  ;;  %v3066_v0 = vshll.u32 %v2933_v57, 16 }
 0x18b   : > { %2234 = vst.msk [vmem:[#allocation3 + $0x18] sm:$0xf] %vm2227_vm7, %v2132_v23  ;;  %2141 = vrot.lane.b32.xlu1 %v1878_v15, %s5361_s21  ;;  %v2423_v15 = vrot.slane %v2421_v48, 4  ;;  %v2743_v51 = vrot.slane %v2620_v27, 6  ;;  %v6561_v48 = vld [vmem:[#allocation2 + $0x7c] sm:$0xf] }
 0x18c   : > { %2139 = vrot.lane.b32.xlu0 %v1868_v14, %s5361_s21 }
 0x18d   : > { %v2453_v54 = vpop.permute.xlu1 %2452  ;;  %v2425_v38 = vsel %vm6081_vm14, %v2423_v15, %v2424_v39 }
 0x18e   : > { %2560 = vst.msk [vmem:[#allocation3 + $0x4] sm:$0xf] %vm2558_vm8, %v2453_v54  ;;  %v2451_v20 = vpop.permute.xlu0 %2450  ;;  %v2698_v54 = vrot.slane %v2605_v31, 6 }
 0x18f   : > { %2559 = vst.msk [vmem:[#allocation3] sm:$0xf] %vm2558_vm8, %v2451_v20  ;;  %2173 = vrot.lane.b32.xlu1 %v2038_v34, %s5361_s21  ;;  %v2932_v34 = vld [vmem:[#allocation2 + $0x34] sm:$0xf]  ;;  %v2606_v20 = vld [vmem:[#allocation2 + $0x3c] sm:$0xf] }
 0x190   : > { %2171 = vrot.lane.b32.xlu0 %v2028_v56, %s5361_s21  ;;  %v2694_v56 = vrot.slane %v2692_v40, 4  ;;  %v3056_v33 = vshll.u32 %v2932_v34, 16  ;;  %v2948_v40 = vld [vmem:[#allocation2 + $0x74] sm:$0xf] }
 0x191   : > { %v2457_v49 = vpop.permute.xlu1 %2456  ;;  %v3216_v15 = vshll.u32 %v2948_v40, 16 }
 0x192   : > { %2562 = vst.msk [vmem:[#allocation3 + $0xc] sm:$0xf] %vm2558_vm8, %v2457_v49  ;;  %v2455_v2 = vpop.permute.xlu0 %2454  ;;  %v2745_v49 = vrot.slane %v2743_v51, 4  ;;  %v2696_v35 = vsel %vm6081_vm14, %v2694_v56, %v2695_v16  ;;  %v2744_v16 = vsel %vm6081_vm14, %v2742_v9, %v2743_v51  ;;  %v3068_v56 = vrot.slane %v3066_v0, 7 }
 0x193   : > { %2561 = vst.msk [vmem:[#allocation3 + $0x8] sm:$0xf] %vm2558_vm8, %v2455_v2  ;;  %2468 = vrot.lane.b32.xlu1 %v2371_v32, %s5362_s22  ;;  %v3053_v32 = vshrl.u32 %v2932_v34, 16  ;;  %v6559_v2 = vld [vmem:[#allocation2 + $0x40] sm:$0xf]  ;;  %v3223_v51 = vshrl.u32 %v2949_v55, 16 }
 0x194   : > { %2466 = vrot.lane.b32.xlu0 %v2368_v28, %s5362_s22  ;;  %v2699_v28 = vsel %vm6081_vm14, %v2697_v47, %v2698_v54  ;;  %v2747_v25 = vsel %vm6081_vm14, %v2745_v49, %v2746_v22  ;;  %v6573_v34 = vld [vmem:[#allocation2 + $0x80] sm:$0xf]  ;;  %v3065_v47 = vrot.slane %v3063_v13, 6 }
 0x195   : > { %v2781_v12 = vpop.permute.xlu1 %2780  ;;  %v2752_v57 = vrot.slane %v6573_v34, 6  ;;  %v2935_v49 = vld [vmem:[#allocation2 + $0x40] sm:$0xf]  ;;  %v3225_v13 = vrot.slane %v3223_v51, 6 }
 0x196   : > { %2888 = vst.msk [vmem:[#allocation3 + $0x4] sm:$0xf] %vm2886_vm9, %v2781_v12  ;;  %v2779_v21 = vpop.permute.xlu0 %2778  ;;  %v3055_v12 = vrot.slane %v3053_v32, 6  ;;  %v3073_v32 = vshrl.u32 %v2934_v19, 16 }
 0x197   : > { %2887 = vst.msk [vmem:[#allocation3] sm:$0xf] %vm2886_vm9, %v2779_v21  ;;  %2500 = vrot.lane.b32.xlu1 %v2419_v4, %s5362_s22  ;;  %v2701_v4 = vrot.slane %v2606_v20, 6  ;;  %v3226_v20 = vshll.u32 %v2949_v55, 16 }
 0x198   : > { %2498 = vrot.lane.b32.xlu0 %v2416_v46, %s5362_s22  ;;  %v3058_v46 = vrot.slane %v3056_v33, 7  ;;  %v3076_v33 = vshll.u32 %v2934_v19, 16  ;;  %v3051_v19 = vrot.slane %v6374_v17, 4 }
 0x199   : > { %v2785_v14 = vpop.permute.xlu1 %2784  ;;  %v2703_v27 = vrot.slane %v2701_v4, 4  ;;  %v3228_v0 = vrot.slane %v3226_v20, 7 }
 0x19a   : > { %2890 = vst.msk [vmem:[#allocation3 + $0xc] sm:$0xf] %vm2886_vm9, %v2785_v14  ;;  %v2783_v23 = vpop.permute.xlu0 %2782  ;;  %v2704_v14 = vrot.slane %v6559_v2, 6 }
 0x19b   : > { %2889 = vst.msk [vmem:[#allocation3 + $0x8] sm:$0xf] %vm2886_vm9, %v2783_v23  ;;  %2472 = vrot.lane.b32.xlu1 %v2377_v30, %s5362_s22  ;;  %v3213_v30 = vshrl.u32 %v2948_v40, 16  ;;  %v2700_v23 = vrot.slane %v2698_v54, 4 }
 0x19c   : > { %2470 = vrot.lane.b32.xlu0 %v2374_v50, %s5362_s22  ;;  %v2749_v50 = vrot.slane %v6561_v48, 6  ;;  %v2705_v54 = vsel %vm6081_vm14, %v2703_v27, %v2704_v14 }
 0x19d   : > { %v3334_v60 = vpop.permute.xlu1 %3333 }
 0x19e   : > { %3441 = vst.msk [vmem:[#allocation3 + $0x4] sm:$0xf] %vm3439_vm10, %v3334_v60  ;;  %v3332_v24 = vpop.permute.xlu0 %3331  ;;  %v3215_v60 = vrot.slane %v3213_v30, 6  ;;  %v3078_v30 = vrot.slane %v3076_v33, 7 }
 0x19f   : > { %3440 = vst.msk [vmem:[#allocation3] sm:$0xf] %vm3439_vm10, %v3332_v24  ;;  %2504 = vrot.lane.b32.xlu1 %v2425_v38, %s5362_s22  ;;  %v6575_v38 = vor.u32 %v3058_v46, %v3055_v12  ;;  %v2751_v24 = vrot.slane %v2749_v50, 4  ;;  %v6590_v12 = vor.u32 %v3068_v56, %v3065_v47 }
 0x1a0   : > { %2502 = vrot.lane.b32.xlu0 %v2422_v61, %s5362_s22  ;;  %v3218_v61 = vrot.slane %v3216_v15, 7  ;;  %v3083_v15 = vshrl.u32 %v2935_v49, 16 }
 0x1a1   : > { %v3338_v5 = vpop.permute.xlu1 %3337  ;;  %v3061_v9 = vrot.slane %v6575_v38, 4 }
 0x1a2   : > { %3443 = vst.msk [vmem:[#allocation3 + $0xc] sm:$0xf] %vm3439_vm10, %v3338_v5  ;;  %v3336_v21 = vpop.permute.xlu0 %3335  ;;  %v2950_v5 = vld [vmem:[#allocation2 + $0x7c] sm:$0xf]  ;;  %v3219_v46 = vor.u32 %v3218_v61, %v3215_v60 }
 0x1a3   : > { %3442 = vst.msk [vmem:[#allocation3 + $0x8] sm:$0xf] %vm3439_vm10, %v3336_v21  ;;  %2796 = vrot.lane.b32.xlu1 %v2699_v28, %s5363_s24  ;;  %v2702_v28 = vsel %vm6081_vm14, %v2700_v23, %v2701_v4  ;;  %v3075_v21 = vrot.slane %v3073_v32, 6  ;;  %v3086_v4 = vshll.u32 %v2935_v49, 16  ;;  %v3236_v55 = vshll.u32 %v2950_v5, 16 }
 0x1a4   : > { %2794 = vrot.lane.b32.xlu0 %v2696_v35, %s5363_s24  ;;  %v2748_v35 = vrot.slane %v2746_v22, 4  ;;  %v2753_v22 = vsel %vm6081_vm14, %v2751_v24, %v2752_v57  ;;  %v3070_v56 = vsel %vm6140_vm2, %v3061_v9, %v6590_v12  ;;  %v3221_v60 = vrot.slane %v3219_v46, 4 }
 0x1a5   : > { %v3665_v31 = vpop.permute.xlu1 %3664  ;;  %v3079_v61 = vor.u32 %v3078_v30, %v3075_v21  ;;  %v3088_v51 = vrot.slane %v3086_v4, 7  ;;  %v3238_v20 = vrot.slane %v3236_v55, 7  ;;  %v3060_v24 = vsel %vm6140_vm2, %v3051_v19, %v6575_v38  ;;  %v3501_v19 = vld [vmem:[#allocation2 + $0x74] sm:$0xf] }
 0x1a6   : > { %3772 = vst.msk [vmem:[#allocation3 + $0x4] sm:$0xf] %vm3770_vm12, %v3665_v31  ;;  %v3663_v11 = vpop.permute.xlu0 %3662  ;;  %v2750_v27 = vsel %vm6081_vm14, %v2748_v35, %v2749_v50  ;;  %v2951_v31 = vld [vmem:[#allocation2 + $0x80] sm:$0xf]  ;;  %v3085_v50 = vrot.slane %v3083_v15, 6  ;;  %v3211_v49 = vrot.slane %v6382_v26, 4 }
 0x1a7   : > { %3771 = vst.msk [vmem:[#allocation3] sm:$0xf] %vm3770_vm12, %v3663_v11  ;;  %2828 = vrot.lane.b32.xlu1 %v2747_v25, %s5363_s24  ;;  %v3233_v25 = vshrl.u32 %v2950_v5, 16  ;;  %v3229_v11 = vor.u32 %v3228_v0, %v3225_v13  ;;  %v3243_v32 = vshrl.u32 %v2951_v31, 16  ;;  %v3246_v33 = vshll.u32 %v2951_v31, 16 }
 0x1a8   : > { %2826 = vrot.lane.b32.xlu0 %v2744_v16, %s5363_s24  ;;  %v3081_v9 = vrot.slane %v3079_v61, 4  ;;  %v6621_v5 = vor.u32 %v3088_v51, %v3085_v50  ;;  %v3485_v13 = vld [vmem:[#allocation2 + $0x34] sm:$0xf]  ;;  %v3220_v21 = vsel %vm6140_vm2, %v3211_v49, %v3219_v46  ;;  %v3071_v30 = vrot.slane %v6590_v12, 4  ;;  %v3486_v46 = vld [vmem:[#allocation2 + $0x38] sm:$0xf] }
 0x1a9   : > { %v3669_v40 = vpop.permute.xlu1 %3668  ;;  %v3235_v17 = vrot.slane %v3233_v25, 6  ;;  %v3230_v35 = vsel %vm6140_vm2, %v3221_v60, %v3229_v11  ;;  %v3245_v26 = vrot.slane %v3243_v32, 6  ;;  %v3579_v4 = vrot.slane %v3485_v13, 7  ;;  %v6646_v50 = vld [vmem:[#allocation2 + $0x3c] sm:$0xf] }
 0x1aa   : > { %3774 = vst.msk [vmem:[#allocation3 + $0xc] sm:$0xf] %vm3770_vm12, %v3669_v40  ;;  %v3667_v48 = vpop.permute.xlu0 %3666  ;;  %v3080_v12 = vsel %vm6140_vm2, %v3071_v30, %v3079_v61  ;;  %v3627_v61 = vrot.slane %v3501_v19, 7  ;;  %v1740_v49 = vld [vmem:[#allocation2 + $0x7c] sm:$0xf] }
 0x1ab   : > { %3773 = vst.msk [vmem:[#allocation3 + $0x8] sm:$0xf] %vm3770_vm12, %v3667_v48  ;;  %2800 = vrot.lane.b32.xlu1 %v2705_v54, %s5363_s24  ;;  %v3239_v38 = vor.u32 %v3238_v20, %v3235_v17  ;;  %v3248_v48 = vrot.slane %v3246_v33, 7  ;;  %v6650_v20 = vld [vmem:[#allocation2 + $0x78] sm:$0xf] }
 0x1ac   : > { %2798 = vrot.lane.b32.xlu0 %v2702_v28, %s5363_s24  ;;  %v1726_v19 = vld [vmem:[#allocation2 + $0x44] sm:$0xf] }
 0x1ad   : > { %v2162_v16 = vpop.permute.xlu1 %2161  ;;  %v3241_v25 = vrot.slane %v3239_v38, 4  ;;  %v6633_v55 = vor.u32 %v3248_v48, %v3245_v26  ;;  %v6666_v48 = vld [vmem:[#allocation2 + $0x7c] sm:$0xf] }
 0x1ae   : > { %2249 = vst.msk [vmem:[#allocation3 + $0x54] sm:$0xf] %vm2227_vm7, %v2162_v16  ;;  %v2160_v23 = vpop.permute.xlu0 %2159  ;;  %v5118_v47 = vld [vmem:[#allocation3] sm:$0xff]  }
 0x1af   : > { %2248 = vst.msk [vmem:[#allocation3 + $0x50] sm:$0xf] %vm2227_vm7, %v2160_v23  ;;  %2832 = vrot.lane.b32.xlu1 %v2753_v22, %s5363_s24  ;;  %5002 = vmatprep.mubr.msk.bf16.mxu0 %vm3960_vm13, %v5118_v47  ;;  %v3090_v22 = vsel %vm6140_vm2, %v3081_v9, %v6621_v5  ;;  %v1724_v23 = vld [vmem:[#allocation2 + $0x3c] sm:$0xf]  ;;  %v3581_v47 = vrot.slane %v3579_v4, 4  ;;  %v3250_v60 = vsel %vm6140_vm2, %v3241_v25, %v6633_v55  ;;  %v3626_v9 = vrot.slane %v3624_v1, 4 }
 0x1b0   : > { %2830 = vrot.lane.b32.xlu0 %v2750_v27, %s5363_s24  ;;  %v3231_v27 = vrot.slane %v3229_v11, 4  ;;  %v3578_v11 = vrot.slane %v3576_v29, 4  ;;  %v1881_v32 = vshrl.u32 %v1724_v23, 16  ;;  %v1884_v33 = vshll.u32 %v1724_v23, 16  ;;  %v398_v25 = vld [vmem:[%s5620_s12 + $0xc] sm:$0xf] }
 0x1b1   : > { %v2166_v54 = vpop.permute.xlu1 %2165  ;;  %v3585_v29 = vrot.slane %v6646_v50, 7  ;;  %v1741_v1 = vld [vmem:[#allocation2 + $0x80] sm:$0xf]  ;;  %416 = vst.msk [vmem:[#allocation2 + $0x9c] sm:$0xf] %vm358_vm0, %v398_v25 }
 0x1b2   : > { %2251 = vst.msk [vmem:[#allocation3 + $0x5c] sm:$0xf] %vm2227_vm7, %v2166_v54  ;;  %v2164_v40 = vpop.permute.xlu0 %2163  ;;  %v5119_v28 = vld [vmem:[#allocation3 + $0x8] sm:$0xff]   ;;  %v3240_v17 = vsel %vm6140_vm2, %v3231_v27, %v3239_v38  ;;  %v1883_v13 = vrot.slane %v1881_v32, 5  ;;  %v3633_v27 = vrot.slane %v6666_v48, 7  ;;  %v2051_v32 = vshrl.u32 %v1741_v1, 16 }
 0x1b3   : > { %2250 = vst.msk [vmem:[#allocation3 + $0x58] sm:$0xf] %vm2227_vm7, %v2164_v40  ;;  %3349 = vrot.lane.b32.xlu1 %v3070_v56, %s5364_s6  ;;  %5003 = vmatmul.mubr.msk.bf16.vlgmr.msra.gmra.mxu0 %vm3960_vm13, %v5119_v28  ;;  %v3582_v56 = vrot.slane %v3486_v46, 7  ;;  %v3580_v40 = vsel %vm6180_vm5, %v3578_v11, %v3579_v4  ;;  %v3629_v28 = vrot.slane %v3627_v61, 4  ;;  %v6664_v38 = vld [vmem:[#allocation2 + $0x40] sm:$0xf] }
 0x1b4   : > { %3347 = vrot.lane.b32.xlu0 %v3060_v24, %s5364_s6  ;;  %v1725_v24 = vld [vmem:[#allocation2 + $0x40] sm:$0xf]  ;;  %v2041_v4 = vshrl.u32 %v1740_v49, 16  ;;  %v3587_v44 = vrot.slane %v3585_v29, 4 }
 0x1b5   : > { %v2461_v0 = vpop.permute.xlu1 %2460  ;;  %v3583_v7 = vsel %vm6180_vm5, %v3581_v47, %v3582_v56  ;;  %v1894_v30 = vshll.u32 %v1725_v24, 16  ;;  %v3584_v47 = vrot.slane %v3582_v56, 4  ;;  %v1904_v56 = vshll.u32 %v1726_v19, 16 }
 0x1b6   : > { %2564 = vst.msk [vmem:[#allocation3 + $0x14] sm:$0xf] %vm2558_vm8, %v2461_v0  ;;  %v2459_v15 = vpop.permute.xlu0 %2458  ;;  %v1886_v0 = vrot.slane %v1884_v33, 6  ;;  %v2054_v33 = vshll.u32 %v1741_v1, 16 }
 0x1b7   : > { %2563 = vst.msk [vmem:[#allocation3 + $0x10] sm:$0xf] %vm2558_vm8, %v2459_v15  ;;  %3381 = vrot.lane.b32.xlu1 %v3230_v35, %s5364_s6  ;;  %v3630_v35 = vrot.slane %v6650_v20, 7  ;;  %v2043_v20 = vrot.slane %v2041_v4, 5  ;;  %v1906_v25 = vrot.slane %v1904_v56, 6 }
 0x1b8   : > { %3379 = vrot.lane.b32.xlu0 %v3220_v21, %s5364_s6  ;;  %v1891_v21 = vshrl.u32 %v1725_v24, 16  ;;  %v1887_v11 = vor.u32 %v1886_v0, %v1883_v13  ;;  %v1742_v13 = vld [vmem:[#allocation2 + $0x84] sm:$0xf]  ;;  %v2056_v4 = vrot.slane %v2054_v33, 6 }
 0x1b9   : > { %v2493_v16 = vpop.permute.xlu1 %2492  ;;  %v3631_v46 = vsel %vm6180_vm5, %v3629_v28, %v3630_v35 }
 0x1ba   : > { %2580 = vst.msk [vmem:[#allocation3 + $0x54] sm:$0xf] %vm2558_vm8, %v2493_v16  ;;  %v2491_v31 = vpop.permute.xlu0 %2490  ;;  %v3628_v16 = vsel %vm6180_vm5, %v3626_v9, %v3627_v61  ;;  %v1893_v50 = vrot.slane %v1891_v21, 5  ;;  %v3586_v9 = vsel %vm6180_vm5, %v3584_v47, %v3585_v29  ;;  %v1889_v48 = vrot.slane %v1887_v11, 4 }
 0x1bb   : > { %2579 = vst.msk [vmem:[#allocation3 + $0x50] sm:$0xf] %vm2558_vm8, %v2491_v31  ;;  %3353 = vrot.lane.b32.xlu1 %v3090_v22, %s5364_s6  ;;  %v2044_v22 = vshll.u32 %v1740_v49, 16  ;;  %v399_v31 = vld [vmem:[%s5620_s12 + $0x10] sm:$0xf] }
 0x1bc   : > { %3351 = vrot.lane.b32.xlu0 %v3080_v12, %s5364_s6  ;;  %v3588_v12 = vrot.slane %v6664_v38, 7  ;;  %417 = vst.msk [vmem:[#allocation2 + $0xa0] sm:$0xf] %vm358_vm0, %v399_v31  ;;  %v1879_v31 = vrot.slane %v6473_v62, 4 }
 0x1bd   : > { %v2465_v51 = vpop.permute.xlu1 %2464  ;;  %v2046_v61 = vrot.slane %v2044_v22, 6 }
 0x1be   : > { %2566 = vst.msk [vmem:[#allocation3 + $0x1c] sm:$0xf] %vm2558_vm8, %v2465_v51  ;;  %v2463_v54 = vpop.permute.xlu0 %2462  ;;  %v1896_v51 = vrot.slane %v1894_v30, 6  ;;  %v3589_v24 = vsel %vm6180_vm5, %v3587_v44, %v3588_v12 }
 0x1bf   : > { %2565 = vst.msk [vmem:[#allocation3 + $0x18] sm:$0xf] %vm2558_vm8, %v2463_v54  ;;  %3385 = vrot.lane.b32.xlu1 %v3250_v60, %s5364_s6  ;;  %v6681_v60 = vld [vmem:[#allocation2 + $0x80] sm:$0xf]  ;;  %v1901_v54 = vshrl.u32 %v1726_v19, 16  ;;  %v2047_v30 = vor.u32 %v2046_v61, %v2043_v20 }
 0x1c0   : > { %3383 = vrot.lane.b32.xlu0 %v3240_v17, %s5364_s6  ;;  %v3636_v49 = vrot.slane %v6681_v60, 7  ;;  %v6696_v21 = vor.u32 %v1896_v51, %v1893_v50 }
 0x1c1   : > { %v2497_v26 = vpop.permute.xlu1 %2496  ;;  %v1903_v22 = vrot.slane %v1901_v54, 5  ;;  %v2049_v51 = vrot.slane %v2047_v30, 4 }
 0x1c2   : > { %2582 = vst.msk [vmem:[#allocation3 + $0x5c] sm:$0xf] %vm2558_vm8, %v2497_v26  ;;  %v2495_v15 = vpop.permute.xlu0 %2494  ;;  %v3632_v26 = vrot.slane %v3630_v35, 4  ;;  %v2061_v35 = vshrl.u32 %v1742_v13, 16  ;;  %v1898_v50 = vsel %vm6033_vm11, %v1889_v48, %v6696_v21 }
 0x1c3   : > { %2581 = vst.msk [vmem:[#allocation3 + $0x58] sm:$0xf] %vm2558_vm8, %v2495_v15  ;;  %3680 = vrot.lane.b32.xlu1 %v3583_v7, %s5365_s10  ;;  %v3635_v7 = vrot.slane %v3633_v27, 4  ;;  %v2053_v15 = vrot.slane %v2051_v32, 5  ;;  %v1907_v20 = vor.u32 %v1906_v25, %v1903_v22 }
 0x1c4   : > { %3678 = vrot.lane.b32.xlu0 %v3580_v40, %s5365_s10  ;;  %v1727_v40 = vld [vmem:[#allocation2 + $0x48] sm:$0xf]  ;;  %v3634_v19 = vsel %vm6180_vm5, %v3632_v26, %v3633_v27  ;;  %v2063_v62 = vrot.slane %v2061_v35, 5 }
 0x1c5   : > { %v2789_v23 = vpop.permute.xlu1 %2788  ;;  %v1911_v44 = vshrl.u32 %v1727_v40, 16  ;;  %v1914_v1 = vshll.u32 %v1727_v40, 16  ;;  %v3637_v29 = vsel %vm6180_vm5, %v3635_v7, %v3636_v49  ;;  %v2039_v7 = vrot.slane %v6485_v10, 4 }
 0x1c6   : > { %2892 = vst.msk [vmem:[#allocation3 + $0x14] sm:$0xf] %vm2886_vm9, %v2789_v23  ;;  %v2787_v17 = vpop.permute.xlu0 %2786  ;;  %v1743_v23 = vld [vmem:[#allocation2 + $0x88] sm:$0xf] }
 0x1c7   : > { %2891 = vst.msk [vmem:[#allocation3 + $0x10] sm:$0xf] %vm2886_vm9, %v2787_v17  ;;  %3712 = vrot.lane.b32.xlu1 %v3631_v46, %s5365_s10  ;;  %v2064_v46 = vshll.u32 %v1742_v13, 16  ;;  %v2057_v17 = vor.u32 %v2056_v4, %v2053_v15  ;;  %v1913_v61 = vrot.slane %v1911_v44, 5  ;;  %v1916_v32 = vrot.slane %v1914_v1, 6 }
 0x1c8   : > { %3710 = vrot.lane.b32.xlu0 %v3628_v16, %s5365_s10  ;;  %v2071_v33 = vshrl.u32 %v1743_v23, 16  ;;  %v2074_v54 = vshll.u32 %v1743_v23, 16  ;;  %v2048_v10 = vsel %vm6033_vm11, %v2039_v7, %v2047_v30  ;;  %v1899_v15 = vrot.slane %v6696_v21, 4  ;;  %v2277_v4 = vld [vmem:[#allocation2 + $0x3c] sm:$0xf] }
 0x1c9   : > { %v2821_v28 = vpop.permute.xlu1 %2820  ;;  %v2066_v27 = vrot.slane %v2064_v46, 6  ;;  %v6724_v26 = vor.u32 %v1916_v32, %v1913_v61  ;;  %v2379_v30 = vrot.slane %v2277_v4, 6  ;;  %v2059_v35 = vrot.slane %v2057_v17, 4  ;;  %v2278_v46 = vld [vmem:[#allocation2 + $0x40] sm:$0xf] }
 0x1ca   : > { %2908 = vst.msk [vmem:[#allocation3 + $0x54] sm:$0xf] %vm2886_vm9, %v2821_v28  ;;  %v2819_v0 = vpop.permute.xlu0 %2818  ;;  %v2058_v28 = vsel %vm6033_vm11, %v2049_v51, %v2057_v17  ;;  %v2073_v13 = vrot.slane %v2071_v33, 5  ;;  %v1908_v21 = vsel %vm6033_vm11, %v1899_v15, %v1907_v20  ;;  %v2294_v61 = vld [vmem:[#allocation2 + $0x80] sm:$0xf] }
 0x1cb   : > { %2907 = vst.msk [vmem:[#allocation3 + $0x50] sm:$0xf] %vm2886_vm9, %v2819_v0  ;;  %3684 = vrot.lane.b32.xlu1 %v3589_v24, %s5365_s10  ;;  %v1888_v24 = vsel %vm6033_vm11, %v1879_v31, %v1887_v11  ;;  %v2067_v48 = vor.u32 %v2066_v27, %v2063_v62  ;;  %v2076_v11 = vrot.slane %v2074_v54, 6  ;;  %v2381_v23 = vrot.slane %v2379_v30, 4  ;;  %v2279_v32 = vld [vmem:[#allocation2 + $0x44] sm:$0xf] }
 0x1cc   : > { %3682 = vrot.lane.b32.xlu0 %v3586_v9, %s5365_s10  ;;  %v1909_v9 = vrot.slane %v1907_v20, 4  ;;  %v2378_v20 = vrot.slane %v2376_v41, 4  ;;  %v2430_v54 = vrot.slane %v2294_v61, 6  ;;  %v2426_v41 = vrot.slane %v2424_v39, 4  ;;  %v6761_v7 = vld [vmem:[#allocation2 + $0x48] sm:$0xf] }
 0x1cd   : > { %v2793_v16 = vpop.permute.xlu1 %2792  ;;  %v2069_v44 = vrot.slane %v2067_v48, 4  ;;  %v6736_v1 = vor.u32 %v2076_v11, %v2073_v13  ;;  %v2068_v17 = vsel %vm6033_vm11, %v2059_v35, %v2067_v48  ;;  %v2388_v13 = vrot.slane %v6761_v7, 6  ;;  %v2608_v39 = vld [vmem:[#allocation2 + $0x44] sm:$0xf]  ;;  %v6772_v15 = vld [vmem:[#allocation2 + $0x88] sm:$0xf] }
 0x1ce   : > { %2894 = vst.msk [vmem:[#allocation3 + $0x1c] sm:$0xf] %vm2886_vm9, %v2793_v16  ;;  %v2791_v47 = vpop.permute.xlu0 %2790  ;;  %v1918_v25 = vsel %vm6033_vm11, %v1909_v9, %v6724_v26  ;;  %v2293_v16 = vld [vmem:[#allocation2 + $0x7c] sm:$0xf]  ;;  %v2380_v63 = vsel %vm6081_vm14, %v2378_v20, %v2379_v30  ;;  %v2436_v30 = vrot.slane %v6772_v15, 6 }
 0x1cf   : > { %2893 = vst.msk [vmem:[#allocation3 + $0x18] sm:$0xf] %vm2886_vm9, %v2791_v47  ;;  %3716 = vrot.lane.b32.xlu1 %v3637_v29, %s5365_s10  ;;  %v2078_v31 = vsel %vm6033_vm11, %v2069_v44, %v6736_v1  ;;  %v2382_v47 = vrot.slane %v2278_v46, 6  ;;  %v6795_v20 = vld [vmem:[#allocation2 + $0x88] sm:$0xf] }
 0x1d0   : > { %3714 = vrot.lane.b32.xlu0 %v3634_v19, %s5365_s10  ;;  %v6797_v61 = vld [vmem:[#allocation2 + $0x4c] sm:$0xf] }
 0x1d1   : > { %v2825_v56 = vpop.permute.xlu1 %2824  ;;  %v2383_v27 = vsel %vm6081_vm14, %v2381_v23, %v2382_v47 }
 0x1d2   : > { %2910 = vst.msk [vmem:[#allocation3 + $0x5c] sm:$0xf] %vm2886_vm9, %v2825_v56  ;;  %v2823_v40 = vpop.permute.xlu0 %2822  ;;  %v2385_v56 = vrot.slane %v2279_v32, 6 }
 0x1d3   : > { %2909 = vst.msk [vmem:[#allocation3 + $0x58] sm:$0xf] %vm2886_vm9, %v2823_v40  ;;  %2145 = vrot.lane.b32.xlu1 %v1898_v50, %s5361_s21  ;;  %v2427_v50 = vrot.slane %v2293_v16, 6  ;;  %v2295_v40 = vld [vmem:[#allocation2 + $0x84] sm:$0xf]  ;;  %v2432_v16 = vrot.slane %v2430_v54, 4 }
 0x1d4   : > { %2143 = vrot.lane.b32.xlu0 %v1888_v24, %s5361_s21  ;;  %v2387_v48 = vrot.slane %v2385_v56, 4  ;;  %v2433_v52 = vrot.slane %v2295_v40, 6 }
 0x1d5   : > { %v3342_v0 = vpop.permute.xlu1 %3341  ;;  %v2429_v33 = vrot.slane %v2427_v50, 4 }
 0x1d6   : > { %3445 = vst.msk [vmem:[#allocation3 + $0x14] sm:$0xf] %vm3439_vm10, %v3342_v0  ;;  %v3340_v22 = vpop.permute.xlu0 %3339  ;;  %v2428_v0 = vsel %vm6081_vm14, %v2426_v41, %v2427_v50  ;;  %v2435_v44 = vrot.slane %v2433_v52, 4  ;;  %v2713_v41 = vrot.slane %v6797_v61, 6 }
 0x1d7   : > { %3444 = vst.msk [vmem:[#allocation3 + $0x10] sm:$0xf] %vm3439_vm10, %v3340_v22  ;;  %2177 = vrot.lane.b32.xlu1 %v2058_v28, %s5361_s21  ;;  %v2431_v9 = vsel %vm6081_vm14, %v2429_v33, %v2430_v54  ;;  %v2707_v22 = vrot.slane %v2608_v39, 6  ;;  %v2937_v33 = vld [vmem:[#allocation2 + $0x48] sm:$0xf] }
 0x1d8   : > { %2175 = vrot.lane.b32.xlu0 %v2048_v10, %s5361_s21  ;;  %v2384_v10 = vrot.slane %v2382_v47, 4  ;;  %v2715_v34 = vrot.slane %v2713_v41, 4 }
 0x1d9   : > { %v3374_v29 = vpop.permute.xlu1 %3373  ;;  %v2709_v23 = vrot.slane %v2707_v22, 4 }
 0x1da   : > { %3461 = vst.msk [vmem:[#allocation3 + $0x54] sm:$0xf] %vm3439_vm10, %v3374_v29  ;;  %v3372_v19 = vpop.permute.xlu0 %3371  ;;  %v2609_v29 = vld [vmem:[#allocation2 + $0x48] sm:$0xf]  ;;  %v2386_v46 = vsel %vm6081_vm14, %v2384_v10, %v2385_v56  ;;  %v3103_v10 = vshrl.u32 %v2937_v33, 16 }
 0x1db   : > { %3460 = vst.msk [vmem:[#allocation3 + $0x50] sm:$0xf] %vm3439_vm10, %v3372_v19  ;;  %2149 = vrot.lane.b32.xlu1 %v1918_v25, %s5361_s21  ;;  %v2389_v25 = vsel %vm6081_vm14, %v2387_v48, %v2388_v13  ;;  %v2936_v19 = vld [vmem:[#allocation2 + $0x44] sm:$0xf]  ;;  %v2710_v47 = vrot.slane %v2609_v29, 6 }
 0x1dc   : > { %2147 = vrot.lane.b32.xlu0 %v1908_v21, %s5361_s21  ;;  %v2624_v21 = vld [vmem:[#allocation2 + $0x84] sm:$0xf]  ;;  %v3093_v32 = vshrl.u32 %v2936_v19, 16  ;;  %v3096_v54 = vshll.u32 %v2936_v19, 16  ;;  %v6814_v48 = vld [vmem:[#allocation2 + $0x50] sm:$0xf] }
 0x1dd   : > { %v3346_v51 = vpop.permute.xlu1 %3345  ;;  %v2755_v50 = vrot.slane %v2624_v21, 6  ;;  %v2711_v40 = vsel %vm6081_vm14, %v2709_v23, %v2710_v47  ;;  %v6828_v19 = vld [vmem:[#allocation2 + $0x90] sm:$0xf]  ;;  %v2938_v23 = vld [vmem:[#allocation2 + $0x4c] sm:$0xf] }
 0x1de   : > { %3447 = vst.msk [vmem:[#allocation3 + $0x1c] sm:$0xf] %vm3439_vm10, %v3346_v51  ;;  %v3344_v62 = vpop.permute.xlu0 %3343  ;;  %v2437_v51 = vsel %vm6081_vm14, %v2435_v44, %v2436_v30  ;;  %v3095_v39 = vrot.slane %v3093_v32, 6 }
 0x1df   : > { %3446 = vst.msk [vmem:[#allocation3 + $0x18] sm:$0xf] %vm3439_vm10, %v3344_v62  ;;  %2181 = vrot.lane.b32.xlu1 %v2078_v31, %s5361_s21  ;;  %v2757_v2 = vrot.slane %v2755_v50, 4 }
 0x1e0   : > { %2179 = vrot.lane.b32.xlu0 %v2068_v17, %s5361_s21  ;;  %v2706_v17 = vrot.slane %v2704_v14, 4  ;;  %v2758_v14 = vrot.slane %v6795_v20, 6  ;;  %v3105_v20 = vrot.slane %v3103_v10, 6 }
 0x1e1   : > { %v3378_v24 = vpop.permute.xlu1 %3377 }
 0x1e2   : > { %3463 = vst.msk [vmem:[#allocation3 + $0x5c] sm:$0xf] %vm3439_vm10, %v3378_v24  ;;  %v3376_v28 = vpop.permute.xlu0 %3375 }
 0x1e3   : > { %3462 = vst.msk [vmem:[#allocation3 + $0x58] sm:$0xf] %vm3439_vm10, %v3376_v28  ;;  %2476 = vrot.lane.b32.xlu1 %v2383_v27, %s5362_s22  ;;  %v2434_v27 = vsel %vm6081_vm14, %v2432_v16, %v2433_v52  ;;  %v2708_v28 = vsel %vm6081_vm14, %v2706_v17, %v2707_v22  ;;  %v6816_v52 = vld [vmem:[#allocation2 + $0x8c] sm:$0xf]  ;;  %v2953_v22 = vld [vmem:[#allocation2 + $0x88] sm:$0xf] }
 0x1e4   : > { %2474 = vrot.lane.b32.xlu0 %v2380_v63, %s5362_s22  ;;  %v2952_v63 = vld [vmem:[#allocation2 + $0x84] sm:$0xf]  ;;  %v2712_v16 = vrot.slane %v2710_v47, 4  ;;  %v3113_v47 = vshrl.u32 %v2938_v23, 16 }
 0x1e5   : > { %v3673_v11 = vpop.permute.xlu1 %3672  ;;  %v3256_v21 = vshll.u32 %v2952_v63, 16 }
 0x1e6   : > { %3776 = vst.msk [vmem:[#allocation3 + $0x14] sm:$0xf] %vm3770_vm12, %v3673_v11  ;;  %v3671_v4 = vpop.permute.xlu0 %3670 }
 0x1e7   : > { %3775 = vst.msk [vmem:[#allocation3 + $0x10] sm:$0xf] %vm3770_vm12, %v3671_v4  ;;  %2508 = vrot.lane.b32.xlu1 %v2431_v9, %s5362_s22  ;;  %v2754_v9 = vrot.slane %v2752_v57, 4  ;;  %v3106_v4 = vshll.u32 %v2937_v33, 16  ;;  %v2716_v57 = vrot.slane %v6814_v48, 6  ;;  %v3258_v33 = vrot.slane %v3256_v21, 7 }
 0x1e8   : > { %2506 = vrot.lane.b32.xlu0 %v2428_v0, %s5362_s22  ;;  %v3098_v0 = vrot.slane %v3096_v54, 7  ;;  %v3263_v54 = vshrl.u32 %v2953_v22, 16  ;;  %v3115_v21 = vrot.slane %v3113_v47, 6 }
 0x1e9   : > { %v3705_v35 = vpop.permute.xlu1 %3704  ;;  %v3108_v61 = vrot.slane %v3106_v4, 7 }
 0x1ea   : > { %3792 = vst.msk [vmem:[#allocation3 + $0x54] sm:$0xf] %vm3770_vm12, %v3705_v35  ;;  %v3703_v31 = vpop.permute.xlu0 %3702  ;;  %v2759_v35 = vsel %vm6081_vm14, %v2757_v2, %v2758_v14  ;;  %v6831_v17 = vor.u32 %v3098_v0, %v3095_v39  ;;  %v2764_v2 = vrot.slane %v6828_v19, 6 }
 0x1eb   : > { %3791 = vst.msk [vmem:[#allocation3 + $0x50] sm:$0xf] %vm3770_vm12, %v3703_v31  ;;  %2480 = vrot.lane.b32.xlu1 %v2389_v25, %s5362_s22  ;;  %v3253_v25 = vshrl.u32 %v2952_v63, 16  ;;  %v2761_v31 = vrot.slane %v6816_v52, 6  ;;  %v2760_v52 = vrot.slane %v2758_v14, 4  ;;  %v6847_v4 = vor.u32 %v3108_v61, %v3105_v20 }
 0x1ec   : > { %2478 = vrot.lane.b32.xlu0 %v2386_v46, %s5362_s22  ;;  %v2756_v46 = vsel %vm6081_vm14, %v2754_v9, %v2755_v50  ;;  %v3116_v50 = vshll.u32 %v2938_v23, 16  ;;  %v2714_v9 = vsel %vm6081_vm14, %v2712_v16, %v2713_v41  ;;  %v3101_v39 = vrot.slane %v6831_v17, 4  ;;  %v2955_v20 = vld [vmem:[#allocation2 + $0x90] sm:$0xf] }
 0x1ed   : > { %v3677_v62 = vpop.permute.xlu1 %3676  ;;  %v3255_v32 = vrot.slane %v3253_v25, 6  ;;  %v2763_v63 = vrot.slane %v2761_v31, 4  ;;  %v2762_v23 = vsel %vm6081_vm14, %v2760_v52, %v2761_v31  ;;  %v3283_v47 = vshrl.u32 %v2955_v20, 16 }
 0x1ee   : > { %3778 = vst.msk [vmem:[#allocation3 + $0x1c] sm:$0xf] %vm3770_vm12, %v3677_v62  ;;  %v3675_v56 = vpop.permute.xlu0 %3674  ;;  %v5120_v24 = vld [vmem:[#allocation3 + $0x10] sm:$0xff]  }
 0x1ef   : > { %3777 = vst.msk [vmem:[#allocation3 + $0x18] sm:$0xf] %vm3770_vm12, %v3675_v56  ;;  %2512 = vrot.lane.b32.xlu1 %v2437_v51, %s5362_s22  ;;  %5006 = vmatprep.mubr.msk.bf16.mxu0 %vm3960_vm13, %v5120_v24  ;;  %v3266_v56 = vshll.u32 %v2953_v22, 16  ;;  %v2717_v24 = vsel %vm6081_vm14, %v2715_v34, %v2716_v57  ;;  %v3259_v25 = vor.u32 %v3258_v33, %v3255_v32  ;;  %v3118_v34 = vrot.slane %v3116_v50, 7 }
 0x1f0   : > { %2510 = vrot.lane.b32.xlu0 %v2434_v27, %s5362_s22  ;;  %v2765_v22 = vsel %vm6081_vm14, %v2763_v63, %v2764_v2  ;;  %v3110_v32 = vsel %vm6140_vm2, %v3101_v39, %v6847_v4  ;;  %v3286_v50 = vshll.u32 %v2955_v20, 16 }
 0x1f1   : > { %v3709_v11 = vpop.permute.xlu1 %3708  ;;  %v3119_v33 = vor.u32 %v3118_v34, %v3115_v21 }
 0x1f2   : > { %3794 = vst.msk [vmem:[#allocation3 + $0x5c] sm:$0xf] %vm3770_vm12, %v3709_v11  ;;  %v3707_v44 = vpop.permute.xlu0 %3706  ;;  %v5121_v29 = vld [vmem:[#allocation3 + $0x50] sm:$0xff]  }
 0x1f3   : > { %3793 = vst.msk [vmem:[#allocation3 + $0x58] sm:$0xf] %vm3770_vm12, %v3707_v44  ;;  %2804 = vrot.lane.b32.xlu1 %v2711_v40, %s5363_s24  ;;  %5022 = vmatprep.mubr.msk.bf16.mxu1 %vm3960_vm13, %v5121_v29  ;;  %v2939_v40 = vld [vmem:[#allocation2 + $0x50] sm:$0xf]  ;;  %v2954_v11 = vld [vmem:[#allocation2 + $0x8c] sm:$0xf] }
 0x1f4   : > { %2802 = vrot.lane.b32.xlu0 %v2708_v28, %s5363_s24  ;;  %v3265_v44 = vrot.slane %v3263_v54, 6  ;;  %v3268_v29 = vrot.slane %v3266_v56, 7  ;;  %v3123_v41 = vshrl.u32 %v2939_v40, 16  ;;  %v3126_v14 = vshll.u32 %v2939_v40, 16 }
 0x1f5   : > { %v2138_v51 = vpop.permute.xlu1 %2137  ;;  %v3251_v40 = vrot.slane %v6633_v55, 4  ;;  %v3121_v52 = vrot.slane %v3119_v33, 4 }
 0x1f6   : > { %2237 = vst.msk [vmem:[#allocation3 + $0x24] sm:$0xf] %vm2227_vm7, %v2138_v51  ;;  %v2136_v62 = vpop.permute.xlu0 %2135  ;;  %v5122_v27 = vld [vmem:[#allocation3 + $0x18] sm:$0xff]   ;;  %v3091_v51 = vrot.slane %v6621_v5, 4  ;;  %v3125_v54 = vrot.slane %v3123_v41, 6  ;;  %v3128_v56 = vrot.slane %v3126_v14, 7 }
 0x1f7   : > { %2236 = vst.msk [vmem:[#allocation3 + $0x20] sm:$0xf] %vm2227_vm7, %v2136_v62  ;;  %2836 = vrot.lane.b32.xlu1 %v2759_v35, %s5363_s24  ;;  %5007 = vmatmul.mubr.msk.bf16.gmra.mxu0 %vm3960_vm13, %v5122_v27  ;;  %v3273_v35 = vshrl.u32 %v2954_v11, 16  ;;  %v3261_v62 = vrot.slane %v3259_v25, 4  ;;  %v3269_v27 = vor.u32 %v3268_v29, %v3265_v44  ;;  %v3260_v55 = vsel %vm6140_vm2, %v3251_v40, %v3259_v25  ;;  %v3489_v29 = vld [vmem:[#allocation2 + $0x44] sm:$0xf] }
 0x1f8   : > { %2834 = vrot.lane.b32.xlu0 %v2756_v46, %s5363_s24  ;;  %v3276_v46 = vshll.u32 %v2954_v11, 16  ;;  %v3100_v63 = vsel %vm6140_vm2, %v3091_v51, %v6831_v17  ;;  %v6877_v39 = vor.u32 %v3128_v56, %v3125_v54  ;;  %v3288_v17 = vrot.slane %v3286_v50, 7  ;;  %v1728_v51 = vld [vmem:[#allocation2 + $0x4c] sm:$0xf] }
 0x1f9   : > { %v2170_v28 = vpop.permute.xlu1 %2169  ;;  %v3275_v5 = vrot.slane %v3273_v35, 6  ;;  %v3111_v44 = vrot.slane %v6847_v4, 4  ;;  %v3591_v25 = vrot.slane %v3489_v29, 7  ;;  %v3271_v35 = vrot.slane %v3269_v27, 4  ;;  %v1744_v40 = vld [vmem:[#allocation2 + $0x8c] sm:$0xf] }
 0x1fa   : > { %2253 = vst.msk [vmem:[#allocation3 + $0x64] sm:$0xf] %vm2227_vm7, %v2170_v28  ;;  %v2168_v0 = vpop.permute.xlu0 %2167  ;;  %v5123_v10 = vld [vmem:[#allocation3 + $0x58] sm:$0xff]   ;;  %v3278_v31 = vrot.slane %v3276_v46, 7  ;;  %v3130_v34 = vsel %vm6140_vm2, %v3121_v52, %v6877_v39  ;;  %v3490_v46 = vld [vmem:[#allocation2 + $0x48] sm:$0xf] }
 0x1fb   : > { %2252 = vst.msk [vmem:[#allocation3 + $0x60] sm:$0xf] %vm2227_vm7, %v2168_v0  ;;  %2808 = vrot.lane.b32.xlu1 %v2717_v24, %s5363_s24  ;;  %5023 = vmatmul.mubr.msk.bf16.vlgmr.msra.gmra.mxu1 %vm3960_vm13, %v5123_v10  ;;  %v3285_v0 = vrot.slane %v3283_v47, 6  ;;  %v3120_v4 = vsel %vm6140_vm2, %v3111_v44, %v3119_v33  ;;  %v3590_v56 = vrot.slane %v3588_v12, 4  ;;  %v1924_v47 = vshll.u32 %v1728_v51, 16 }
 0x1fc   : > { %2806 = vrot.lane.b32.xlu0 %v2714_v9, %s5363_s24  ;;  %v3270_v9 = vsel %vm6140_vm2, %v3261_v62, %v3269_v27  ;;  %v3279_v11 = vor.u32 %v3278_v31, %v3275_v5  ;;  %v6900_v27 = vld [vmem:[#allocation2 + $0x4c] sm:$0xf]  ;;  %v3506_v5 = vld [vmem:[#allocation2 + $0x88] sm:$0xf]  ;;  %v1921_v31 = vshrl.u32 %v1728_v51, 16 }
 0x1fd   : > { %v2142_v16 = vpop.permute.xlu1 %2141  ;;  %v6889_v14 = vor.u32 %v3288_v17, %v3285_v0  ;;  %v6917_v0 = vld [vmem:[#allocation2 + $0x50] sm:$0xf]  ;;  %v3507_v17 = vld [vmem:[#allocation2 + $0x8c] sm:$0xf] }
 0x1fe   : > { %2239 = vst.msk [vmem:[#allocation3 + $0x2c] sm:$0xf] %vm2227_vm7, %v2142_v16  ;;  %v2140_v61 = vpop.permute.xlu0 %2139  ;;  %v3281_v41 = vrot.slane %v3279_v11, 4  ;;  %v3505_v16 = vld [vmem:[#allocation2 + $0x84] sm:$0xf]  ;;  %v3280_v54 = vsel %vm6140_vm2, %v3271_v35, %v3279_v11  ;;  %v3592_v11 = vsel %vm6180_vm5, %v3590_v56, %v3591_v25 }
 0x1ff   : > { %2238 = vst.msk [vmem:[#allocation3 + $0x28] sm:$0xf] %vm2227_vm7, %v2140_v61  ;;  %2840 = vrot.lane.b32.xlu1 %v2765_v22, %s5363_s24  ;;  %v3593_v61 = vrot.slane %v3591_v25, 4  ;;  %v3639_v62 = vrot.slane %v3505_v16, 7  ;;  %v3600_v25 = vrot.slane %v6917_v0, 7 }
 0x200   : > { %2838 = vrot.lane.b32.xlu0 %v2762_v23, %s5363_s24  ;;  %v3290_v20 = vsel %vm6140_vm2, %v3281_v41, %v6889_v14  ;;  %v2084_v41 = vshll.u32 %v1744_v40, 16  ;;  %v1730_v35 = vld [vmem:[#allocation2 + $0x54] sm:$0xf]  ;;  %v6928_v51 = vld [vmem:[#allocation2 + $0x90] sm:$0xf] }
 0x201   : > { %v2174_v24 = vpop.permute.xlu1 %2173  ;;  %v3641_v12 = vrot.slane %v3639_v62, 4 }
 0x202   : > { %2255 = vst.msk [vmem:[#allocation3 + $0x6c] sm:$0xf] %vm2227_vm7, %v2174_v24  ;;  %v2172_v28 = vpop.permute.xlu0 %2171  ;;  %v3597_v24 = vrot.slane %v6900_v27, 7  ;;  %v2086_v56 = vrot.slane %v2084_v41, 6 }
 0x203   : > { %2254 = vst.msk [vmem:[#allocation3 + $0x68] sm:$0xf] %vm2227_vm7, %v2172_v28  ;;  %3357 = vrot.lane.b32.xlu1 %v3110_v32, %s5364_s6  ;;  %v3594_v32 = vrot.slane %v3490_v46, 7  ;;  %v3642_v28 = vrot.slane %v3506_v5, 7 }
 0x204   : > { %3355 = vrot.lane.b32.xlu0 %v3100_v63, %s5364_s6  ;;  %v1729_v63 = vld [vmem:[#allocation2 + $0x50] sm:$0xf]  ;;  %v3599_v60 = vrot.slane %v3597_v24, 4 }
 0x205   : > { %v2469_v10 = vpop.permute.xlu1 %2468  ;;  %v3595_v38 = vsel %vm6180_vm5, %v3593_v61, %v3594_v32  ;;  %v1931_v29 = vshrl.u32 %v1729_v63, 16 }
 0x206   : > { %2568 = vst.msk [vmem:[#allocation3 + $0x24] sm:$0xf] %vm2558_vm8, %v2469_v10  ;;  %v2467_v21 = vpop.permute.xlu0 %2466  ;;  %v1923_v10 = vrot.slane %v1921_v31, 5 }
 0x207   : > { %2567 = vst.msk [vmem:[#allocation3 + $0x20] sm:$0xf] %vm2558_vm8, %v2467_v21  ;;  %3389 = vrot.lane.b32.xlu1 %v3270_v9, %s5364_s6  ;;  %v3638_v9 = vrot.slane %v3636_v49, 4  ;;  %v1934_v21 = vshll.u32 %v1729_v63, 16  ;;  %v3643_v49 = vsel %vm6180_vm5, %v3641_v12, %v3642_v28  ;;  %v1933_v27 = vrot.slane %v1931_v29, 5 }
 0x208   : > { %3387 = vrot.lane.b32.xlu0 %v3260_v55, %s5364_s6  ;;  %v1926_v55 = vrot.slane %v1924_v47, 6  ;;  %v1941_v47 = vshrl.u32 %v1730_v35, 16  ;;  %v3648_v63 = vrot.slane %v6928_v51, 7  ;;  %v3644_v12 = vrot.slane %v3642_v28, 4 }
 0x209   : > { %v2501_v22 = vpop.permute.xlu1 %2500  ;;  %v3640_v16 = vsel %vm6180_vm5, %v3638_v9, %v3639_v62  ;;  %v1746_v9 = vld [vmem:[#allocation2 + $0x94] sm:$0xf] }
 0x20a   : > { %2584 = vst.msk [vmem:[#allocation3 + $0x64] sm:$0xf] %vm2558_vm8, %v2501_v22  ;;  %v2499_v23 = vpop.permute.xlu0 %2498  ;;  %v3645_v22 = vrot.slane %v3507_v17, 7  ;;  %v1943_v29 = vrot.slane %v1941_v47, 5  ;;  %v2101_v28 = vshrl.u32 %v1746_v9, 16 }
 0x20b   : > { %2583 = vst.msk [vmem:[#allocation3 + $0x60] sm:$0xf] %vm2558_vm8, %v2499_v23  ;;  %3361 = vrot.lane.b32.xlu1 %v3130_v34, %s5364_s6  ;;  %v2081_v34 = vshrl.u32 %v1744_v40, 16  ;;  %v3596_v23 = vrot.slane %v3594_v32, 4  ;;  %v3601_v32 = vsel %vm6180_vm5, %v3599_v60, %v3600_v25 }
 0x20c   : > { %3359 = vrot.lane.b32.xlu0 %v3120_v4, %s5364_s6  ;;  %v1745_v4 = vld [vmem:[#allocation2 + $0x90] sm:$0xf]  ;;  %v3647_v62 = vrot.slane %v3645_v22, 4  ;;  %v3646_v60 = vsel %vm6180_vm5, %v3644_v12, %v3645_v22  ;;  %v2281_v12 = vld [vmem:[#allocation2 + $0x4c] sm:$0xf] }
 0x20d   : > { %v2473_v33 = vpop.permute.xlu1 %2472  ;;  %v2091_v5 = vshrl.u32 %v1745_v4, 16  ;;  %v2094_v31 = vshll.u32 %v1745_v4, 16  ;;  %v1747_v4 = vld [vmem:[#allocation2 + $0x98] sm:$0x3] }
 0x20e   : > { %2570 = vst.msk [vmem:[#allocation3 + $0x2c] sm:$0xf] %vm2558_vm8, %v2473_v33  ;;  %v2471_v50 = vpop.permute.xlu0 %2470  ;;  %v1936_v33 = vrot.slane %v1934_v21, 6 }
 0x20f   : > { %2569 = vst.msk [vmem:[#allocation3 + $0x28] sm:$0xf] %vm2558_vm8, %v2471_v50  ;;  %3393 = vrot.lane.b32.xlu1 %v3290_v20, %s5364_s6  ;;  %v1927_v20 = vor.u32 %v1926_v55, %v1923_v10  ;;  %v1944_v50 = vshll.u32 %v1730_v35, 16  ;;  %v2093_v55 = vrot.slane %v2091_v5, 5  ;;  %v2079_v5 = vrot.slane %v6736_v1, 4 }
 0x210   : > { %3391 = vrot.lane.b32.xlu0 %v3280_v54, %s5364_s6  ;;  %v2083_v54 = vrot.slane %v2081_v34, 5  ;;  %v1937_v17 = vor.u32 %v1936_v33, %v1933_v27  ;;  %v2104_v34 = vshll.u32 %v1746_v9, 16  ;;  %v2103_v27 = vrot.slane %v2101_v28, 5 }
 0x211   : > { %v2505_v52 = vpop.permute.xlu1 %2504  ;;  %v1946_v21 = vrot.slane %v1944_v50, 6  ;;  %v2111_v33 = vshrl.u32 %v1747_v4, 16 }
 0x212   : > { %2586 = vst.msk [vmem:[#allocation3 + $0x6c] sm:$0xf] %vm2558_vm8, %v2505_v52  ;;  %v2503_v44 = vpop.permute.xlu0 %2502  ;;  %v2087_v10 = vor.u32 %v2086_v56, %v2083_v54  ;;  %v2106_v22 = vrot.slane %v2104_v34, 6 }
 0x213   : > { %2585 = vst.msk [vmem:[#allocation3 + $0x68] sm:$0xf] %vm2558_vm8, %v2503_v44  ;;  %3688 = vrot.lane.b32.xlu1 %v3595_v38, %s5365_s10  ;;  %v3598_v38 = vsel %vm6180_vm5, %v3596_v23, %v3597_v24  ;;  %v2096_v44 = vrot.slane %v2094_v31, 6  ;;  %v3649_v24 = vsel %vm6180_vm5, %v3647_v62, %v3648_v63  ;;  %v2113_v62 = vrot.slane %v2111_v33, 5 }
 0x214   : > { %3686 = vrot.lane.b32.xlu0 %v3592_v11, %s5365_s10  ;;  %v1929_v11 = vrot.slane %v1927_v20, 4  ;;  %v2088_v1 = vsel %vm6033_vm11, %v2079_v5, %v2087_v10 }
 0x215   : > { %v2797_v46 = vpop.permute.xlu1 %2796  ;;  %v2097_v23 = vor.u32 %v2096_v44, %v2093_v55  ;;  %v2391_v44 = vrot.slane %v2281_v12, 6  ;;  %v2613_v12 = vld [vmem:[#allocation2 + $0x58] sm:$0xf] }
 0x216   : > { %2896 = vst.msk [vmem:[#allocation3 + $0x24] sm:$0xf] %vm2886_vm9, %v2797_v46  ;;  %v2795_v61 = vpop.permute.xlu0 %2794  ;;  %v1938_v46 = vsel %vm6033_vm11, %v1929_v11, %v1937_v17 }
 0x217   : > { %2895 = vst.msk [vmem:[#allocation3 + $0x20] sm:$0xf] %vm2886_vm9, %v2795_v61  ;;  %3720 = vrot.lane.b32.xlu1 %v3643_v49, %s5365_s10  ;;  %v1919_v49 = vrot.slane %v6724_v26, 4  ;;  %v1947_v61 = vor.u32 %v1946_v21, %v1943_v29  ;;  %v2114_v26 = vshll.u32 %v1747_v4, 16  ;;  %v2282_v21 = vld [vmem:[#allocation2 + $0x50] sm:$0xf] }
 0x218   : > { %3718 = vrot.lane.b32.xlu0 %v3640_v16, %s5365_s10  ;;  %v2089_v16 = vrot.slane %v2087_v10, 4  ;;  %v2099_v10 = vrot.slane %v2097_v23, 4  ;;  %v2393_v34 = vrot.slane %v2391_v44, 4 }
 0x219   : > { %v2829_v40 = vpop.permute.xlu1 %2828  ;;  %v1928_v56 = vsel %vm6033_vm11, %v1919_v49, %v1927_v20  ;;  %v1949_v50 = vrot.slane %v1947_v61, 4  ;;  %v1939_v20 = vrot.slane %v1937_v17, 4 }
 0x21a   : > { %2912 = vst.msk [vmem:[#allocation3 + $0x64] sm:$0xf] %vm2886_vm9, %v2829_v40  ;;  %v2827_v52 = vpop.permute.xlu0 %2826  ;;  %v2098_v47 = vsel %vm6033_vm11, %v2089_v16, %v2097_v23  ;;  %v2116_v40 = vrot.slane %v2114_v26, 6  ;;  %v2283_v16 = vld [vmem:[#allocation2 + $0x54] sm:$0xf] }
 0x21b   : > { %2911 = vst.msk [vmem:[#allocation3 + $0x60] sm:$0xf] %vm2886_vm9, %v2827_v52  ;;  %3692 = vrot.lane.b32.xlu1 %v3601_v32, %s5365_s10  ;;  %v2107_v32 = vor.u32 %v2106_v22, %v2103_v27  ;;  %v1958_v52 = vsel %vm6033_vm11, %v1949_v50, %v6208_v45  ;;  %v1948_v17 = vsel %vm6033_vm11, %v1939_v20, %v1947_v61  ;;  %v2397_v22 = vrot.slane %v2283_v16, 6  ;;  %v2299_v26 = vld [vmem:[#allocation2 + $0x94] sm:$0xf] }
 0x21c   : > { %3690 = vrot.lane.b32.xlu0 %v3598_v38, %s5365_s10  ;;  %v2117_v55 = vor.u32 %v2116_v40, %v2113_v62 }
 0x21d   : > { %v2801_v41 = vpop.permute.xlu1 %2800  ;;  %v2109_v11 = vrot.slane %v2107_v32, 4  ;;  %v2108_v4 = vsel %vm6033_vm11, %v2099_v10, %v2107_v32  ;;  %v2399_v5 = vrot.slane %v2397_v22, 4  ;;  %v2300_v32 = vld [vmem:[#allocation2 + $0x98] sm:$0x3]  ;;  %v2718_v10 = vrot.slane %v2716_v57, 4 }
 0x21e   : > { %2898 = vst.msk [vmem:[#allocation3 + $0x2c] sm:$0xf] %vm2886_vm9, %v2801_v41  ;;  %v2799_v35 = vpop.permute.xlu0 %2798  ;;  %v2394_v41 = vrot.slane %v2282_v21, 6  ;;  %v2448_v20 = vrot.slane %v2300_v32, 6  ;;  %v7024_v21 = vld [vmem:[#allocation2 + $0x98] sm:$0xf] }
 0x21f   : > { %2897 = vst.msk [vmem:[#allocation3 + $0x28] sm:$0xf] %vm2886_vm9, %v2799_v35  ;;  %3724 = vrot.lane.b32.xlu1 %v3649_v24, %s5365_s10  ;;  %v2297_v24 = vld [vmem:[#allocation2 + $0x8c] sm:$0xf]  ;;  %v2118_v45 = vsel %vm6033_vm11, %v2109_v11, %v2117_v55  ;;  %v2390_v35 = vrot.slane %v2388_v13, 4  ;;  %v2438_v13 = vrot.slane %v2436_v30, 4 }
 0x220   : > { %3722 = vrot.lane.b32.xlu0 %v3646_v60, %s5365_s10  ;;  %v2439_v60 = vrot.slane %v2297_v24, 6  ;;  %v2395_v61 = vsel %vm6081_vm14, %v2393_v34, %v2394_v41  ;;  %v2396_v30 = vrot.slane %v2394_v41, 4  ;;  %v2628_v55 = vld [vmem:[#allocation2 + $0x94] sm:$0xf]  ;;  %v7028_v34 = vld [vmem:[#allocation2 + $0x5c] sm:$0xf] }
 0x221   : > { %v2833_v54 = vpop.permute.xlu1 %2832  ;;  %v2392_v7 = vsel %vm6081_vm14, %v2390_v35, %v2391_v44  ;;  %v2767_v24 = vrot.slane %v2628_v55, 6  ;;  %v2941_v35 = vld [vmem:[#allocation2 + $0x58] sm:$0xf]  ;;  %v2956_v57 = vld [vmem:[#allocation2 + $0x94] sm:$0xf] }
 0x222   : > { %2914 = vst.msk [vmem:[#allocation3 + $0x6c] sm:$0xf] %vm2886_vm9, %v2833_v54  ;;  %v2831_v31 = vpop.permute.xlu0 %2830  ;;  %v2441_v27 = vrot.slane %v2439_v60, 4  ;;  %v2440_v15 = vsel %vm6081_vm14, %v2438_v13, %v2439_v60  ;;  %v3143_v13 = vshrl.u32 %v2941_v35, 16 }
 0x223   : > { %2913 = vst.msk [vmem:[#allocation3 + $0x68] sm:$0xf] %vm2886_vm9, %v2831_v31  ;;  %2153 = vrot.lane.b32.xlu1 %v1938_v46, %s5361_s21  ;;  %v2298_v46 = vld [vmem:[#allocation2 + $0x90] sm:$0xf]  ;;  %v2445_v31 = vrot.slane %v2299_v26, 6  ;;  %v2769_v16 = vrot.slane %v2767_v24, 4 }
 0x224   : > { %2151 = vrot.lane.b32.xlu0 %v1928_v56, %s5361_s21  ;;  %v2442_v43 = vrot.slane %v2298_v46, 6 }
 0x225   : > { %v3350_v38 = vpop.permute.xlu1 %3349 }
 0x226   : > { %3449 = vst.msk [vmem:[#allocation3 + $0x24] sm:$0xf] %vm3439_vm10, %v3350_v38  ;;  %v3348_v9 = vpop.permute.xlu0 %3347  ;;  %v2443_v56 = vsel %vm6081_vm14, %v2441_v27, %v2442_v43  ;;  %v2401_v38 = vsel %vm6081_vm14, %v2399_v5, %v2400_v18  ;;  %v2444_v11 = vrot.slane %v2442_v43, 4  ;;  %v7041_v27 = vld [vmem:[#allocation2 + $0x9c] sm:$0xf]  ;;  %v3293_v5 = vshrl.u32 %v2956_v57, 16 }
 0x227   : > { %3448 = vst.msk [vmem:[#allocation3 + $0x20] sm:$0xf] %vm3439_vm10, %v3348_v9  ;;  %2185 = vrot.lane.b32.xlu1 %v2098_v47, %s5361_s21  ;;  %v2612_v47 = vld [vmem:[#allocation2 + $0x54] sm:$0xf] }
 0x228   : > { %2183 = vrot.lane.b32.xlu0 %v2088_v1, %s5361_s21  ;;  %v2719_v40 = vrot.slane %v2612_v47, 6  ;;  %v2447_v1 = vrot.slane %v2445_v31, 4  ;;  %v2773_v47 = vrot.slane %v7041_v27, 6  ;;  %v3131_v27 = vrot.slane %v6877_v39, 4 }
 0x229   : > { %v3382_v29 = vpop.permute.xlu1 %3381 }
 0x22a   : > { %3465 = vst.msk [vmem:[#allocation3 + $0x64] sm:$0xf] %vm3439_vm10, %v3382_v29  ;;  %v3380_v28 = vpop.permute.xlu0 %3379  ;;  %v2940_v29 = vld [vmem:[#allocation2 + $0x54] sm:$0xf]  ;;  %v2721_v6 = vrot.slane %v2719_v40, 4  ;;  %v2449_v18 = vsel %vm6081_vm14, %v2447_v1, %v2448_v20  ;;  %v2720_v46 = vsel %vm6081_vm14, %v2718_v10, %v2719_v40 }
 0x22b   : > { %3464 = vst.msk [vmem:[#allocation3 + $0x60] sm:$0xf] %vm3439_vm10, %v3380_v28  ;;  %2157 = vrot.lane.b32.xlu1 %v1958_v52, %s5361_s21  ;;  %v2398_v52 = vsel %vm6081_vm14, %v2396_v30, %v2397_v22  ;;  %v3133_v41 = vshrl.u32 %v2940_v29, 16  ;;  %v3136_v60 = vshll.u32 %v2940_v29, 16  ;;  %v2766_v22 = vrot.slane %v2764_v2, 4 }
 0x22c   : > { %2155 = vrot.lane.b32.xlu0 %v1948_v17, %s5361_s21  ;;  %v2722_v17 = vrot.slane %v2613_v12, 6  ;;  %v2631_v40 = vld [vmem:[#allocation2 + $0xa0] sm:$0x3] }
 0x22d   : > { %v3354_v49 = vpop.permute.xlu1 %3353  ;;  %v2768_v32 = vsel %vm6081_vm14, %v2766_v22, %v2767_v24  ;;  %v2776_v10 = vrot.slane %v2631_v40, 6 }
 0x22e   : > { %3451 = vst.msk [vmem:[#allocation3 + $0x2c] sm:$0xf] %vm3439_vm10, %v3354_v49  ;;  %v3352_v23 = vpop.permute.xlu0 %3351  ;;  %v2723_v48 = vsel %vm6081_vm14, %v2721_v6, %v2722_v17 }
 0x22f   : > { %3450 = vst.msk [vmem:[#allocation3 + $0x28] sm:$0xf] %vm3439_vm10, %v3352_v23  ;;  %2189 = vrot.lane.b32.xlu1 %v2118_v45, %s5361_s21  ;;  %v2446_v45 = vsel %vm6081_vm14, %v2444_v11, %v2445_v31  ;;  %v2770_v23 = vrot.slane %v7024_v21, 6  ;;  %v3296_v31 = vshll.u32 %v2956_v57, 16 }
 0x230   : > { %2187 = vrot.lane.b32.xlu0 %v2108_v4, %s5361_s21  ;;  %s7208_s21 = scalar_lea.vmem [#allocation4], %s5046_s14 }
 0x231   : > { %v3386_v33 = vpop.permute.xlu1 %3385  ;;  %v2771_v19 = vsel %vm6081_vm14, %v2769_v16, %v2770_v23  ;;  %v3298_v11 = vrot.slane %v3296_v31, 7 }
 0x232   : > { %3467 = vst.msk [vmem:[#allocation3 + $0x6c] sm:$0xf] %vm3439_vm10, %v3386_v33  ;;  %v3384_v54 = vpop.permute.xlu0 %3383  ;;  %v3135_v33 = vrot.slane %v3133_v41, 6 }
 0x233   : > { %3466 = vst.msk [vmem:[#allocation3 + $0x68] sm:$0xf] %vm3439_vm10, %v3384_v54  ;;  %2484 = vrot.lane.b32.xlu1 %v2395_v61, %s5362_s22  ;;  %v2725_v61 = vrot.slane %v7028_v34, 6 }
 0x234   : > { %2482 = vrot.lane.b32.xlu0 %v2392_v7, %s5362_s22  ;;  %v3138_v7 = vrot.slane %v3136_v60, 7 }
 0x235   : > { %v3681_v50 = vpop.permute.xlu1 %3680  ;;  %v2727_v2 = vrot.slane %v2725_v61, 4 }
 0x236   : > { %3780 = vst.msk [vmem:[#allocation3 + $0x24] sm:$0xf] %vm3770_vm12, %v3681_v50  ;;  %v3679_v62 = vpop.permute.xlu0 %3678  ;;  %v2957_v50 = vld [vmem:[#allocation2 + $0x98] sm:$0xf]  ;;  %v3139_v12 = vor.u32 %v3138_v7, %v3135_v33 }
 0x237   : > { %3779 = vst.msk [vmem:[#allocation3 + $0x20] sm:$0xf] %vm3770_vm12, %v3679_v62  ;;  %2516 = vrot.lane.b32.xlu1 %v2443_v56, %s5362_s22  ;;  %v3146_v56 = vshll.u32 %v2941_v35, 16  ;;  %v2724_v62 = vrot.slane %v2722_v17, 4  ;;  %v3303_v55 = vshrl.u32 %v2957_v50, 16  ;;  %v2729_v17 = vsel %vm6081_vm14, %v2727_v2, %v2728_v3 }
 0x238   : > { %2514 = vrot.lane.b32.xlu0 %v2440_v15, %s5362_s22  ;;  %v2942_v15 = vld [vmem:[#allocation2 + $0x5c] sm:$0xf]  ;;  %v3141_v60 = vrot.slane %v3139_v12, 4  ;;  %v3140_v31 = vsel %vm6140_vm2, %v3131_v27, %v3139_v12 }
 0x239   : > { %v3713_v9 = vpop.permute.xlu1 %3712  ;;  %v3153_v29 = vshrl.u32 %v2942_v15, 16  ;;  %v3156_v6 = vshll.u32 %v2942_v15, 16  ;;  %v2726_v24 = vsel %vm6081_vm14, %v2724_v62, %v2725_v61  ;;  %v3305_v59 = vrot.slane %v3303_v55, 6 }
 0x23a   : > { %3796 = vst.msk [vmem:[#allocation3 + $0x64] sm:$0xf] %vm3770_vm12, %v3713_v9  ;;  %v3711_v44 = vpop.permute.xlu0 %3710  ;;  %v3148_v9 = vrot.slane %v3146_v56, 7 }
 0x23b   : > { %3795 = vst.msk [vmem:[#allocation3 + $0x60] sm:$0xf] %vm3770_vm12, %v3711_v44  ;;  %2488 = vrot.lane.b32.xlu1 %v2401_v38, %s5362_s22  ;;  %v3145_v38 = vrot.slane %v3143_v13, 6  ;;  %v3306_v44 = vshll.u32 %v2957_v50, 16  ;;  %v3155_v35 = vrot.slane %v3153_v29, 6 }
 0x23c   : > { %2486 = vrot.lane.b32.xlu0 %v2398_v52, %s5362_s22  ;;  %v3295_v52 = vrot.slane %v3293_v5, 6  ;;  %v3494_v29 = vld [vmem:[#allocation2 + $0x58] sm:$0xf] }
 0x23d   : > { %v3685_v28 = vpop.permute.xlu1 %3684  ;;  %v3308_v3 = vrot.slane %v3306_v44, 7 }
 0x23e   : > { %3782 = vst.msk [vmem:[#allocation3 + $0x2c] sm:$0xf] %vm3770_vm12, %v3685_v28  ;;  %v3683_v49 = vpop.permute.xlu0 %3682  ;;  %v5124_v4 = vld [vmem:[#allocation3 + $0x20] sm:$0xff]   ;;  %v2772_v28 = vrot.slane %v2770_v23, 4 }
 0x23f   : > { %3781 = vst.msk [vmem:[#allocation3 + $0x28] sm:$0xf] %vm3770_vm12, %v3683_v49  ;;  %2520 = vrot.lane.b32.xlu1 %v2449_v18, %s5362_s22  ;;  %5010 = vmatprep.mubr.msk.bf16.mxu0 %vm3960_vm13, %v5124_v4  ;;  %v2775_v18 = vrot.slane %v2773_v47, 4  ;;  %v3149_v49 = vor.u32 %v3148_v9, %v3145_v38  ;;  %v3299_v4 = vor.u32 %v3298_v11, %v3295_v52  ;;  %v3493_v38 = vld [vmem:[#allocation2 + $0x54] sm:$0xf] }
 0x240   : > { %2518 = vrot.lane.b32.xlu0 %v2446_v45, %s5362_s22  ;;  %v2958_v45 = vld [vmem:[#allocation2 + $0x9c] sm:$0xf]  ;;  %v2774_v61 = vsel %vm6081_vm14, %v2772_v28, %v2773_v47  ;;  %v3309_v13 = vor.u32 %v3308_v3, %v3305_v59  ;;  %v3603_v52 = vrot.slane %v3493_v38, 7  ;;  %s5049_s22 = smul.u32 2304, %s5348_s18 }
 0x241   : > { %v3717_v43 = vpop.permute.xlu1 %3716  ;;  %v2777_v57 = vsel %vm6081_vm14, %v2775_v18, %v2776_v10  ;;  %v3316_v16 = vshll.u32 %v2958_v45, 16  ;;  %v3150_v33 = vsel %vm6140_vm2, %v3141_v60, %v3149_v49  ;;  %v3301_v7 = vrot.slane %v3299_v4, 4 }
 0x242   : > { %3798 = vst.msk [vmem:[#allocation3 + $0x6c] sm:$0xf] %vm3770_vm12, %v3717_v43  ;;  %v3715_v26 = vpop.permute.xlu0 %3714  ;;  %v5125_v54 = vld [vmem:[#allocation3 + $0x60] sm:$0xff]   ;;  %v2959_v43 = vld [vmem:[#allocation2 + $0xa0] sm:$0x7]  ;;  %v3151_v40 = vrot.slane %v3149_v49, 4  ;;  %s7383_s29 = scalar_lea.hbm %s7439_s4, %s5049_s22 }
 0x243   : > { %3797 = vst.msk [vmem:[#allocation3 + $0x68] sm:$0xf] %vm3770_vm12, %v3715_v26  ;;  %2812 = vrot.lane.b32.xlu1 %v2723_v48, %s5363_s24  ;;  %5026 = vmatprep.mubr.msk.bf16.mxu1 %vm3960_vm13, %v5125_v54  ;;  %v3158_v48 = vrot.slane %v3156_v6, 7  ;;  %v3318_v54 = vrot.slane %v3316_v16, 7  ;;  %v3323_v56 = vshrl.u32 %v2959_v43, 16  ;;  %v3326_v39 = vshll.u32 %v2959_v43, 16 }
 0x244   : > { %2810 = vrot.lane.b32.xlu0 %v2720_v46, %s5363_s24  ;;  %v3313_v46 = vshrl.u32 %v2958_v45, 16  ;;  %v3310_v47 = vsel %vm6140_vm2, %v3301_v7, %v3309_v13  ;;  %v3311_v44 = vrot.slane %v3309_v13, 4  ;;  %v3509_v6 = vld [vmem:[#allocation2 + $0x94] sm:$0xf]  ;;  %v3605_v18 = vrot.slane %v3603_v52, 4 }
 0x245   : > { %v2146_v30 = vpop.permute.xlu1 %2145  ;;  %v3159_v26 = vor.u32 %v3158_v48, %v3155_v35  ;;  %v3606_v10 = vrot.slane %v3494_v29, 7  ;;  %v3602_v45 = vrot.slane %v3600_v25, 4  ;;  %v3650_v25 = vrot.slane %v3648_v63, 4  ;;  %v3511_v35 = vld [vmem:[#allocation2 + $0x9c] sm:$0xf] }
 0x246   : > { %2241 = vst.msk [vmem:[#allocation3 + $0x34] sm:$0xf] %vm2227_vm7, %v2146_v30  ;;  %v2144_v1 = vpop.permute.xlu0 %2143  ;;  %v5126_v20 = vld [vmem:[#allocation3 + $0x28] sm:$0xff]   ;;  %v3315_v37 = vrot.slane %v3313_v46, 6  ;;  %v3325_v30 = vrot.slane %v3323_v56, 6  ;;  %v3657_v16 = vrot.slane %v3511_v35, 7 }
 0x247   : > { %2240 = vst.msk [vmem:[#allocation3 + $0x30] sm:$0xf] %vm2227_vm7, %v2144_v1  ;;  %2844 = vrot.lane.b32.xlu1 %v2771_v19, %s5363_s24  ;;  %5011 = vmatmul.mubr.msk.bf16.gmra.mxu0 %vm3960_vm13, %v5126_v20  ;;  %v3291_v19 = vrot.slane %v6889_v14, 4  ;;  %v3161_v50 = vrot.slane %v3159_v26, 4  ;;  %v3160_v55 = vsel %vm6140_vm2, %v3151_v40, %v3159_v26  ;;  %v3607_v49 = vsel %vm6180_vm5, %v3605_v18, %v3606_v10 }
 0x248   : > { %2842 = vrot.lane.b32.xlu0 %v2768_v32, %s5363_s24  ;;  %v3319_v15 = vor.u32 %v3318_v54, %v3315_v37  ;;  %v3328_v32 = vrot.slane %v3326_v39, 7  ;;  %v3604_v0 = vsel %vm6180_vm5, %v3602_v45, %v3603_v52  ;;  %v3608_v63 = vrot.slane %v3606_v10, 4 }
 0x249   : > { %v2178_v21 = vpop.permute.xlu1 %2177  ;;  %v3300_v14 = vsel %vm6140_vm2, %v3291_v19, %v3299_v4  ;;  %v3170_v20 = vsel %vm6140_vm2, %v3161_v50, %v6356_v53 }
 0x24a   : > { %2257 = vst.msk [vmem:[#allocation3 + $0x74] sm:$0xf] %vm2227_vm7, %v2178_v21  ;;  %v2176_v34 = vpop.permute.xlu0 %2175  ;;  %v5127_v41 = vld [vmem:[#allocation3 + $0x68] sm:$0xff]   ;;  %v3321_v12 = vrot.slane %v3319_v15, 4  ;;  %v3329_v9 = vor.u32 %v3328_v32, %v3325_v30  ;;  %v3651_v21 = vrot.slane %v3509_v6, 7  ;;  %v3320_v28 = vsel %vm6140_vm2, %v3311_v44, %v3319_v15 }
 0x24b   : > { %2256 = vst.msk [vmem:[#allocation3 + $0x70] sm:$0xf] %vm2227_vm7, %v2176_v34  ;;  %2816 = vrot.lane.b32.xlu1 %v2729_v17, %s5363_s24  ;;  %5027 = vmatmul.mubr.msk.bf16.gmra.mxu1 %vm3960_vm13, %v5127_v41  ;;  %v3510_v34 = vld [vmem:[#allocation2 + $0x98] sm:$0xf]  ;;  %v3495_v41 = vld [vmem:[#allocation2 + $0x5c] sm:$0xf] }
 0x24c   : > { %2814 = vrot.lane.b32.xlu0 %v2726_v24, %s5363_s24  ;;  %v3330_v53 = vsel %vm6140_vm2, %v3321_v12, %v3329_v9  ;;  %v3653_v4 = vrot.slane %v3651_v21, 4  ;;  %v3654_v42 = vrot.slane %v3510_v34, 7  ;;  %v3609_v59 = vrot.slane %v3495_v41, 7 }
 0x24d   : > { %v2150_v23 = vpop.permute.xlu1 %2149  ;;  %v3652_v51 = vsel %vm6180_vm5, %v3650_v25, %v3651_v21 }
 0x24e   : > { %2243 = vst.msk [vmem:[#allocation3 + $0x3c] sm:$0xf] %vm2227_vm7, %v2150_v23  ;;  %v2148_v22 = vpop.permute.xlu0 %2147  ;;  %v3611_v46 = vrot.slane %v3609_v59, 4  ;;  %v3610_v13 = vsel %vm6180_vm5, %v3608_v63, %v3609_v59  ;;  %v3656_v26 = vrot.slane %v3654_v42, 4 }
 0x24f   : > { %2242 = vst.msk [vmem:[#allocation3 + $0x38] sm:$0xf] %vm2227_vm7, %v2148_v22  ;;  %2848 = vrot.lane.b32.xlu1 %v2777_v57, %s5363_s24  ;;  %v3655_v57 = vsel %vm6180_vm5, %v3653_v4, %v3654_v42  ;;  %v3659_v22 = vrot.slane %v3657_v16, 4 }
 0x250   : > { %2846 = vrot.lane.b32.xlu0 %v2774_v61, %s5363_s24  ;;  %v3512_v61 = vld [vmem:[#allocation2 + $0xa0] sm:$0x7]  ;;  %v3613_v43 = vsel %vm6180_vm5, %v3611_v46, %v3612_v58  ;;  %v3658_v54 = vsel %vm6180_vm5, %v3656_v26, %v3657_v16  ;;  %s4609_s24 = sshll.u32 %s7208_s21, 4  ;;  %s7378_s24 = int_to_ptr.vmem [resolvable:$true] %s4609_s24 }
 0x251   : > { %v2182_v5 = vpop.permute.xlu1 %2181  ;;  %s5280_s5 = scalar_lea.vmem %s7378_s24, 2304 }
 0x252   : > { %2259 = vst.msk [vmem:[#allocation3 + $0x7c] sm:$0xf] %vm2227_vm7, %v2182_v5  ;;  %v2180_v2 = vpop.permute.xlu0 %2179  ;;  %p5281_p12 = scmp.ne.s32.totalorder %s7378_s24, %s5280_s5 }
 0x253   : > { %2258 = vst.msk [vmem:[#allocation3 + $0x78] sm:$0xf] %vm2227_vm7, %v2180_v2  ;;  %3365 = vrot.lane.b32.xlu1 %v3150_v33, %s5364_s6  ;;  %v3660_v33 = vrot.slane %v3512_v61, 7 }
 0x254   : > { %3363 = vrot.lane.b32.xlu0 %v3140_v31, %s5364_s6  ;;  %v7156_v31 = vld [vmem:[%s7438_s3] ss:$0 sm:$0xff]  ;;  %p5282_p13 = pnand %p5281_p12, %p5433_p4 }
 0x255   : > { %v2477_v62 = vpop.permute.xlu1 %2476  ;;  %v3661_v36 = vsel %vm6180_vm5, %v3659_v22, %v3660_v33 }
 0x256   : > { %2572 = vst.msk [vmem:[#allocation3 + $0x34] sm:$0xf] %vm2558_vm8, %v2477_v62  ;;  %v2475_v1 = vpop.permute.xlu0 %2474  ;;  %p5283_p0 = pneg %p5282_p13 }
 0x257   : > { %2571 = vst.msk [vmem:[#allocation3 + $0x30] sm:$0xf] %vm2558_vm8, %v2475_v1  ;;  %3397 = vrot.lane.b32.xlu1 %v3310_v47, %s5364_s6 }
 0x258   : > { %3395 = vrot.lane.b32.xlu0 %v3300_v14, %s5364_s6 }
 0x259   : > { %v2509_v11 = vpop.permute.xlu1 %2508 }
 0x25a   : > { %2588 = vst.msk [vmem:[#allocation3 + $0x74] sm:$0xf] %vm2558_vm8, %v2509_v11  ;;  %v2507_v17 = vpop.permute.xlu0 %2506 }
 0x25b   : > { %2587 = vst.msk [vmem:[#allocation3 + $0x70] sm:$0xf] %vm2558_vm8, %v2507_v17  ;;  %3369 = vrot.lane.b32.xlu1 %v3170_v20, %s5364_s6 }
 0x25c   : > { %3367 = vrot.lane.b32.xlu0 %v3160_v55, %s5364_s6 }
 0x25d   : > { %v2481_v24 = vpop.permute.xlu1 %2480 }
 0x25e   : > { %2574 = vst.msk [vmem:[#allocation3 + $0x3c] sm:$0xf] %vm2558_vm8, %v2481_v24  ;;  %v2479_v60 = vpop.permute.xlu0 %2478 }
 0x25f   : > { %2573 = vst.msk [vmem:[#allocation3 + $0x38] sm:$0xf] %vm2558_vm8, %v2479_v60  ;;  %3401 = vrot.lane.b32.xlu1 %v3330_v53, %s5364_s6 }
 0x260   : > { %3399 = vrot.lane.b32.xlu0 %v3320_v28, %s5364_s6  ;;  %s5366_s6 = smov [#allocation4]  }
 0x261   : > { %v2513_v3 = vpop.permute.xlu1 %2512  ;;  %s5284_s7 = sshll.u32 %s5366_s6, 4  ;;  %s5285_s7 = int_to_ptr.vmem [resolvable:$false] %s5284_s7 }
 0x262   : > { %2590 = vst.msk [vmem:[#allocation3 + $0x7c] sm:$0xf] %vm2558_vm8, %v2513_v3  ;;  %v2511_v48 = vpop.permute.xlu0 %2510  ;;  %s5286_s9 = scalar_lea.vmem %s5285_s7, 4608  ;;  %p5287_p1 = scmp.lt.s32.totalorder %s7378_s24, %s5285_s7 }
 0x263   : > { %2589 = vst.msk [vmem:[#allocation3 + $0x78] sm:$0xf] %vm2558_vm8, %v2511_v48  ;;  %3696 = vrot.lane.b32.xlu1 %v3607_v49, %s5365_s10  ;;  %p5288_p2 = scmp.lt.s32.totalorder %s5286_s9, %s5280_s5 }
 0x264   : > { %3694 = vrot.lane.b32.xlu0 %v3604_v0, %s5365_s10 }
 0x265   : > { %v2805_v23 = vpop.permute.xlu1 %2804  ;;  %p5289_p3 = por %p5288_p2, %p5287_p1 }
 0x266   : > { %2900 = vst.msk [vmem:[#allocation3 + $0x34] sm:$0xf] %vm2886_vm9, %v2805_v23  ;;  %v2803_v27 = vpop.permute.xlu0 %2802 }
 0x267   : > { %2899 = vst.msk [vmem:[#allocation3 + $0x30] sm:$0xf] %vm2886_vm9, %v2803_v27  ;;  %3728 = vrot.lane.b32.xlu1 %v3655_v57, %s5365_s10  ;;  %p5290_p5 = pnand %p5289_p3, %p5283_p0 }
 0x268   : > { %3726 = vrot.lane.b32.xlu0 %v3652_v51, %s5365_s10 }
 0x269   : > { %v2837_v7 = vpop.permute.xlu1 %2836 }
 0x26a   : > { %2916 = vst.msk [vmem:[#allocation3 + $0x74] sm:$0xf] %vm2886_vm9, %v2837_v7  ;;  %v2835_v37 = vpop.permute.xlu0 %2834 }
 0x26b   : > { %2915 = vst.msk [vmem:[#allocation3 + $0x70] sm:$0xf] %vm2886_vm9, %v2835_v37  ;;  %3700 = vrot.lane.b32.xlu1 %v3613_v43, %s5365_s10 }
 0x26c   : > { %3698 = vrot.lane.b32.xlu0 %v3610_v13, %s5365_s10 }
 0x26d   : > { %v2809_v58 = vpop.permute.xlu1 %2808 }
 0x26e   : > { %2902 = vst.msk [vmem:[#allocation3 + $0x3c] sm:$0xf] %vm2886_vm9, %v2809_v58  ;;  %v2807_v56 = vpop.permute.xlu0 %2806 }
 0x26f   : > { %2901 = vst.msk [vmem:[#allocation3 + $0x38] sm:$0xf] %vm2886_vm9, %v2807_v56  ;;  %3732 = vrot.lane.b32.xlu1 %v3661_v36, %s5365_s10 }
 0x270   : > { %3730 = vrot.lane.b32.xlu0 %v3658_v54, %s5365_s10 }
 0x271   : > { %v2841_v39 = vpop.permute.xlu1 %2840 }
 0x272   : > { %2918 = vst.msk [vmem:[#allocation3 + $0x7c] sm:$0xf] %vm2886_vm9, %v2841_v39  ;;  %v2839_v5 = vpop.permute.xlu0 %2838 }
 0x273   : > { %2917 = vst.msk [vmem:[#allocation3 + $0x78] sm:$0xf] %vm2886_vm9, %v2839_v5  ;;  %v5004_v8 = vpop.f32.mrf.mxu0 }
 0x274   : > { %v7160_v19 = vadd.f32 %v5004_v8, %v7156_v31 }
 0x275   : > { %v3358_v2 = vpop.permute.xlu1 %3357  ;;  %v4053_v50 = vpop.f32.mrf.mxu0 }
 0x276   : > { %3453 = vst.msk [vmem:[#allocation3 + $0x34] sm:$0xf] %vm3439_vm10, %v3358_v2  ;;  %v3356_v47 = vpop.permute.xlu0 %3355  ;;  %v4198_v15 = vsub.f32 0.0, %v7160_v19  ;;  %v7166_v30 = vadd.f32 %v7156_v31, %v4053_v50 }
 0x277   : > { %3452 = vst.msk [vmem:[#allocation3 + $0x30] sm:$0xf] %vm3439_vm10, %v3356_v47  ;;  %v5005_v32 = vpop.f32.mrf.mxu0 }
 0x278   : > { %v4236_v62 = vmul.f32 1.442695, %v4198_v15  ;;  %v4196_v14 = vsub.f32 0.0, %v7166_v30  ;;  %v7170_v40 = vadd.f32 %v5005_v32, %v7156_v31 }
 0x279   : > { %v3390_v38 = vpop.permute.xlu1 %3389  ;;  %v4056_v20 = vpop.f32.mrf.mxu0 }
 0x27a   : > { %3469 = vst.msk [vmem:[#allocation3 + $0x74] sm:$0xf] %vm3439_vm10, %v3390_v38  ;;  %v3388_v1 = vpop.permute.xlu0 %3387  ;;  %5136 = vpow2.f32 %v4236_v62  ;;  %v4232_v12 = vmul.f32 1.442695, %v4196_v14  ;;  %v4199_v9 = vsub.f32 0.0, %v7170_v40  ;;  %v7176_v52 = vadd.f32 %v7156_v31, %v4056_v20 }
 0x27b   : > { %3468 = vst.msk [vmem:[#allocation3 + $0x70] sm:$0xf] %vm3439_vm10, %v3388_v1 }
 0x27c   : > { %5138 = vpow2.f32 %v4232_v12  ;;  %v4238_v11 = vmul.f32 1.442695, %v4199_v9  ;;  %v4197_v55 = vsub.f32 0.0, %v7176_v52 }
 0x27d   : > { %v3362_v44 = vpop.permute.xlu1 %3361 }
 0x27e   : > { %3455 = vst.msk [vmem:[#allocation3 + $0x3c] sm:$0xf] %vm3439_vm10, %v3362_v44  ;;  %v3360_v29 = vpop.permute.xlu0 %3359  ;;  %5140 = vpow2.f32 %v4238_v11  ;;  %v4234_v6 = vmul.f32 1.442695, %v4197_v55 }
 0x27f   : > { %3454 = vst.msk [vmem:[#allocation3 + $0x38] sm:$0xf] %vm3439_vm10, %v3360_v29 }
 0x280   : > { %5142 = vpow2.f32 %v4234_v6 }
 0x281   : > { %v3394_v17 = vpop.permute.xlu1 %3393 }
 0x282   : > { %3471 = vst.msk [vmem:[#allocation3 + $0x7c] sm:$0xf] %vm3439_vm10, %v3394_v17  ;;  %v3392_v53 = vpop.permute.xlu0 %3391 }
 0x283   : > { %3470 = vst.msk [vmem:[#allocation3 + $0x78] sm:$0xf] %vm3439_vm10, %v3392_v53 }
 0x285   : > { %v3689_v18 = vpop.permute.xlu1 %3688 }
 0x286   : > { %3784 = vst.msk [vmem:[#allocation3 + $0x34] sm:$0xf] %vm3770_vm12, %v3689_v18  ;;  %v3687_v10 = vpop.permute.xlu0 %3686 }
 0x287   : > { %3783 = vst.msk [vmem:[#allocation3 + $0x30] sm:$0xf] %vm3770_vm12, %v3687_v10  ;;  %v5137_v21 = vpop.eup %5136 }
 0x288   : > { %v4306_v24 = vadd.f32 1.0, %v5137_v21 }
 0x289   : > { %v3721_v28 = vpop.permute.xlu1 %3720  ;;  %v5139_v45 = vpop.eup %5138 }
 0x28a   : > { %3800 = vst.msk [vmem:[#allocation3 + $0x74] sm:$0xf] %vm3770_vm12, %v3721_v28  ;;  %v3719_v34 = vpop.permute.xlu0 %3718  ;;  %v4304_v41 = vadd.f32 1.0, %v5139_v45  ;;  %5144 = vrcp.f32 %v4306_v24 }
 0x28b   : > { %3799 = vst.msk [vmem:[#allocation3 + $0x70] sm:$0xf] %vm3770_vm12, %v3719_v34  ;;  %v5141_v60 = vpop.eup %5140 }
 0x28c   : > { %v4307_v49 = vadd.f32 1.0, %v5141_v60  ;;  %5146 = vrcp.f32 %v4304_v41 }
 0x28d   : > { %v3693_v4 = vpop.permute.xlu1 %3692  ;;  %v5143_v42 = vpop.eup %5142 }
 0x28e   : > { %3786 = vst.msk [vmem:[#allocation3 + $0x3c] sm:$0xf] %vm3770_vm12, %v3693_v4  ;;  %v3691_v59 = vpop.permute.xlu0 %3690  ;;  %v5128_v3 = vld [vmem:[#allocation3 + $0x30] sm:$0xff]   ;;  %5148 = vrcp.f32 %v4307_v49  ;;  %v4305_v0 = vadd.f32 1.0, %v5143_v42 }
 0x28f   : > { %3785 = vst.msk [vmem:[#allocation3 + $0x38] sm:$0xf] %vm3770_vm12, %v3691_v59  ;;  %5014 = vmatprep.mubr.msk.bf16.mxu0 %vm3960_vm13, %v5128_v3 }
 0x290   : > { %5150 = vrcp.f32 %v4305_v0 }
 0x291   : > { %v3725_v25 = vpop.permute.xlu1 %3724 }
 0x292   : > { %3802 = vst.msk [vmem:[#allocation3 + $0x7c] sm:$0xf] %vm3770_vm12, %v3725_v25  ;;  %v3723_v35 = vpop.permute.xlu0 %3722  ;;  %v5129_v48 = vld [vmem:[#allocation3 + $0x70] sm:$0xff]  }
 0x293   : > { %3801 = vst.msk [vmem:[#allocation3 + $0x78] sm:$0xf] %vm3770_vm12, %v3723_v35  ;;  %5030 = vmatprep.mubr.msk.bf16.mxu1 %vm3960_vm13, %v5129_v48 }
 0x295   : > { %v2154_v57 = vpop.permute.xlu1 %2153 }
 0x296   : > { %2245 = vst.msk [vmem:[#allocation3 + $0x44] sm:$0xf] %vm2227_vm7, %v2154_v57  ;;  %v2152_v46 = vpop.permute.xlu0 %2151  ;;  %v5130_v16 = vld [vmem:[#allocation3 + $0x38] sm:$0xff]  }
 0x297   : > { %2244 = vst.msk [vmem:[#allocation3 + $0x40] sm:$0xf] %vm2227_vm7, %v2152_v46  ;;  %5015 = vmatmul.mubr.msk.bf16.gmra.mxu0 %vm3960_vm13, %v5130_v16  ;;  %v5145_v51 = vpop.eup %5144 }
 0x298   : > { %v4378_v22 = vmul.f32 %v5145_v51, %v7160_v19 }
 0x299   : > { %v2186_v23 = vpop.permute.xlu1 %2185  ;;  %v5147_v27 = vpop.eup %5146 }
 0x29a   : > { %2261 = vst.msk [vmem:[#allocation3 + $0x84] sm:$0xf] %vm2227_vm7, %v2186_v23  ;;  %v2184_v63 = vpop.permute.xlu0 %2183  ;;  %v5131_v61 = vld [vmem:[#allocation3 + $0x78] sm:$0xff]   ;;  %v4376_v37 = vmul.f32 %v5147_v27, %v7166_v30 }
 0x29b   : > { %2260 = vst.msk [vmem:[#allocation3 + $0x80] sm:$0xf] %vm2227_vm7, %v2184_v63  ;;  %v5149_v43 = vpop.eup %5148  ;;  %5031 = vmatmul.mubr.msk.bf16.gmra.mxu1 %vm3960_vm13, %v5131_v61 }
 0x29c   : > { %v4379_v33 = vmul.f32 %v5149_v43, %v7170_v40 }
 0x29d   : > { %v2158_v7 = vpop.permute.xlu1 %2157  ;;  %v5151_v13 = vpop.eup %5150 }
 0x29e   : > { %2247 = vst.msk [vmem:[#allocation3 + $0x4c] sm:$0xf] %vm2227_vm7, %v2158_v7  ;;  %v2156_v26 = vpop.permute.xlu0 %2155  ;;  %v4876_v36 = vpack.c.bf16 %v4379_v33, %v4378_v22  ;;  %v4377_v58 = vmul.f32 %v5151_v13, %v7176_v52 }
 0x29f   : > { %2246 = vst.msk [vmem:[#allocation3 + $0x48] sm:$0xf] %vm2227_vm7, %v2156_v26 }
 0x2a0   : > { %4958 = vst [vmem:[%s7208_s21 + $0x8] sm:$0xff] %v4876_v36   ;;  %v4871_v54 = vpack.c.bf16 %v4377_v58, %v4376_v37 }
 0x2a1   : > { %v2190_v56 = vpop.permute.xlu1 %2189 }
 0x2a2   : > { %2263 = vst.msk [vmem:[#allocation3 + $0x8c] sm:$0xf] %vm2227_vm7, %v2190_v56  ;;  %v2188_v39 = vpop.permute.xlu0 %2187  ;;  %4872 = vst [vmem:[%s7208_s21] sm:$0xff] %v4871_v54  }
 0x2a3   : > { %2262 = vst.msk [vmem:[#allocation3 + $0x88] sm:$0xf] %vm2227_vm7, %v2188_v39 }
 0x2a5   : > { %v2485_v5 = vpop.permute.xlu1 %2484 }
 0x2a6   : > { %2576 = vst.msk [vmem:[#allocation3 + $0x44] sm:$0xf] %vm2558_vm8, %v2485_v5  ;;  %v2483_v8 = vpop.permute.xlu0 %2482 }
 0x2a7   : > { %2575 = vst.msk [vmem:[#allocation3 + $0x40] sm:$0xf] %vm2558_vm8, %v2483_v8 }
 0x2a9   : > { %v2517_v19 = vpop.permute.xlu1 %2516 }
 0x2aa   : > { %2592 = vst.msk [vmem:[#allocation3 + $0x84] sm:$0xf] %vm2558_vm8, %v2517_v19  ;;  %v2515_v2 = vpop.permute.xlu0 %2514 }
 0x2ab   : > { %2591 = vst.msk [vmem:[#allocation3 + $0x80] sm:$0xf] %vm2558_vm8, %v2515_v2 }
 0x2ad   : > { %v2489_v47 = vpop.permute.xlu1 %2488 }
 0x2ae   : > { %2578 = vst.msk [vmem:[#allocation3 + $0x4c] sm:$0xf] %vm2558_vm8, %v2489_v47  ;;  %v2487_v50 = vpop.permute.xlu0 %2486 }
 0x2af   : > { %2577 = vst.msk [vmem:[#allocation3 + $0x48] sm:$0xf] %vm2558_vm8, %v2487_v50 }
 0x2b1   : > { %v2521_v15 = vpop.permute.xlu1 %2520 }
 0x2b2   : > { %2594 = vst.msk [vmem:[#allocation3 + $0x8c] sm:$0xf] %vm2558_vm8, %v2521_v15  ;;  %v2519_v30 = vpop.permute.xlu0 %2518 }
 0x2b3   : > { %2593 = vst.msk [vmem:[#allocation3 + $0x88] sm:$0xf] %vm2558_vm8, %v2519_v30 }
 0x2b5   : > { %v2813_v32 = vpop.permute.xlu1 %2812 }
 0x2b6   : > { %2904 = vst.msk [vmem:[#allocation3 + $0x44] sm:$0xf] %vm2886_vm9, %v2813_v32  ;;  %v2811_v62 = vpop.permute.xlu0 %2810 }
 0x2b7   : > { %2903 = vst.msk [vmem:[#allocation3 + $0x40] sm:$0xf] %vm2886_vm9, %v2811_v62  ;;  %v5008_v14 = vpop.f32.mrf.mxu0 }
 0x2b8   : > { %v7225_v40 = vadd.f32 %v5008_v14, %v7156_v31 }
 0x2b9   : > { %v2845_v38 = vpop.permute.xlu1 %2844  ;;  %v4069_v20 = vpop.f32.mrf.mxu0 }
 0x2ba   : > { %2920 = vst.msk [vmem:[#allocation3 + $0x84] sm:$0xf] %vm2886_vm9, %v2845_v38  ;;  %v2843_v1 = vpop.permute.xlu0 %2842  ;;  %v4202_v12 = vsub.f32 0.0, %v7225_v40  ;;  %v7231_v9 = vadd.f32 %v7156_v31, %v4069_v20 }
 0x2bb   : > { %2919 = vst.msk [vmem:[#allocation3 + $0x80] sm:$0xf] %vm2886_vm9, %v2843_v1  ;;  %v5009_v52 = vpop.f32.mrf.mxu0  ;;  %v5024_v11 = vpop.f32.mrf.mxu1 }
 0x2bc   : > { %v4244_v55 = vmul.f32 1.442695, %v4202_v12  ;;  %v4200_v44 = vsub.f32 0.0, %v7231_v9  ;;  %v7235_v29 = vadd.f32 %v5009_v52, %v7156_v31  ;;  %v7238_v6 = vadd.f32 %v5024_v11, %v7156_v31 }
 0x2bd   : > { %v2817_v17 = vpop.permute.xlu1 %2816  ;;  %v4072_v18 = vpop.f32.mrf.mxu0 }
 0x2be   : > { %2906 = vst.msk [vmem:[#allocation3 + $0x4c] sm:$0xf] %vm2886_vm9, %v2817_v17  ;;  %v2815_v53 = vpop.permute.xlu0 %2814  ;;  %5152 = vpow2.f32 %v4244_v55  ;;  %v4240_v10 = vmul.f32 1.442695, %v4200_v44  ;;  %v4203_v21 = vsub.f32 0.0, %v7235_v29  ;;  %v4218_v24 = vsub.f32 0.0, %v7238_v6  ;;  %v4133_v28 = vpop.f32.mrf.mxu1 }
 0x2bf   : > { %2905 = vst.msk [vmem:[#allocation3 + $0x48] sm:$0xf] %vm2886_vm9, %v2815_v53  ;;  %v7245_v45 = vadd.f32 %v7156_v31, %v4072_v18  ;;  %v7248_v34 = vadd.f32 %v7156_v31, %v4133_v28 }
 0x2c0   : > { %5154 = vpow2.f32 %v4240_v10  ;;  %v4246_v41 = vmul.f32 1.442695, %v4203_v21  ;;  %v4276_v60 = vmul.f32 1.442695, %v4218_v24  ;;  %v5025_v49 = vpop.f32.mrf.mxu1 }
 0x2c1   : > { %v2849_v4 = vpop.permute.xlu1 %2848  ;;  %v4201_v42 = vsub.f32 0.0, %v7245_v45  ;;  %v4216_v59 = vsub.f32 0.0, %v7248_v34  ;;  %v7253_v3 = vadd.f32 %v5025_v49, %v7156_v31 }
 0x2c2   : > { %2922 = vst.msk [vmem:[#allocation3 + $0x8c] sm:$0xf] %vm2886_vm9, %v2849_v4  ;;  %v2847_v0 = vpop.permute.xlu0 %2846  ;;  %5156 = vpow2.f32 %v4246_v41  ;;  %v4136_v25 = vpop.f32.mrf.mxu1 }
 0x2c3   : > { %2921 = vst.msk [vmem:[#allocation3 + $0x88] sm:$0xf] %vm2886_vm9, %v2847_v0  ;;  %5158 = vpow2.f32 %v4276_v60  ;;  %v4242_v35 = vmul.f32 1.442695, %v4201_v42  ;;  %v4272_v48 = vmul.f32 1.442695, %v4216_v59  ;;  %v7259_v46 = vadd.f32 %v7156_v31, %v4136_v25 }
 0x2c4   : > { %v4219_v57 = vsub.f32 0.0, %v7253_v3 }
 0x2c5   : > { %v3366_v16 = vpop.permute.xlu1 %3365  ;;  %5160 = vpow2.f32 %v4242_v35  ;;  %v4217_v63 = vsub.f32 0.0, %v7259_v46 }
 0x2c6   : > { %v4278_v23 = vmul.f32 1.442695, %v4219_v57  ;;  %3457 = vst.msk [vmem:[#allocation3 + $0x44] sm:$0xf] %vm3439_vm10, %v3366_v16  ;;  %v3364_v51 = vpop.permute.xlu0 %3363  ;;  %5162 = vpow2.f32 %v4272_v48 }
 0x2c7   : > { %3456 = vst.msk [vmem:[#allocation3 + $0x40] sm:$0xf] %vm3439_vm10, %v3364_v51  ;;  %v4274_v61 = vmul.f32 1.442695, %v4217_v63 }
 0x2c8   : > { %5164 = vpow2.f32 %v4278_v23 }
 0x2c9   : > { %v3398_v27 = vpop.permute.xlu1 %3397  ;;  %5166 = vpow2.f32 %v4274_v61 }
 0x2ca   : > { %3473 = vst.msk [vmem:[#allocation3 + $0x84] sm:$0xf] %vm3439_vm10, %v3398_v27  ;;  %v3396_v43 = vpop.permute.xlu0 %3395 }
 0x2cb   : > { %3472 = vst.msk [vmem:[#allocation3 + $0x80] sm:$0xf] %vm3439_vm10, %v3396_v43  ;;  %v5153_v22 = vpop.eup %5152 }
 0x2cc   : > { %v4310_v33 = vadd.f32 1.0, %v5153_v22 }
 0x2cd   : > { %v3370_v7 = vpop.permute.xlu1 %3369  ;;  %v5155_v13 = vpop.eup %5154 }
 0x2ce   : > { %3459 = vst.msk [vmem:[#allocation3 + $0x4c] sm:$0xf] %vm3439_vm10, %v3370_v7  ;;  %v3368_v26 = vpop.permute.xlu0 %3367  ;;  %v4308_v36 = vadd.f32 1.0, %v5155_v13  ;;  %5168 = vrcp.f32 %v4310_v33 }
 0x2cf   : > { %3458 = vst.msk [vmem:[#allocation3 + $0x48] sm:$0xf] %vm3439_vm10, %v3368_v26  ;;  %v5157_v37 = vpop.eup %5156 }
 0x2d0   : > { %v5159_v58 = vpop.eup %5158  ;;  %v4311_v54 = vadd.f32 1.0, %v5157_v37 }
 0x2d1   : > { %v3402_v56 = vpop.permute.xlu1 %3401  ;;  %v4326_v39 = vadd.f32 1.0, %v5159_v58 }
 0x2d2   : > { %3475 = vst.msk [vmem:[#allocation3 + $0x8c] sm:$0xf] %vm3439_vm10, %v3402_v56  ;;  %v3400_v5 = vpop.permute.xlu0 %3399  ;;  %v5161_v8 = vpop.eup %5160  ;;  %5170 = vrcp.f32 %v4311_v54 }
 0x2d3   : > { %3474 = vst.msk [vmem:[#allocation3 + $0x88] sm:$0xf] %vm3439_vm10, %v3400_v5  ;;  %v5163_v19 = vpop.eup %5162  ;;  %5172 = vrcp.f32 %v4308_v36  ;;  %v4309_v2 = vadd.f32 1.0, %v5161_v8 }
 0x2d4   : > { %5174 = vrcp.f32 %v4326_v39  ;;  %v4324_v50 = vadd.f32 1.0, %v5163_v19 }
 0x2d5   : > { %v5165_v47 = vpop.eup %5164  ;;  %v3697_v15 = vpop.permute.xlu1 %3696  ;;  %5176 = vrcp.f32 %v4309_v2 }
 0x2d6   : > { %v4327_v30 = vadd.f32 1.0, %v5165_v47  ;;  %3788 = vst.msk [vmem:[#allocation3 + $0x44] sm:$0xf] %vm3770_vm12, %v3697_v15  ;;  %v3695_v32 = vpop.permute.xlu0 %3694  ;;  %v5167_v62 = vpop.eup %5166 }
 0x2d7   : > { %3787 = vst.msk [vmem:[#allocation3 + $0x40] sm:$0xf] %vm3770_vm12, %v3695_v32  ;;  %v4325_v14 = vadd.f32 1.0, %v5167_v62 }
 0x2d8   : > { %5178 = vrcp.f32 %v4327_v30 }
 0x2d9   : > { %5180 = vrcp.f32 %v4324_v50  ;;  %v3729_v38 = vpop.permute.xlu1 %3728 }
 0x2da   : > { %3804 = vst.msk [vmem:[#allocation3 + $0x84] sm:$0xf] %vm3770_vm12, %v3729_v38  ;;  %v3727_v1 = vpop.permute.xlu0 %3726  ;;  %5182 = vrcp.f32 %v4325_v14 }
 0x2db   : > { %3803 = vst.msk [vmem:[#allocation3 + $0x80] sm:$0xf] %vm3770_vm12, %v3727_v1  ;;  %v5169_v12 = vpop.eup %5168 }
 0x2dc   : > { %v4382_v17 = vmul.f32 %v5169_v12, %v7225_v40 }
 0x2dd   : > { %v3701_v20 = vpop.permute.xlu1 %3700 }
 0x2de   : > { %3790 = vst.msk [vmem:[#allocation3 + $0x4c] sm:$0xf] %vm3770_vm12, %v3701_v20  ;;  %v3699_v52 = vpop.permute.xlu0 %3698  ;;  %v5132_v11 = vld [vmem:[#allocation3 + $0x40] sm:$0xff]  }
 0x2df   : > { %3789 = vst.msk [vmem:[#allocation3 + $0x48] sm:$0xf] %vm3770_vm12, %v3699_v52  ;;  %v5171_v55 = vpop.eup %5170  ;;  %5018 = vmatprep.mubr.msk.bf16.mxu0 %vm3960_vm13, %v5132_v11 }
 0x2e0   : > { %v5173_v44 = vpop.eup %5172  ;;  %v4383_v53 = vmul.f32 %v5171_v55, %v7235_v29 }
 0x2e1   : > { %v3733_v18 = vpop.permute.xlu1 %3732  ;;  %v5175_v10 = vpop.eup %5174  ;;  %v4380_v60 = vmul.f32 %v5173_v44, %v7231_v9 }
 0x2e2   : > { %3806 = vst.msk [vmem:[#allocation3 + $0x8c] sm:$0xf] %vm3770_vm12, %v3733_v18  ;;  %v3731_v21 = vpop.permute.xlu0 %3730  ;;  %v5133_v24 = vld [vmem:[#allocation3 + $0x80] sm:$0xff]   ;;  %v5177_v28 = vpop.eup %5176  ;;  %v4886_v41 = vpack.c.bf16 %v4383_v53, %v4382_v17  ;;  %v4398_v4 = vmul.f32 %v5175_v10, %v7238_v6 }
 0x2e3   : > { %3805 = vst.msk [vmem:[#allocation3 + $0x88] sm:$0xf] %vm3770_vm12, %v3731_v21  ;;  %v4381_v49 = vmul.f32 %v5177_v28, %v7245_v45  ;;  %5034 = vmatprep.mubr.msk.bf16.mxu1 %vm3960_vm13, %v5133_v24 }
 0x2e4   : > { %4960 = vst [vmem:[%s7208_s21 + $0x18] sm:$0xff] %v4886_v41  }
 0x2e5   : > { %v5179_v40 = vpop.eup %5178  ;;  %v4881_v42 = vpack.c.bf16 %v4381_v49, %v4380_v60 }
 0x2e6   : > { %v5181_v29 = vpop.eup %5180  ;;  %v4399_v59 = vmul.f32 %v5179_v40, %v7253_v3  ;;  %v5134_v0 = vld [vmem:[#allocation3 + $0x48] sm:$0xff]  }
 0x2e7   : > { %v5183_v25 = vpop.eup %5182  ;;  %4959 = vst [vmem:[%s7208_s21 + $0x10] sm:$0xff] %v4881_v42   ;;  %5019 = vmatmul.mubr.msk.bf16.gmra.mxu0 %vm3960_vm13, %v5134_v0  ;;  %v4396_v9 = vmul.f32 %v5181_v29, %v7248_v34 }
 0x2e8   : > { %v4926_v35 = vpack.c.bf16 %v4399_v59, %v4398_v4  ;;  %v4397_v45 = vmul.f32 %v5183_v25, %v7259_v46 }
 0x2ea   : > { %4968 = vst [vmem:[%s7208_s21 + $0x58] sm:$0xff] %v4926_v35   ;;  %v5135_v48 = vld [vmem:[#allocation3 + $0x88] sm:$0xff]   ;;  %v4921_v57 = vpack.c.bf16 %v4397_v45, %v4396_v9 }
 0x2eb   : > { %5035 = vmatmul.mubr.msk.bf16.gmra.mxu1 %vm3960_vm13, %v5135_v48 }
 0x2ec   : > { %4967 = vst [vmem:[%s7208_s21 + $0x50] sm:$0xff] %v4921_v57  }
 0x307   : > { %v5012_v6 = vpop.f32.mrf.mxu0 }
 0x308   : > { %v7295_v16 = vadd.f32 %v5012_v6, %v7156_v31 }
 0x309   : > { %v4085_v3 = vpop.f32.mrf.mxu0 }
 0x30a   : > { %v4206_v23 = vsub.f32 0.0, %v7295_v16  ;;  %v7299_v51 = vadd.f32 %v7156_v31, %v4085_v3 }
 0x30b   : > { %v5013_v63 = vpop.f32.mrf.mxu0  ;;  %v5028_v34 = vpop.f32.mrf.mxu1 }
 0x30c   : > { %v4252_v61 = vmul.f32 1.442695, %v4206_v23  ;;  %v4204_v46 = vsub.f32 0.0, %v7299_v51  ;;  %v4097_v27 = vadd.f32 %v5013_v63, %v7156_v31  ;;  %v7304_v43 = vadd.f32 %v5028_v34, %v7156_v31 }
 0x30d   : > { %v4088_v22 = vpop.f32.mrf.mxu0  ;;  %v4149_v33 = vpop.f32.mrf.mxu1 }
 0x30e   : > { %5184 = vpow2.f32 %v4252_v61  ;;  %v4248_v7 = vmul.f32 1.442695, %v4204_v46  ;;  %v4207_v13 = vsub.f32 0.0, %v4097_v27  ;;  %v4222_v26 = vsub.f32 0.0, %v7304_v43 }
 0x30f   : > { %v4089_v37 = vadd.f32 %v7156_v31, %v4088_v22  ;;  %v7309_v36 = vadd.f32 %v7156_v31, %v4149_v33  ;;  %v5029_v58 = vpop.f32.mrf.mxu1 }
 0x310   : > { %5186 = vpow2.f32 %v4248_v7  ;;  %v4254_v54 = vmul.f32 1.442695, %v4207_v13  ;;  %v4284_v56 = vmul.f32 1.442695, %v4222_v26  ;;  %v4161_v39 = vadd.f32 %v5029_v58, %v7156_v31 }
 0x311   : > { %v4205_v5 = vsub.f32 0.0, %v4089_v37  ;;  %v4220_v8 = vsub.f32 0.0, %v7309_v36  ;;  %v4152_v19 = vpop.f32.mrf.mxu1 }
 0x312   : > { %5188 = vpow2.f32 %v4254_v54  ;;  %v4223_v2 = vsub.f32 0.0, %v4161_v39  ;;  %v4153_v47 = vadd.f32 %v7156_v31, %v4152_v19 }
 0x313   : > { %5190 = vpow2.f32 %v4284_v56  ;;  %v4250_v50 = vmul.f32 1.442695, %v4205_v5  ;;  %v4280_v15 = vmul.f32 1.442695, %v4220_v8 }
 0x314   : > { %v4286_v30 = vmul.f32 1.442695, %v4223_v2  ;;  %v4221_v32 = vsub.f32 0.0, %v4153_v47 }
 0x315   : > { %5192 = vpow2.f32 %v4250_v50 }
 0x316   : > { %5194 = vpow2.f32 %v4280_v15  ;;  %v4282_v62 = vmul.f32 1.442695, %v4221_v32 }
 0x317   : > { %5196 = vpow2.f32 %v4286_v30 }
 0x318   : > { %5198 = vpow2.f32 %v4282_v62 }
 0x31b   : > { %v5185_v14 = vpop.eup %5184 }
 0x31c   : > { %v4314_v38 = vadd.f32 1.0, %v5185_v14 }
 0x31d   : > { %v5187_v1 = vpop.eup %5186 }
 0x31e   : > { %v4312_v12 = vadd.f32 1.0, %v5187_v1  ;;  %5200 = vrcp.f32 %v4314_v38 }
 0x31f   : > { %v5189_v20 = vpop.eup %5188 }
 0x320   : > { %v5191_v52 = vpop.eup %5190  ;;  %v4315_v11 = vadd.f32 1.0, %v5189_v20 }
 0x321   : > { %v4330_v55 = vadd.f32 1.0, %v5191_v52 }
 0x322   : > { %v5193_v44 = vpop.eup %5192  ;;  %5202 = vrcp.f32 %v4315_v11 }
 0x323   : > { %v5195_v17 = vpop.eup %5194  ;;  %5204 = vrcp.f32 %v4312_v12  ;;  %v4313_v53 = vadd.f32 1.0, %v5193_v44 }
 0x324   : > { %v5197_v18 = vpop.eup %5196  ;;  %5206 = vrcp.f32 %v4330_v55  ;;  %v4328_v10 = vadd.f32 1.0, %v5195_v17 }
 0x325   : > { %v5199_v21 = vpop.eup %5198  ;;  %5208 = vrcp.f32 %v4313_v53  ;;  %v4331_v24 = vadd.f32 1.0, %v5197_v18 }
 0x326   : > { %5210 = vrcp.f32 %v4328_v10  ;;  %v4329_v28 = vadd.f32 1.0, %v5199_v21 }
 0x327   : > { %5212 = vrcp.f32 %v4331_v24 }
 0x328   : > { %5214 = vrcp.f32 %v4329_v28 }
 0x32b   : > { %v5201_v41 = vpop.eup %5200 }
 0x32c   : > { %v4386_v40 = vmul.f32 %v5201_v41, %v7295_v16 }
 0x32f   : > { %v5203_v60 = vpop.eup %5202 }
 0x330   : > { %v5205_v49 = vpop.eup %5204  ;;  %v4387_v29 = vmul.f32 %v5203_v60, %v4097_v27 }
 0x331   : > { %v5207_v4 = vpop.eup %5206  ;;  %v4384_v25 = vmul.f32 %v5205_v49, %v7299_v51 }
 0x332   : > { %v5209_v42 = vpop.eup %5208  ;;  %v4896_v59 = vpack.c.bf16 %v4387_v29, %v4386_v40  ;;  %v4402_v48 = vmul.f32 %v5207_v4, %v7304_v43 }
 0x333   : > { %v5211_v0 = vpop.eup %5210  ;;  %v4385_v35 = vmul.f32 %v5209_v42, %v4089_v37 }
 0x334   : > { %v5213_v9 = vpop.eup %5212  ;;  %4962 = vst [vmem:[%s7208_s21 + $0x28] sm:$0xff] %v4896_v59   ;;  %v4400_v16 = vmul.f32 %v5211_v0, %v7309_v36 }
 0x335   : > { %v5215_v45 = vpop.eup %5214  ;;  %v4891_v57 = vpack.c.bf16 %v4385_v35, %v4384_v25  ;;  %v4403_v6 = vmul.f32 %v5213_v9, %v4161_v39 }
 0x336   : > { %v4401_v3 = vmul.f32 %v5215_v45, %v4153_v47 }
 0x337   : > { %4961 = vst [vmem:[%s7208_s21 + $0x20] sm:$0xff] %v4891_v57   ;;  %v4936_v23 = vpack.c.bf16 %v4403_v6, %v4402_v48 }
 0x338   : > { %v4931_v63 = vpack.c.bf16 %v4401_v3, %v4400_v16 }
 0x339   : > { %4970 = vst [vmem:[%s7208_s21 + $0x68] sm:$0xff] %v4936_v23  }
 0x33a   : > { %4969 = vst [vmem:[%s7208_s21 + $0x60] sm:$0xff] %v4931_v63  }
 0x357   : > { %v5016_v34 = vpop.f32.mrf.mxu0 }
 0x358   : > { %v7323_v61 = vadd.f32 %v5016_v34, %v7156_v31 }
 0x359   : > { %v4101_v51 = vpop.f32.mrf.mxu0 }
 0x35a   : > { %v4210_v46 = vsub.f32 0.0, %v7323_v61  ;;  %v7327_v27 = vadd.f32 %v7156_v31, %v4101_v51 }
 0x35b   : > { %v5017_v43 = vpop.f32.mrf.mxu0  ;;  %v5032_v22 = vpop.f32.mrf.mxu1 }
 0x35c   : > { %v4260_v33 = vmul.f32 1.442695, %v4210_v46  ;;  %v4208_v7 = vsub.f32 0.0, %v7327_v27  ;;  %v4113_v13 = vadd.f32 %v5017_v43, %v7156_v31  ;;  %v7332_v26 = vadd.f32 %v5032_v22, %v7156_v31 }
 0x35d   : > { %v4104_v37 = vpop.f32.mrf.mxu0  ;;  %v4165_v36 = vpop.f32.mrf.mxu1 }
 0x35e   : > { %5216 = vpow2.f32 %v4260_v33  ;;  %v4256_v58 = vmul.f32 1.442695, %v4208_v7  ;;  %v4211_v54 = vsub.f32 0.0, %v4113_v13  ;;  %v4226_v56 = vsub.f32 0.0, %v7332_v26 }
 0x35f   : > { %v4105_v39 = vadd.f32 %v7156_v31, %v4104_v37  ;;  %v7337_v5 = vadd.f32 %v7156_v31, %v4165_v36  ;;  %v5033_v8 = vpop.f32.mrf.mxu1 }
 0x360   : > { %5218 = vpow2.f32 %v4256_v58  ;;  %v4262_v19 = vmul.f32 1.442695, %v4211_v54  ;;  %v4292_v2 = vmul.f32 1.442695, %v4226_v56  ;;  %v4177_v47 = vadd.f32 %v5033_v8, %v7156_v31 }
 0x361   : > { %v4209_v50 = vsub.f32 0.0, %v4105_v39  ;;  %v4224_v15 = vsub.f32 0.0, %v7337_v5  ;;  %v4168_v30 = vpop.f32.mrf.mxu1 }
 0x362   : > { %5220 = vpow2.f32 %v4262_v19  ;;  %v4227_v32 = vsub.f32 0.0, %v4177_v47  ;;  %v4169_v62 = vadd.f32 %v7156_v31, %v4168_v30 }
 0x363   : > { %5222 = vpow2.f32 %v4292_v2  ;;  %v4258_v14 = vmul.f32 1.442695, %v4209_v50  ;;  %v4288_v38 = vmul.f32 1.442695, %v4224_v15 }
 0x364   : > { %v4294_v1 = vmul.f32 1.442695, %v4227_v32  ;;  %v4225_v20 = vsub.f32 0.0, %v4169_v62 }
 0x365   : > { %5224 = vpow2.f32 %v4258_v14 }
 0x366   : > { %5226 = vpow2.f32 %v4288_v38  ;;  %v4290_v12 = vmul.f32 1.442695, %v4225_v20 }
 0x367   : > { %5228 = vpow2.f32 %v4294_v1 }
 0x368   : > { %5230 = vpow2.f32 %v4290_v12 }
 0x36b   : > { %v5217_v52 = vpop.eup %5216 }
 0x36c   : > { %v4318_v11 = vadd.f32 1.0, %v5217_v52 }
 0x36d   : > { %v5219_v55 = vpop.eup %5218 }
 0x36e   : > { %v4316_v17 = vadd.f32 1.0, %v5219_v55  ;;  %5232 = vrcp.f32 %v4318_v11 }
 0x36f   : > { %v5221_v44 = vpop.eup %5220 }
 0x370   : > { %v5223_v53 = vpop.eup %5222  ;;  %v4319_v18 = vadd.f32 1.0, %v5221_v44 }
 0x371   : > { %v4334_v10 = vadd.f32 1.0, %v5223_v53 }
 0x372   : > { %v5225_v21 = vpop.eup %5224  ;;  %5234 = vrcp.f32 %v4319_v18 }
 0x373   : > { %v5227_v24 = vpop.eup %5226  ;;  %5236 = vrcp.f32 %v4316_v17  ;;  %v4317_v28 = vadd.f32 1.0, %v5225_v21 }
 0x374   : > { %v5229_v41 = vpop.eup %5228  ;;  %5238 = vrcp.f32 %v4334_v10  ;;  %v4332_v60 = vadd.f32 1.0, %v5227_v24 }
 0x375   : > { %v5231_v49 = vpop.eup %5230  ;;  %5240 = vrcp.f32 %v4317_v28  ;;  %v4335_v40 = vadd.f32 1.0, %v5229_v41 }
 0x376   : > { %5242 = vrcp.f32 %v4332_v60  ;;  %v4333_v29 = vadd.f32 1.0, %v5231_v49 }
 0x377   : > { %5244 = vrcp.f32 %v4335_v40 }
 0x378   : > { %5246 = vrcp.f32 %v4333_v29 }
 0x37b   : > { %v5233_v4 = vpop.eup %5232 }
 0x37c   : > { %v4390_v0 = vmul.f32 %v5233_v4, %v7323_v61 }
 0x37f   : > { %v5235_v42 = vpop.eup %5234 }
 0x380   : > { %v5237_v59 = vpop.eup %5236  ;;  %v4391_v25 = vmul.f32 %v5235_v42, %v4113_v13 }
 0x381   : > { %v5239_v35 = vpop.eup %5238  ;;  %v4388_v57 = vmul.f32 %v5237_v59, %v7327_v27 }
 0x382   : > { %v5241_v9 = vpop.eup %5240  ;;  %v4906_v45 = vpack.c.bf16 %v4391_v25, %v4390_v0  ;;  %v4406_v23 = vmul.f32 %v5239_v35, %v7332_v26 }
 0x383   : > { %v5243_v48 = vpop.eup %5242  ;;  %v4389_v6 = vmul.f32 %v5241_v9, %v4105_v39 }
 0x384   : > { %v5245_v16 = vpop.eup %5244  ;;  %4964 = vst [vmem:[%s7208_s21 + $0x38] sm:$0xff] %v4906_v45   ;;  %v4404_v61 = vmul.f32 %v5243_v48, %v7337_v5 }
 0x385   : > { %v5247_v3 = vpop.eup %5246  ;;  %v4901_v63 = vpack.c.bf16 %v4389_v6, %v4388_v57  ;;  %v4407_v34 = vmul.f32 %v5245_v16, %v4177_v47 }
 0x386   : > { %v4405_v51 = vmul.f32 %v5247_v3, %v4169_v62 }
 0x387   : > { %4963 = vst [vmem:[%s7208_s21 + $0x30] sm:$0xff] %v4901_v63   ;;  %v4946_v46 = vpack.c.bf16 %v4407_v34, %v4406_v23 }
 0x388   : > { %v4941_v43 = vpack.c.bf16 %v4405_v51, %v4404_v61 }
 0x389   : > { %4972 = vst [vmem:[%s7208_s21 + $0x78] sm:$0xff] %v4946_v46  }
 0x38a   : > { %4971 = vst [vmem:[%s7208_s21 + $0x70] sm:$0xff] %v4941_v43  }
 0x3a7   : > { %v5020_v22 = vpop.f32.mrf.mxu0 }
 0x3a8   : > { %v7351_v33 = vadd.f32 %v5020_v22, %v7156_v31 }
 0x3a9   : > { %v4117_v27 = vpop.f32.mrf.mxu0 }
 0x3aa   : > { %v4214_v7 = vsub.f32 0.0, %v7351_v33  ;;  %v7355_v13 = vadd.f32 %v7156_v31, %v4117_v27 }
 0x3ab   : > { %v5021_v26 = vpop.f32.mrf.mxu0  ;;  %v5036_v37 = vpop.f32.mrf.mxu1 }
 0x3ac   : > { %v4268_v36 = vmul.f32 1.442695, %v4214_v7  ;;  %v4212_v58 = vsub.f32 0.0, %v7355_v13  ;;  %v4129_v54 = vadd.f32 %v5021_v26, %v7156_v31  ;;  %v7360_v56 = vadd.f32 %v5036_v37, %v7156_v31 }
 0x3ad   : > { %v4120_v39 = vpop.f32.mrf.mxu0  ;;  %v4181_v5 = vpop.f32.mrf.mxu1 }
 0x3ae   : > { %5248 = vpow2.f32 %v4268_v36  ;;  %v4264_v8 = vmul.f32 1.442695, %v4212_v58  ;;  %v4215_v19 = vsub.f32 0.0, %v4129_v54  ;;  %v4230_v2 = vsub.f32 0.0, %v7360_v56 }
 0x3af   : > { %v4121_v47 = vadd.f32 %v7156_v31, %v4120_v39  ;;  %v7365_v50 = vadd.f32 %v7156_v31, %v4181_v5  ;;  %v5037_v15 = vpop.f32.mrf.mxu1 }
 0x3b0   : > { %5250 = vpow2.f32 %v4264_v8  ;;  %v4270_v30 = vmul.f32 1.442695, %v4215_v19  ;;  %v4300_v32 = vmul.f32 1.442695, %v4230_v2  ;;  %v4193_v62 = vadd.f32 %v5037_v15, %v7156_v31 }
 0x3b1   : > { %v4213_v14 = vsub.f32 0.0, %v4121_v47  ;;  %v4228_v38 = vsub.f32 0.0, %v7365_v50  ;;  %v4184_v1 = vpop.f32.mrf.mxu1 }
 0x3b2   : > { %5252 = vpow2.f32 %v4270_v30  ;;  %v4231_v20 = vsub.f32 0.0, %v4193_v62  ;;  %v4185_v12 = vadd.f32 %v7156_v31, %v4184_v1 }
 0x3b3   : > { %5254 = vpow2.f32 %v4300_v32  ;;  %v4266_v52 = vmul.f32 1.442695, %v4213_v14  ;;  %v4296_v11 = vmul.f32 1.442695, %v4228_v38 }
 0x3b4   : > { %v4302_v55 = vmul.f32 1.442695, %v4231_v20  ;;  %v4229_v44 = vsub.f32 0.0, %v4185_v12 }
 0x3b5   : > { %5256 = vpow2.f32 %v4266_v52 }
 0x3b6   : > { %5258 = vpow2.f32 %v4296_v11  ;;  %v4298_v17 = vmul.f32 1.442695, %v4229_v44 }
 0x3b7   : > { %5260 = vpow2.f32 %v4302_v55 }
 0x3b8   : > { %5262 = vpow2.f32 %v4298_v17 }
 0x3bb   : > { %v5249_v53 = vpop.eup %5248 }
 0x3bc   : > { %v4322_v18 = vadd.f32 1.0, %v5249_v53 }
 0x3bd   : > { %v5251_v10 = vpop.eup %5250 }
 0x3be   : > { %v4320_v24 = vadd.f32 1.0, %v5251_v10  ;;  %5264 = vrcp.f32 %v4322_v18 }
 0x3bf   : > { %v5253_v21 = vpop.eup %5252 }
 0x3c0   : > { %v5255_v28 = vpop.eup %5254  ;;  %v4323_v41 = vadd.f32 1.0, %v5253_v21 }
 0x3c1   : > { %v4338_v60 = vadd.f32 1.0, %v5255_v28 }
 0x3c2   : > { %v5257_v31 = vpop.eup %5256  ;;  %5266 = vrcp.f32 %v4323_v41 }
 0x3c3   : > { %v5259_v49 = vpop.eup %5258  ;;  %5268 = vrcp.f32 %v4320_v24  ;;  %v4321_v40 = vadd.f32 1.0, %v5257_v31 }
 0x3c4   : > { %v5261_v29 = vpop.eup %5260  ;;  %5270 = vrcp.f32 %v4338_v60  ;;  %v4336_v4 = vadd.f32 1.0, %v5259_v49 }
 0x3c5   : > { %v5263_v42 = vpop.eup %5262  ;;  %5272 = vrcp.f32 %v4321_v40  ;;  %v4339_v59 = vadd.f32 1.0, %v5261_v29 }
 0x3c6   : > { %5274 = vrcp.f32 %v4336_v4  ;;  %v4337_v0 = vadd.f32 1.0, %v5263_v42 }
 0x3c7   : > { %5276 = vrcp.f32 %v4339_v59 }
 0x3c8   : > { %5278 = vrcp.f32 %v4337_v0 }
 0x3cb   : > { %v5265_v25 = vpop.eup %5264 }
 0x3cc   : > { %v4394_v45 = vmul.f32 %v5265_v25, %v7351_v33 }
 0x3cf   : > { %v5267_v35 = vpop.eup %5266 }
 0x3d0   : > { %v5269_v9 = vpop.eup %5268  ;;  %v4395_v48 = vmul.f32 %v5267_v35, %v4129_v54 }
 0x3d1   : > { %v5271_v57 = vpop.eup %5270  ;;  %v4392_v23 = vmul.f32 %v5269_v9, %v7355_v13 }
 0x3d2   : > { %v5273_v6 = vpop.eup %5272  ;;  %v4916_v16 = vpack.c.bf16 %v4395_v48, %v4394_v45  ;;  %v4410_v51 = vmul.f32 %v5271_v57, %v7360_v56 }
 0x3d3   : > { %v5275_v3 = vpop.eup %5274  ;;  %v4393_v63 = vmul.f32 %v5273_v6, %v4121_v47 }
 0x3d4   : > { %v5277_v34 = vpop.eup %5276  ;;  %4966 = vst [vmem:[%s7208_s21 + $0x48] sm:$0xff] %v4916_v16   ;;  %v4408_v22 = vmul.f32 %v5275_v3, %v7365_v50 }
 0x3d5   : > { %v5279_v61 = vpop.eup %5278  ;;  %v4911_v46 = vpack.c.bf16 %v4393_v63, %v4392_v23  ;;  %v4411_v43 = vmul.f32 %v5277_v34, %v4193_v62 }
 0x3d6   : > { %v4409_v33 = vmul.f32 %v5279_v61, %v4185_v12 }
 0x3d7   : > { %4965 = vst [vmem:[%s7208_s21 + $0x40] sm:$0xff] %v4911_v46   ;;  %v4956_v27 = vpack.c.bf16 %v4411_v43, %v4410_v51 }
 0x3d8   : > { %v4951_v7 = vpack.c.bf16 %v4409_v33, %v4408_v22 }
 0x3d9   : > { %4974 = vst [vmem:[%s7208_s21 + $0x88] sm:$0xff] %v4956_v27  }
 0x3da   : > { %4973 = vst [vmem:[%s7208_s21 + $0x80] sm:$0xff] %v4951_v7  }
 0x3db   : > { %5293 = shalt.err (!%p5290_p5)
}
 0x3dc   : > { %s5294_s10 = scalar_lea.hbm %s7383_s29, 2304  ;;  %s5298_s13 = scalar_lea.hbm %s7439_s4, 4608 }
 0x3dd   : > { %p5295_p6 = scmp.ne.s32.totalorder %s7383_s29, %s5294_s10  ;;  %p5299_p10 = scmp.lt.s32.totalorder %s7383_s29, %s7439_s4 }
 0x3de   : > { %p5300_p11 = scmp.lt.s32.totalorder %s5298_s13, %s5294_s10 }
 0x3df   : > { %p5296_p7 = pnand %p5295_p6, %p5433_p4 }
 0x3e0   : > { %p5301_p12 = por %p5300_p11, %p5299_p10 }
 0x3e1   : > { %p5297_p9 = pneg %p5296_p7 }
 0x3e3   : > { %p5302_p13 = pnand %p5301_p12, %p5297_p9 }
 0x3e5   : > { %5305 = shalt.err (!%p5302_p13)
}
 0x3e6   : > { %s5367_s22 = smov 64  }
 0x3e7   : > { %5050 = dma.vmem_to_hbm [thread:$0]  (%p5433_p4), %s7378_s24, 2304, %s7383_s29, %s7389_s30, %s5367_s22, %s5367_s22, %s5358_s8  }
 0x3e8 PF: > { %p5057_p0 = scmp.ge.s32.totalorder %s5356_s20, 2  ;;  %s4624_s26 = sand.u32 1, %s5336_s15  }
 0x3e9   : > { %s4625_s18 = scalar_lea.sflag [#allocation5], %s4624_s26 }
 0x3ea   : > { %p5053_p1 = pnand %p5057_p0, %p5440_p8 }
 0x3ec   : > { %p5054_p2 = pneg %p5053_p1 }
 0x3ee   : > { %5331 = dma.done.wait (%p5054_p2), %s4625_s18, 2304  }
 0x3ef   : > { %5333 = vsyncadd (%p5054_p2), %s4625_s18, 4294964992  ;;  %s17_s20 = sadd.s32 1, %s5356_s20   ;;  %s7454_s15 = smov %s5340_s16 }
 0x3f0   : > { %p14_p3 = scmp.ge.s32.totalorder %s17_s20, 4   ;;  %s7455_s16 = smov %s5344_s17 }
 0x3f1   : > { %s7456_s17 = smov %s5446_s28  ;;  %s7457_s18 = smov %s5352_s19 }
 0x3f2   : > { %s7458_s19 = smov %s7460_s23  ;;  %16 = sbr.rel (!%p14_p3) target bundleno = 4 (0x4), region = 84 }
 0x3f7   :  { %4630 = vsyncpa [#allocation5], 1 }
 0x3f8   :  { %4632 = vsyncpa [#allocation5 + $0x1], 1 }

</bundles_post_ra>
